<compile_context>
chip_gen: v5e
topology: v5e:2x2
jax: 0.10.0
libtpu: 0.0.40
codegen_flags: <defaults>
</compile_context>

<pallas_src>
import numpy as np
import jax
import jax.numpy as jnp
from jax import lax
from jax.experimental import pallas as pl
from jax.experimental.pallas import tpu as pltpu


# ----------------------------------------------------------------------------
# Synthetic full-octree bookkeeping (deterministic, numpy)
# ----------------------------------------------------------------------------
def _morton_encode(x, y, z, depth):
  code = np.zeros_like(x)
  for i in range(depth):
    code |= (((x >> i) & 1) << (3 * i + 2)
             | ((y >> i) & 1) << (3 * i + 1)
             | ((z >> i) & 1) << (3 * i + 0))
  return code


def build_conv1_neigh(batch, depth):
  """Neighbor table (27, B*V1^3) for the stride-2 conv (depth -> depth-1).

  Inputs are depth-`depth` octree nodes in Morton order (global index
  b*8^depth + code); outputs are enumerated in voxel-linear order at depth-1.
  -1 marks out-of-bounds taps.
  """
  v_in = 2 ** depth
  v_out = v_in // 2
  n_in_per = v_in ** 3
  m_out = v_out ** 3
  lin = np.arange(m_out, dtype=np.int64)
  X = lin // (v_out * v_out)
  Y = (lin // v_out) % v_out
  Z = lin % v_out
  offs = [(dx, dy, dz) for dx in (-1, 0, 1) for dy in (-1, 0, 1)
          for dz in (-1, 0, 1)]
  out = np.full((27, batch * m_out), -1, dtype=np.int64)
  for k, (dx, dy, dz) in enumerate(offs):
    nx, ny, nz = 2 * X + dx, 2 * Y + dy, 2 * Z + dz
    valid = ((nx >= 0) & (nx < v_in) & (ny >= 0) & (ny < v_in)
             & (nz >= 0) & (nz < v_in))
    code = _morton_encode(np.clip(nx, 0, v_in - 1), np.clip(ny, 0, v_in - 1),
                          np.clip(nz, 0, v_in - 1), depth)
    for b in range(batch):
      out[k, b * m_out:(b + 1) * m_out] = np.where(valid,
                                                   b * n_in_per + code, -1)
  return jnp.asarray(out, dtype=jnp.int32)


# ----------------------------------------------------------------------------
# Tile-size helper
# ----------------------------------------------------------------------------
def _pick_lane_tile(n, target=2048, min_tile=128, min_steps=4):
  """Multiple-of-128 divisor of n, >= min_tile, <= target when possible,
  preferring tilings that keep >= min_steps grid steps (v7x has 2 TCs)."""
  if n % 128 != 0:
    return n
  divs = [t for t in range(128, n + 1, 128) if n % t == 0 and t >= min_tile]
  if not divs:
    return n
  pref = [t for t in divs if n // t >= min_steps] or divs
  under = [t for t in pref if t <= target]
  return max(under) if under else min(pref)


# ----------------------------------------------------------------------------
# Conv1: stride-2 OctreeConvBnRelu (cols GEMM, see TODO at top)
# ----------------------------------------------------------------------------
def _cols_gemm_bias_relu_kernel(w_ref, cols_ref, bias_ref, o_ref):
  y = jnp.dot(w_ref[...], cols_ref[...], preferred_element_type=jnp.float32)
  y = y + bias_ref[...]                       # BN folded into w; bias only
  o_ref[...] = jnp.maximum(y, 0.0).astype(o_ref.dtype)


def octree_conv_bn_relu_cols(data_cf, neigh_t, w_t, bias, *, tile_n=2048):
  """data_cf: (cin, N_in) bf16 Morton order; neigh_t: (27, N_out) int32;
  w_t: (cout, 27*cin) bf16 (BN scale folded); bias: (cout, 1) f32."""
  cin = data_cf.shape[0]
  n_out = neigh_t.shape[1]
  cout, kdim = w_t.shape
  assert kdim == 27 * cin

  # octree2col gather (XLA glue), K ordering ci*27 + k (weights match).
  idx = jnp.where(neigh_t >= 0, neigh_t, 0)
  cols = jnp.take(data_cf, idx, axis=1)                     # (cin, 27, n_out)
  cols = jnp.where((neigh_t >= 0)[None, :, :], cols, 0.0)
  cols = cols.reshape(kdim, n_out)

  tn = _pick_lane_tile(n_out, target=tile_n)
  assert n_out % tn == 0
  flops = 2 * cout * kdim * n_out
  bytes_acc = 2 * (kdim * n_out + cout * kdim + cout * n_out) + 4 * cout
  return pl.pallas_call(
      _cols_gemm_bias_relu_kernel,
      out_shape=jax.ShapeDtypeStruct((cout, n_out), jnp.bfloat16),
      grid=(n_out // tn,),
      in_specs=[
          pl.BlockSpec((cout, kdim), lambda i: (0, 0)),     # stationary w
          pl.BlockSpec((kdim, tn), lambda i: (0, i)),       # streamed cols
          pl.BlockSpec((cout, 1), lambda i: (0, 0)),        # folded BN bias
      ],
      out_specs=pl.BlockSpec((cout, tn), lambda i: (0, i)),
      compiler_params=pltpu.CompilerParams(
          dimension_semantics=("parallel",)),
      cost_estimate=pl.CostEstimate(flops=flops, transcendentals=0,
                                    bytes_accessed=bytes_acc),
  )(w_t, cols, bias)


# ----------------------------------------------------------------------------
# Conv2/3: stride-1 OctreeConvBnRelu with the octree2col gather fused in-kernel
# ----------------------------------------------------------------------------
def octree_conv3x3_vox(data_cf, w_t, bias, *, grid_res, batch, tile_n=2048):
  """Stride-1 3x3x3 conv on a full octree level in voxel-linear channel-first
  layout.  No 27x cols array in HBM: the kernel builds the columns in VMEM
  from 27 statically shifted slices of a halo'd window of the level map."""
  cin, n = data_cf.shape
  cout, kdim = w_t.shape
  V = grid_res
  assert kdim == 27 * cin
  assert n == batch * V ** 3
  assert n % 128 == 0, "node count per level must be lane aligned"

  pad = V * V + V + 1                        # max |flat tap offset|
  tn = _pick_lane_tile(n, target=tile_n, min_tile=2 * pad)
  assert n % tn == 0 and tn >= 2 * pad
  n_tiles = n // tn
  # Left-pad by `pad`, right-pad to exactly one extra tile so the halo operand
  # (block index i+1) is always in range; padding is zero and also masked.
  padded = jnp.pad(data_cf, ((0, 0), (pad, tn - pad)))
  assert padded.shape[1] == (n_tiles + 1) * tn
  logv = V.bit_length() - 1
  taps = [(dx, dy, dz) for dx in (-1, 0, 1) for dy in (-1, 0, 1)
          for dz in (-1, 0, 1)]

  def kernel(a_ref, h_ref, w_ref, bias_ref, o_ref, cols_ref):
    i = pl.program_id(0)
    # Halo'd window: padded columns [i*tn, i*tn + 2*tn).
    full = jnp.concatenate([a_ref[...], h_ref[...]], axis=1)   # (cin, 2*tn)
    # Voxel coordinates of this tile's output columns (per batch item).
    lane = lax.broadcasted_iota(jnp.int32, (1, tn), 1)
    j = i * tn + lane
    r = j & (V * V * V - 1)
    z = r & (V - 1)
    y = (r >> logv) & (V - 1)
    x = (r >> (2 * logv)) & (V - 1)
    # In-VMEM octree2col: 27 statically shifted slices, boundary-masked.
    for k, (dx, dy, dz) in enumerate(taps):
      off = pad + dx * V * V + dy * V + dz                      # in [0, 2*pad]
      sl = full[:, off:off + tn]
      valid = ((x + dx >= 0) & (x + dx < V) & (y + dy >= 0) & (y + dy < V)
               & (z + dz >= 0) & (z + dz < V))
      cols_ref[k * cin:(k + 1) * cin, :] = jnp.where(valid, sl,
                                                     jnp.zeros_like(sl))
    yv = jnp.dot(w_ref[...], cols_ref[...],
                 preferred_element_type=jnp.float32)
    yv = yv + bias_ref[...]
    o_ref[...] = jnp.maximum(yv, 0.0).astype(o_ref.dtype)

  flops = 2 * cout * kdim * n
  bytes_acc = 2 * (2 * cin * (n + tn) + cout * kdim + cout * n) + 4 * cout
  return pl.pallas_call(
      kernel,
      out_shape=jax.ShapeDtypeStruct((cout, n), jnp.bfloat16),
      grid=(n_tiles,),
      in_specs=[
          pl.BlockSpec((cin, tn), lambda i: (0, i)),        # tile body
          pl.BlockSpec((cin, tn), lambda i: (0, i + 1)),    # right halo tile
          pl.BlockSpec((cout, kdim), lambda i: (0, 0)),     # stationary w
          pl.BlockSpec((cout, 1), lambda i: (0, 0)),        # folded BN bias
      ],
      out_specs=pl.BlockSpec((cout, tn), lambda i: (0, i)),
      scratch_shapes=[pltpu.VMEM((kdim, tn), jnp.bfloat16)],
      compiler_params=pltpu.CompilerParams(
          dimension_semantics=("parallel",),
          vmem_limit_bytes=48 * 1024 * 1024),               # v7x-safe budget
      cost_estimate=pl.CostEstimate(flops=flops, transcendentals=0,
                                    bytes_accessed=bytes_acc),
  )(padded, padded, w_t, bias)


# ----------------------------------------------------------------------------
# Header: Dropout(id) -> FcLeakyRelu -> Dropout(id) -> Linear, K-streamed FC1
# ----------------------------------------------------------------------------
def _header_kernel(x_ref, w1_ref, b1_ref, w2_ref, b2_ref, o_ref, acc_ref):
  k = pl.program_id(0)

  @pl.when(k == 0)
  def _():
    acc_ref[...] = jnp.zeros_like(acc_ref)

  acc_ref[...] += jnp.dot(x_ref[...], w1_ref[...],
                          preferred_element_type=jnp.float32)

  @pl.when(k == pl.num_programs(0) - 1)
  def _():
    h = acc_ref[...] + b1_ref[...]
    h = jnp.where(h > 0, h, jnp.float32(0.01) * h)          # LeakyReLU
    o_ref[...] = (jnp.dot(h, w2_ref[...], preferred_element_type=jnp.float32)
                  + b2_ref[...])


def header(x, w1, b1, w2, b2, *, tile_k=8192):
  batch, fc = x.shape
  hidden = w1.shape[1]
  cout = w2.shape[1]
  tk = _pick_lane_tile(fc, target=tile_k, min_steps=1)
  assert fc % tk == 0
  return pl.pallas_call(
      _header_kernel,
      out_shape=jax.ShapeDtypeStruct((batch, cout), jnp.float32),
      grid=(fc // tk,),
      in_specs=[
          pl.BlockSpec((batch, tk), lambda k: (0, k)),
          pl.BlockSpec((tk, hidden), lambda k: (k, 0)),
          pl.BlockSpec((1, hidden), lambda k: (0, 0)),
          pl.BlockSpec((hidden, cout), lambda k: (0, 0)),
          pl.BlockSpec((1, cout), lambda k: (0, 0)),
      ],
      out_specs=pl.BlockSpec((batch, cout), lambda k: (0, 0)),
      scratch_shapes=[pltpu.VMEM((batch, hidden), jnp.float32)],
      compiler_params=pltpu.CompilerParams(
          dimension_semantics=("arbitrary",)),
  )(x, w1, b1, w2, b2)


# ----------------------------------------------------------------------------
# VoxNet forward
# ----------------------------------------------------------------------------
def voxnet_forward(data, octree, params, depth, stages):
  batch = octree["batch"]
  x = jnp.transpose(data).astype(jnp.bfloat16)              # (cin, N) Morton
  # layers[0]: OctreeConvBnRelu(4 -> 32, stride=2), depth -> depth-1.
  x = octree_conv_bn_relu_cols(x, octree["neigh_conv1"], *params["conv1"])
  v1 = 2 ** (depth - 1)
  # layers[1], layers[2]: OctreeConvBnRelu(32 -> 32, stride=1) at depth-1
  # with the octree2col gather fused into the kernel.
  x = octree_conv3x3_vox(x, *params["conv2"], grid_res=v1, batch=batch)
  x = octree_conv3x3_vox(x, *params["conv3"], grid_res=v1, batch=batch)
  # layers[3]: OctreeMaxPool (depth-1 -> depth-2): 2x2x2 window max.  Free
  # reshape + small XLA reduce in voxel-linear order (see TODO at top).
  v2 = v1 // 2
  c = x.shape[0]
  x = x.reshape(c, batch, v2, 2, v2, 2, v2, 2)
  x = jnp.max(x, axis=(3, 5, 7))                            # (c, B, v2, v2, v2)
  # Octree2Voxel + flatten: features are already NCDHW voxel order, so only a
  # tiny (C,B)->(B,C) transpose of the pooled map remains.
  feat = jnp.transpose(x.reshape(c, batch, v2 ** 3), (1, 0, 2))
  feat = feat.reshape(batch, c * v2 ** 3)
  # header: Dropout -> FcLeakyRelu -> Dropout -> Linear
  return header(feat, *params["header"])


def init_params(key, in_channels, num_classes, fc_in, eps=1e-5):
  ks = jax.random.split(key, 12)

  def conv_bn(kw, kg, kb, cin, cout):
    kdim = 27 * cin
    w = jax.random.normal(kw, (cout, kdim), jnp.float32) / np.sqrt(kdim)
    gamma = 1.0 + 0.1 * jax.random.normal(kg, (cout,), jnp.float32)
    beta = 0.1 * jax.random.normal(kb, (cout,), jnp.float32)
    running_mean = jnp.zeros((cout,), jnp.float32)
    running_var = jnp.ones((cout,), jnp.float32)
    scale = gamma / jnp.sqrt(running_var + eps)
    bias = beta - running_mean * scale
    w = w * scale[:, None]                      # fold BN scale into weights
    return (w.astype(jnp.bfloat16), bias.reshape(cout, 1))

  w1 = (jax.random.normal(ks[9], (fc_in, 128), jnp.float32)
        / np.sqrt(fc_in)).astype(jnp.bfloat16)
  b1 = 0.01 * jax.random.normal(ks[10], (1, 128), jnp.float32)
  w2 = jax.random.normal(ks[11], (128, num_classes),
                         jnp.float32) / np.sqrt(128)
  b2 = jnp.zeros((1, num_classes), jnp.float32)

  return {
      "conv1": conv_bn(ks[0], ks[1], ks[2], in_channels, 32),
      "conv2": conv_bn(ks[3], ks[4], ks[5], 32, 32),
      "conv3": conv_bn(ks[6], ks[7], ks[8], 32, 32),
      "header": (w1, b1, w2, b2),
  }


# ----------------------------------------------------------------------------
if __name__ == "__main__":
  in_channels, num_classes = 4, 10
  stages = 2
  depth = 3          # input octree depth
  batch = 2

  # Synthetic full octree: B * 8^depth leaf nodes, features channel-last,
  # Morton node order (octree convention).
  n_nodes = batch * 8 ** depth
  key = jax.random.PRNGKey(0)
  k_data, k_params = jax.random.split(key)
  data = jax.random.normal(k_data, (n_nodes, in_channels), jnp.float32)

  octree = {
      "batch": batch,
      "neigh_conv1": build_conv1_neigh(batch, depth),
  }

  v2 = 2 ** (depth - stages)
  fc_in = 32 * v2 ** 3   # actual flattened size (see TODO about 64*64)
  params = init_params(k_params, in_channels, num_classes, fc_in)

  fwd = jax.jit(lambda d: voxnet_forward(d, octree, params, depth, stages))
  out = fwd(data)
  jax.block_until_ready(out)
  assert out.shape == (batch, num_classes), out.shape
  assert bool(jnp.all(jnp.isfinite(out)))
  print("KERNEL_OK")
</pallas_src>

<mosaic_0001>
module attributes {stable_mosaic.version = 11 : i64} {
  func.func @_cols_gemm_bias_relu_kernel(%arg0: i32, %arg1: memref<32x108xbf16, #tpu.memory_space<vmem>>, %arg2: memref<108x128xbf16, #tpu.memory_space<vmem>>, %arg3: memref<32x1xf32, #tpu.memory_space<vmem>>, %arg4: memref<32x128xbf16, #tpu.memory_space<vmem>>) attributes {dimension_semantics = [#tpu.dimension_semantics<parallel>], iteration_bounds = array<i64: 1>, scalar_prefetch = 0 : i64, scratch_operands = 0 : i64, tpu.core_type = #tpu.core_type<tc>, window_params = [{pipeline_mode = #tpu.pipeline_mode<synchronous>, transform_indices = @transform_0, window_bounds = array<i64: 32, 108>}, {transform_indices = @transform_1, window_bounds = array<i64: 108, 128>}, {pipeline_mode = #tpu.pipeline_mode<synchronous>, transform_indices = @transform_2, window_bounds = array<i64: 32, 1>}, {transform_indices = @transform_3, window_bounds = array<i64: 32, 128>}]} {
    %c0 = arith.constant 0 : index
    %c0_0 = arith.constant 0 : index
    %0 = vector.load %arg1[%c0, %c0_0] : memref<32x108xbf16, #tpu.memory_space<vmem>>, vector<32x108xbf16>
    %c0_1 = arith.constant 0 : index
    %c0_2 = arith.constant 0 : index
    %1 = vector.load %arg2[%c0_1, %c0_2] : memref<108x128xbf16, #tpu.memory_space<vmem>>, vector<108x128xbf16>
    %cst = arith.constant dense<0.000000e+00> : vector<32x128xf32>
    %2 = tpu.matmul %0, %1, %cst {dimension_numbers = #tpu.dot_dimension_numbers<[1], [0], [0], [1], [0, 0, 1, 1], [], []>} : vector<32x108xbf16>, vector<108x128xbf16>, vector<32x128xf32> -> vector<32x128xf32>
    %c0_3 = arith.constant 0 : index
    %c0_4 = arith.constant 0 : index
    %3 = vector.load %arg3[%c0_3, %c0_4] : memref<32x1xf32, #tpu.memory_space<vmem>>, vector<32x1xf32>
    %4 = vector.broadcast %3 : vector<32x1xf32> to vector<32x128xf32>
    %5 = arith.addf %2, %4 : vector<32x128xf32>
    %cst_5 = arith.constant 0.000000e+00 : f32
    %6 = vector.broadcast %cst_5 : f32 to vector<32x128xf32>
    %7 = arith.maximumf %5, %6 : vector<32x128xf32>
    %8 = arith.truncf %7 : vector<32x128xf32> to vector<32x128xbf16>
    %c0_6 = arith.constant 0 : index
    %c0_7 = arith.constant 0 : index
    %9 = vector.load %arg4[%c0_6, %c0_7] : memref<32x128xbf16, #tpu.memory_space<vmem>>, vector<32x128xbf16>
    tpu.vector_store %arg4[%c0_6, %c0_7], %8 {strides = array<i32>} : memref<32x128xbf16, #tpu.memory_space<vmem>>, vector<32x128xbf16>,
    return
  }
  func.func @transform_0(%arg0: i32) -> (i32, i32) {
    %c0_i32 = arith.constant 0 : i32
    %c0_i32_0 = arith.constant 0 : i32
    %c0_i32_1 = arith.constant 0 : i32
    return %c0_i32, %c0_i32_0 : i32, i32
  }
  func.func @transform_1(%arg0: i32) -> (i32, i32) {
    %c0_i32 = arith.constant 0 : i32
    %c0_i32_0 = arith.constant 0 : i32
    return %c0_i32, %arg0 : i32, i32
  }
  func.func @transform_2(%arg0: i32) -> (i32, i32) {
    %c0_i32 = arith.constant 0 : i32
    %c0_i32_0 = arith.constant 0 : i32
    %c0_i32_1 = arith.constant 0 : i32
    return %c0_i32, %c0_i32_0 : i32, i32
  }
  func.func @transform_3(%arg0: i32) -> (i32, i32) {
    %c0_i32 = arith.constant 0 : i32
    %c0_i32_0 = arith.constant 0 : i32
    return %c0_i32, %arg0 : i32, i32
  }
}

module attributes {stable_mosaic.version = 11 : i64} {
  func.func @kernel(%arg0: i32, %arg1: memref<32x128xbf16, #tpu.memory_space<vmem>>, %arg2: memref<32x128xbf16, #tpu.memory_space<vmem>>, %arg3: memref<32x864xbf16, #tpu.memory_space<vmem>>, %arg4: memref<32x1xf32, #tpu.memory_space<vmem>>, %arg5: memref<32x128xbf16, #tpu.memory_space<vmem>>, %arg6: memref<864x128xbf16, #tpu.memory_space<vmem>>) attributes {dimension_semantics = [#tpu.dimension_semantics<parallel>], iteration_bounds = array<i64: 1>, scalar_prefetch = 0 : i64, scratch_operands = 1 : i64, tpu.core_type = #tpu.core_type<tc>, window_params = [{transform_indices = @transform_0, window_bounds = array<i64: 32, 128>}, {transform_indices = @transform_1, window_bounds = array<i64: 32, 128>}, {pipeline_mode = #tpu.pipeline_mode<synchronous>, transform_indices = @transform_2, window_bounds = array<i64: 32, 864>}, {pipeline_mode = #tpu.pipeline_mode<synchronous>, transform_indices = @transform_3, window_bounds = array<i64: 32, 1>}, {transform_indices = @transform_4, window_bounds = array<i64: 32, 128>}]} {
    %c0 = arith.constant 0 : index
    %c0_0 = arith.constant 0 : index
    %0 = vector.load %arg1[%c0, %c0_0] : memref<32x128xbf16, #tpu.memory_space<vmem>>, vector<32x128xbf16>
    %c0_1 = arith.constant 0 : index
    %c0_2 = arith.constant 0 : index
    %1 = vector.load %arg2[%c0_1, %c0_2] : memref<32x128xbf16, #tpu.memory_space<vmem>>, vector<32x128xbf16>
    %2 = tpu.concatenate %0, %1 in 1 : vector<32x128xbf16>, vector<32x128xbf16> -> vector<32x256xbf16>
    %3 = tpu.iota {dimensions = array<i32: 1>} : vector<1x128xi32>
    %c128_i32 = arith.constant 128 : i32
    %4 = arith.muli %arg0, %c128_i32 : i32
    %5 = vector.broadcast %4 : i32 to vector<1x128xi32>
    %6 = arith.addi %5, %3 : vector<1x128xi32>
    %c63_i32 = arith.constant 63 : i32
    %7 = vector.broadcast %c63_i32 : i32 to vector<1x128xi32>
    %8 = arith.andi %6, %7 : vector<1x128xi32>
    %c3_i32 = arith.constant 3 : i32
    %9 = vector.broadcast %c3_i32 : i32 to vector<1x128xi32>
    %10 = arith.andi %8, %9 : vector<1x128xi32>
    %c2_i32 = arith.constant 2 : i32
    %11 = vector.broadcast %c2_i32 : i32 to vector<1x128xi32>
    %12 = arith.shrsi %8, %11 : vector<1x128xi32>
    %c3_i32_3 = arith.constant 3 : i32
    %13 = vector.broadcast %c3_i32_3 : i32 to vector<1x128xi32>
    %14 = arith.andi %12, %13 : vector<1x128xi32>
    %c4_i32 = arith.constant 4 : i32
    %15 = vector.broadcast %c4_i32 : i32 to vector<1x128xi32>
    %16 = arith.shrsi %8, %15 : vector<1x128xi32>
    %c3_i32_4 = arith.constant 3 : i32
    %17 = vector.broadcast %c3_i32_4 : i32 to vector<1x128xi32>
    %18 = arith.andi %16, %17 : vector<1x128xi32>
    %19 = vector.extract_strided_slice %2 {offsets = [0, 0], sizes = [32, 128], strides = [1, 1]} : vector<32x256xbf16> to vector<32x128xbf16>
    %c-1_i32 = arith.constant -1 : i32
    %20 = vector.broadcast %c-1_i32 : i32 to vector<1x128xi32>
    %21 = arith.addi %18, %20 : vector<1x128xi32>
    %c0_i32 = arith.constant 0 : i32
    %22 = vector.broadcast %c0_i32 : i32 to vector<1x128xi32>
    %23 = arith.cmpi sge, %21, %22 : vector<1x128xi32>
    %c-1_i32_5 = arith.constant -1 : i32
    %24 = vector.broadcast %c-1_i32_5 : i32 to vector<1x128xi32>
    %25 = arith.addi %18, %24 : vector<1x128xi32>
    %c4_i32_6 = arith.constant 4 : i32
    %26 = vector.broadcast %c4_i32_6 : i32 to vector<1x128xi32>
    %27 = arith.cmpi slt, %25, %26 : vector<1x128xi32>
    %28 = arith.andi %23, %27 : vector<1x128xi1>
    %c-1_i32_7 = arith.constant -1 : i32
    %29 = vector.broadcast %c-1_i32_7 : i32 to vector<1x128xi32>
    %30 = arith.addi %14, %29 : vector<1x128xi32>
    %c0_i32_8 = arith.constant 0 : i32
    %31 = vector.broadcast %c0_i32_8 : i32 to vector<1x128xi32>
    %32 = arith.cmpi sge, %30, %31 : vector<1x128xi32>
    %33 = arith.andi %28, %32 : vector<1x128xi1>
    %c-1_i32_9 = arith.constant -1 : i32
    %34 = vector.broadcast %c-1_i32_9 : i32 to vector<1x128xi32>
    %35 = arith.addi %14, %34 : vector<1x128xi32>
    %c4_i32_10 = arith.constant 4 : i32
    %36 = vector.broadcast %c4_i32_10 : i32 to vector<1x128xi32>
    %37 = arith.cmpi slt, %35, %36 : vector<1x128xi32>
    %38 = arith.andi %33, %37 : vector<1x128xi1>
    %c-1_i32_11 = arith.constant -1 : i32
    %39 = vector.broadcast %c-1_i32_11 : i32 to vector<1x128xi32>
    %40 = arith.addi %10, %39 : vector<1x128xi32>
    %c0_i32_12 = arith.constant 0 : i32
    %41 = vector.broadcast %c0_i32_12 : i32 to vector<1x128xi32>
    %42 = arith.cmpi sge, %40, %41 : vector<1x128xi32>
    %43 = arith.andi %38, %42 : vector<1x128xi1>
    %c-1_i32_13 = arith.constant -1 : i32
    %44 = vector.broadcast %c-1_i32_13 : i32 to vector<1x128xi32>
    %45 = arith.addi %10, %44 : vector<1x128xi32>
    %c4_i32_14 = arith.constant 4 : i32
    %46 = vector.broadcast %c4_i32_14 : i32 to vector<1x128xi32>
    %47 = arith.cmpi slt, %45, %46 : vector<1x128xi32>
    %48 = arith.andi %43, %47 : vector<1x128xi1>
    %cst = arith.constant 0.000000e+00 : bf16
    %49 = vector.broadcast %cst : bf16 to vector<32x128xbf16>
    %50 = vector.shape_cast %48 : vector<1x128xi1> to vector<1x128xi1>
    %51 = vector.broadcast %50 : vector<1x128xi1> to vector<32x128xi1>
    %52 = arith.select %51, %19, %49 : vector<32x128xi1>, vector<32x128xbf16>
    %c0_15 = arith.constant 0 : index
    %c0_16 = arith.constant 0 : index
    %53 = vector.load %arg6[%c0_15, %c0_16] : memref<864x128xbf16, #tpu.memory_space<vmem>>, vector<32x128xbf16>
    tpu.vector_store %arg6[%c0_15, %c0_16], %52 {strides = array<i32>} : memref<864x128xbf16, #tpu.memory_space<vmem>>, vector<32x128xbf16>,
    %54 = vector.extract_strided_slice %2 {offsets = [0, 1], sizes = [32, 128], strides = [1, 1]} : vector<32x256xbf16> to vector<32x128xbf16>
    %c-1_i32_17 = arith.constant -1 : i32
    %55 = vector.broadcast %c-1_i32_17 : i32 to vector<1x128xi32>
    %56 = arith.addi %18, %55 : vector<1x128xi32>
    %c0_i32_18 = arith.constant 0 : i32
    %57 = vector.broadcast %c0_i32_18 : i32 to vector<1x128xi32>
    %58 = arith.cmpi sge, %56, %57 : vector<1x128xi32>
    %c-1_i32_19 = arith.constant -1 : i32
    %59 = vector.broadcast %c-1_i32_19 : i32 to vector<1x128xi32>
    %60 = arith.addi %18, %59 : vector<1x128xi32>
    %c4_i32_20 = arith.constant 4 : i32
    %61 = vector.broadcast %c4_i32_20 : i32 to vector<1x128xi32>
    %62 = arith.cmpi slt, %60, %61 : vector<1x128xi32>
    %63 = arith.andi %58, %62 : vector<1x128xi1>
    %c-1_i32_21 = arith.constant -1 : i32
    %64 = vector.broadcast %c-1_i32_21 : i32 to vector<1x128xi32>
    %65 = arith.addi %14, %64 : vector<1x128xi32>
    %c0_i32_22 = arith.constant 0 : i32
    %66 = vector.broadcast %c0_i32_22 : i32 to vector<1x128xi32>
    %67 = arith.cmpi sge, %65, %66 : vector<1x128xi32>
    %68 = arith.andi %63, %67 : vector<1x128xi1>
    %c-1_i32_23 = arith.constant -1 : i32
    %69 = vector.broadcast %c-1_i32_23 : i32 to vector<1x128xi32>
    %70 = arith.addi %14, %69 : vector<1x128xi32>
    %c4_i32_24 = arith.constant 4 : i32
    %71 = vector.broadcast %c4_i32_24 : i32 to vector<1x128xi32>
    %72 = arith.cmpi slt, %70, %71 : vector<1x128xi32>
    %73 = arith.andi %68, %72 : vector<1x128xi1>
    %c0_i32_25 = arith.constant 0 : i32
    %74 = vector.broadcast %c0_i32_25 : i32 to vector<1x128xi32>
    %75 = arith.addi %10, %74 : vector<1x128xi32>
    %c0_i32_26 = arith.constant 0 : i32
    %76 = vector.broadcast %c0_i32_26 : i32 to vector<1x128xi32>
    %77 = arith.cmpi sge, %75, %76 : vector<1x128xi32>
    %78 = arith.andi %73, %77 : vector<1x128xi1>
    %c0_i32_27 = arith.constant 0 : i32
    %79 = vector.broadcast %c0_i32_27 : i32 to vector<1x128xi32>
    %80 = arith.addi %10, %79 : vector<1x128xi32>
    %c4_i32_28 = arith.constant 4 : i32
    %81 = vector.broadcast %c4_i32_28 : i32 to vector<1x128xi32>
    %82 = arith.cmpi slt, %80, %81 : vector<1x128xi32>
    %83 = arith.andi %78, %82 : vector<1x128xi1>
    %cst_29 = arith.constant 0.000000e+00 : bf16
    %84 = vector.broadcast %cst_29 : bf16 to vector<32x128xbf16>
    %85 = vector.shape_cast %83 : vector<1x128xi1> to vector<1x128xi1>
    %86 = vector.broadcast %85 : vector<1x128xi1> to vector<32x128xi1>
    %87 = arith.select %86, %54, %84 : vector<32x128xi1>, vector<32x128xbf16>
    %c32 = arith.constant 32 : index
    %c0_30 = arith.constant 0 : index
    %88 = vector.load %arg6[%c32, %c0_30] : memref<864x128xbf16, #tpu.memory_space<vmem>>, vector<32x128xbf16>
    tpu.vector_store %arg6[%c32, %c0_30], %87 {strides = array<i32>} : memref<864x128xbf16, #tpu.memory_space<vmem>>, vector<32x128xbf16>,
    %89 = vector.extract_strided_slice %2 {offsets = [0, 2], sizes = [32, 128], strides = [1, 1]} : vector<32x256xbf16> to vector<32x128xbf16>
    %c-1_i32_31 = arith.constant -1 : i32
    %90 = vector.broadcast %c-1_i32_31 : i32 to vector<1x128xi32>
    %91 = arith.addi %18, %90 : vector<1x128xi32>
    %c0_i32_32 = arith.constant 0 : i32
    %92 = vector.broadcast %c0_i32_32 : i32 to vector<1x128xi32>
    %93 = arith.cmpi sge, %91, %92 : vector<1x128xi32>
    %c-1_i32_33 = arith.constant -1 : i32
    %94 = vector.broadcast %c-1_i32_33 : i32 to vector<1x128xi32>
    %95 = arith.addi %18, %94 : vector<1x128xi32>
    %c4_i32_34 = arith.constant 4 : i32
    %96 = vector.broadcast %c4_i32_34 : i32 to vector<1x128xi32>
    %97 = arith.cmpi slt, %95, %96 : vector<1x128xi32>
    %98 = arith.andi %93, %97 : vector<1x128xi1>
    %c-1_i32_35 = arith.constant -1 : i32
    %99 = vector.broadcast %c-1_i32_35 : i32 to vector<1x128xi32>
    %100 = arith.addi %14, %99 : vector<1x128xi32>
    %c0_i32_36 = arith.constant 0 : i32
    %101 = vector.broadcast %c0_i32_36 : i32 to vector<1x128xi32>
    %102 = arith.cmpi sge, %100, %101 : vector<1x128xi32>
    %103 = arith.andi %98, %102 : vector<1x128xi1>
    %c-1_i32_37 = arith.constant -1 : i32
    %104 = vector.broadcast %c-1_i32_37 : i32 to vector<1x128xi32>
    %105 = arith.addi %14, %104 : vector<1x128xi32>
    %c4_i32_38 = arith.constant 4 : i32
    %106 = vector.broadcast %c4_i32_38 : i32 to vector<1x128xi32>
    %107 = arith.cmpi slt, %105, %106 : vector<1x128xi32>
    %108 = arith.andi %103, %107 : vector<1x128xi1>
    %c1_i32 = arith.constant 1 : i32
    %109 = vector.broadcast %c1_i32 : i32 to vector<1x128xi32>
    %110 = arith.addi %10, %109 : vector<1x128xi32>
    %c0_i32_39 = arith.constant 0 : i32
    %111 = vector.broadcast %c0_i32_39 : i32 to vector<1x128xi32>
    %112 = arith.cmpi sge, %110, %111 : vector<1x128xi32>
    %113 = arith.andi %108, %112 : vector<1x128xi1>
    %c1_i32_40 = arith.constant 1 : i32
    %114 = vector.broadcast %c1_i32_40 : i32 to vector<1x128xi32>
    %115 = arith.addi %10, %114 : vector<1x128xi32>
    %c4_i32_41 = arith.constant 4 : i32
    %116 = vector.broadcast %c4_i32_41 : i32 to vector<1x128xi32>
    %117 = arith.cmpi slt, %115, %116 : vector<1x128xi32>
    %118 = arith.andi %113, %117 : vector<1x128xi1>
    %cst_42 = arith.constant 0.000000e+00 : bf16
    %119 = vector.broadcast %cst_42 : bf16 to vector<32x128xbf16>
    %120 = vector.shape_cast %118 : vector<1x128xi1> to vector<1x128xi1>
    %121 = vector.broadcast %120 : vector<1x128xi1> to vector<32x128xi1>
    %122 = arith.select %121, %89, %119 : vector<32x128xi1>, vector<32x128xbf16>
    %c64 = arith.constant 64 : index
    %c0_43 = arith.constant 0 : index
    %123 = vector.load %arg6[%c64, %c0_43] : memref<864x128xbf16, #tpu.memory_space<vmem>>, vector<32x128xbf16>
    tpu.vector_store %arg6[%c64, %c0_43], %122 {strides = array<i32>} : memref<864x128xbf16, #tpu.memory_space<vmem>>, vector<32x128xbf16>,
    %124 = vector.extract_strided_slice %2 {offsets = [0, 4], sizes = [32, 128], strides = [1, 1]} : vector<32x256xbf16> to vector<32x128xbf16>
    %c-1_i32_44 = arith.constant -1 : i32
    %125 = vector.broadcast %c-1_i32_44 : i32 to vector<1x128xi32>
    %126 = arith.addi %18, %125 : vector<1x128xi32>
    %c0_i32_45 = arith.constant 0 : i32
    %127 = vector.broadcast %c0_i32_45 : i32 to vector<1x128xi32>
    %128 = arith.cmpi sge, %126, %127 : vector<1x128xi32>
    %c-1_i32_46 = arith.constant -1 : i32
    %129 = vector.broadcast %c-1_i32_46 : i32 to vector<1x128xi32>
    %130 = arith.addi %18, %129 : vector<1x128xi32>
    %c4_i32_47 = arith.constant 4 : i32
    %131 = vector.broadcast %c4_i32_47 : i32 to vector<1x128xi32>
    %132 = arith.cmpi slt, %130, %131 : vector<1x128xi32>
    %133 = arith.andi %128, %132 : vector<1x128xi1>
    %c0_i32_48 = arith.constant 0 : i32
    %134 = vector.broadcast %c0_i32_48 : i32 to vector<1x128xi32>
    %135 = arith.addi %14, %134 : vector<1x128xi32>
    %c0_i32_49 = arith.constant 0 : i32
    %136 = vector.broadcast %c0_i32_49 : i32 to vector<1x128xi32>
    %137 = arith.cmpi sge, %135, %136 : vector<1x128xi32>
    %138 = arith.andi %133, %137 : vector<1x128xi1>
    %c0_i32_50 = arith.constant 0 : i32
    %139 = vector.broadcast %c0_i32_50 : i32 to vector<1x128xi32>
    %140 = arith.addi %14, %139 : vector<1x128xi32>
    %c4_i32_51 = arith.constant 4 : i32
    %141 = vector.broadcast %c4_i32_51 : i32 to vector<1x128xi32>
    %142 = arith.cmpi slt, %140, %141 : vector<1x128xi32>
    %143 = arith.andi %138, %142 : vector<1x128xi1>
    %c-1_i32_52 = arith.constant -1 : i32
    %144 = vector.broadcast %c-1_i32_52 : i32 to vector<1x128xi32>
    %145 = arith.addi %10, %144 : vector<1x128xi32>
    %c0_i32_53 = arith.constant 0 : i32
    %146 = vector.broadcast %c0_i32_53 : i32 to vector<1x128xi32>
    %147 = arith.cmpi sge, %145, %146 : vector<1x128xi32>
    %148 = arith.andi %143, %147 : vector<1x128xi1>
    %c-1_i32_54 = arith.constant -1 : i32
    %149 = vector.broadcast %c-1_i32_54 : i32 to vector<1x128xi32>
    %150 = arith.addi %10, %149 : vector<1x128xi32>
    %c4_i32_55 = arith.constant 4 : i32
    %151 = vector.broadcast %c4_i32_55 : i32 to vector<1x128xi32>
    %152 = arith.cmpi slt, %150, %151 : vector<1x128xi32>
    %153 = arith.andi %148, %152 : vector<1x128xi1>
    %cst_56 = arith.constant 0.000000e+00 : bf16
    %154 = vector.broadcast %cst_56 : bf16 to vector<32x128xbf16>
    %155 = vector.shape_cast %153 : vector<1x128xi1> to vector<1x128xi1>
    %156 = vector.broadcast %155 : vector<1x128xi1> to vector<32x128xi1>
    %157 = arith.select %156, %124, %154 : vector<32x128xi1>, vector<32x128xbf16>
    %c96 = arith.constant 96 : index
    %c0_57 = arith.constant 0 : index
    %158 = vector.load %arg6[%c96, %c0_57] : memref<864x128xbf16, #tpu.memory_space<vmem>>, vector<32x128xbf16>
    tpu.vector_store %arg6[%c96, %c0_57], %157 {strides = array<i32>} : memref<864x128xbf16, #tpu.memory_space<vmem>>, vector<32x128xbf16>,
    %159 = vector.extract_strided_slice %2 {offsets = [0, 5], sizes = [32, 128], strides = [1, 1]} : vector<32x256xbf16> to vector<32x128xbf16>
    %c-1_i32_58 = arith.constant -1 : i32
    %160 = vector.broadcast %c-1_i32_58 : i32 to vector<1x128xi32>
    %161 = arith.addi %18, %160 : vector<1x128xi32>
    %c0_i32_59 = arith.constant 0 : i32
    %162 = vector.broadcast %c0_i32_59 : i32 to vector<1x128xi32>
    %163 = arith.cmpi sge, %161, %162 : vector<1x128xi32>
    %c-1_i32_60 = arith.constant -1 : i32
    %164 = vector.broadcast %c-1_i32_60 : i32 to vector<1x128xi32>
    %165 = arith.addi %18, %164 : vector<1x128xi32>
    %c4_i32_61 = arith.constant 4 : i32
    %166 = vector.broadcast %c4_i32_61 : i32 to vector<1x128xi32>
    %167 = arith.cmpi slt, %165, %166 : vector<1x128xi32>
    %168 = arith.andi %163, %167 : vector<1x128xi1>
    %c0_i32_62 = arith.constant 0 : i32
    %169 = vector.broadcast %c0_i32_62 : i32 to vector<1x128xi32>
    %170 = arith.addi %14, %169 : vector<1x128xi32>
    %c0_i32_63 = arith.constant 0 : i32
    %171 = vector.broadcast %c0_i32_63 : i32 to vector<1x128xi32>
    %172 = arith.cmpi sge, %170, %171 : vector<1x128xi32>
    %173 = arith.andi %168, %172 : vector<1x128xi1>
    %c0_i32_64 = arith.constant 0 : i32
    %174 = vector.broadcast %c0_i32_64 : i32 to vector<1x128xi32>
    %175 = arith.addi %14, %174 : vector<1x128xi32>
    %c4_i32_65 = arith.constant 4 : i32
    %176 = vector.broadcast %c4_i32_65 : i32 to vector<1x128xi32>
    %177 = arith.cmpi slt, %175, %176 : vector<1x128xi32>
    %178 = arith.andi %173, %177 : vector<1x128xi1>
    %c0_i32_66 = arith.constant 0 : i32
    %179 = vector.broadcast %c0_i32_66 : i32 to vector<1x128xi32>
    %180 = arith.addi %10, %179 : vector<1x128xi32>
    %c0_i32_67 = arith.constant 0 : i32
    %181 = vector.broadcast %c0_i32_67 : i32 to vector<1x128xi32>
    %182 = arith.cmpi sge, %180, %181 : vector<1x128xi32>
    %183 = arith.andi %178, %182 : vector<1x128xi1>
    %c0_i32_68 = arith.constant 0 : i32
    %184 = vector.broadcast %c0_i32_68 : i32 to vector<1x128xi32>
    %185 = arith.addi %10, %184 : vector<1x128xi32>
    %c4_i32_69 = arith.constant 4 : i32
    %186 = vector.broadcast %c4_i32_69 : i32 to vector<1x128xi32>
    %187 = arith.cmpi slt, %185, %186 : vector<1x128xi32>
    %188 = arith.andi %183, %187 : vector<1x128xi1>
    %cst_70 = arith.constant 0.000000e+00 : bf16
    %189 = vector.broadcast %cst_70 : bf16 to vector<32x128xbf16>
    %190 = vector.shape_cast %188 : vector<1x128xi1> to vector<1x128xi1>
    %191 = vector.broadcast %190 : vector<1x128xi1> to vector<32x128xi1>
    %192 = arith.select %191, %159, %189 : vector<32x128xi1>, vector<32x128xbf16>
    %c128 = arith.constant 128 : index
    %c0_71 = arith.constant 0 : index
    %193 = vector.load %arg6[%c128, %c0_71] : memref<864x128xbf16, #tpu.memory_space<vmem>>, vector<32x128xbf16>
    tpu.vector_store %arg6[%c128, %c0_71], %192 {strides = array<i32>} : memref<864x128xbf16, #tpu.memory_space<vmem>>, vector<32x128xbf16>,
    %194 = vector.extract_strided_slice %2 {offsets = [0, 6], sizes = [32, 128], strides = [1, 1]} : vector<32x256xbf16> to vector<32x128xbf16>
    %c-1_i32_72 = arith.constant -1 : i32
    %195 = vector.broadcast %c-1_i32_72 : i32 to vector<1x128xi32>
    %196 = arith.addi %18, %195 : vector<1x128xi32>
    %c0_i32_73 = arith.constant 0 : i32
    %197 = vector.broadcast %c0_i32_73 : i32 to vector<1x128xi32>
    %198 = arith.cmpi sge, %196, %197 : vector<1x128xi32>
    %c-1_i32_74 = arith.constant -1 : i32
    %199 = vector.broadcast %c-1_i32_74 : i32 to vector<1x128xi32>
    %200 = arith.addi %18, %199 : vector<1x128xi32>
    %c4_i32_75 = arith.constant 4 : i32
    %201 = vector.broadcast %c4_i32_75 : i32 to vector<1x128xi32>
    %202 = arith.cmpi slt, %200, %201 : vector<1x128xi32>
    %203 = arith.andi %198, %202 : vector<1x128xi1>
    %c0_i32_76 = arith.constant 0 : i32
    %204 = vector.broadcast %c0_i32_76 : i32 to vector<1x128xi32>
    %205 = arith.addi %14, %204 : vector<1x128xi32>
    %c0_i32_77 = arith.constant 0 : i32
    %206 = vector.broadcast %c0_i32_77 : i32 to vector<1x128xi32>
    %207 = arith.cmpi sge, %205, %206 : vector<1x128xi32>
    %208 = arith.andi %203, %207 : vector<1x128xi1>
    %c0_i32_78 = arith.constant 0 : i32
    %209 = vector.broadcast %c0_i32_78 : i32 to vector<1x128xi32>
    %210 = arith.addi %14, %209 : vector<1x128xi32>
    %c4_i32_79 = arith.constant 4 : i32
    %211 = vector.broadcast %c4_i32_79 : i32 to vector<1x128xi32>
    %212 = arith.cmpi slt, %210, %211 : vector<1x128xi32>
    %213 = arith.andi %208, %212 : vector<1x128xi1>
    %c1_i32_80 = arith.constant 1 : i32
    %214 = vector.broadcast %c1_i32_80 : i32 to vector<1x128xi32>
    %215 = arith.addi %10, %214 : vector<1x128xi32>
    %c0_i32_81 = arith.constant 0 : i32
    %216 = vector.broadcast %c0_i32_81 : i32 to vector<1x128xi32>
    %217 = arith.cmpi sge, %215, %216 : vector<1x128xi32>
    %218 = arith.andi %213, %217 : vector<1x128xi1>
    %c1_i32_82 = arith.constant 1 : i32
    %219 = vector.broadcast %c1_i32_82 : i32 to vector<1x128xi32>
    %220 = arith.addi %10, %219 : vector<1x128xi32>
    %c4_i32_83 = arith.constant 4 : i32
    %221 = vector.broadcast %c4_i32_83 : i32 to vector<1x128xi32>
    %222 = arith.cmpi slt, %220, %221 : vector<1x128xi32>
    %223 = arith.andi %218, %222 : vector<1x128xi1>
    %cst_84 = arith.constant 0.000000e+00 : bf16
    %224 = vector.broadcast %cst_84 : bf16 to vector<32x128xbf16>
    %225 = vector.shape_cast %223 : vector<1x128xi1> to vector<1x128xi1>
    %226 = vector.broadcast %225 : vector<1x128xi1> to vector<32x128xi1>
    %227 = arith.select %226, %194, %224 : vector<32x128xi1>, vector<32x128xbf16>
    %c160 = arith.constant 160 : index
    %c0_85 = arith.constant 0 : index
    %228 = vector.load %arg6[%c160, %c0_85] : memref<864x128xbf16, #tpu.memory_space<vmem>>, vector<32x128xbf16>
    tpu.vector_store %arg6[%c160, %c0_85], %227 {strides = array<i32>} : memref<864x128xbf16, #tpu.memory_space<vmem>>, vector<32x128xbf16>,
    %229 = vector.extract_strided_slice %2 {offsets = [0, 8], sizes = [32, 128], strides = [1, 1]} : vector<32x256xbf16> to vector<32x128xbf16>
    %c-1_i32_86 = arith.constant -1 : i32
    %230 = vector.broadcast %c-1_i32_86 : i32 to vector<1x128xi32>
    %231 = arith.addi %18, %230 : vector<1x128xi32>
    %c0_i32_87 = arith.constant 0 : i32
    %232 = vector.broadcast %c0_i32_87 : i32 to vector<1x128xi32>
    %233 = arith.cmpi sge, %231, %232 : vector<1x128xi32>
    %c-1_i32_88 = arith.constant -1 : i32
    %234 = vector.broadcast %c-1_i32_88 : i32 to vector<1x128xi32>
    %235 = arith.addi %18, %234 : vector<1x128xi32>
    %c4_i32_89 = arith.constant 4 : i32
    %236 = vector.broadcast %c4_i32_89 : i32 to vector<1x128xi32>
    %237 = arith.cmpi slt, %235, %236 : vector<1x128xi32>
    %238 = arith.andi %233, %237 : vector<1x128xi1>
    %c1_i32_90 = arith.constant 1 : i32
    %239 = vector.broadcast %c1_i32_90 : i32 to vector<1x128xi32>
    %240 = arith.addi %14, %239 : vector<1x128xi32>
    %c0_i32_91 = arith.constant 0 : i32
    %241 = vector.broadcast %c0_i32_91 : i32 to vector<1x128xi32>
    %242 = arith.cmpi sge, %240, %241 : vector<1x128xi32>
    %243 = arith.andi %238, %242 : vector<1x128xi1>
    %c1_i32_92 = arith.constant 1 : i32
    %244 = vector.broadcast %c1_i32_92 : i32 to vector<1x128xi32>
    %245 = arith.addi %14, %244 : vector<1x128xi32>
    %c4_i32_93 = arith.constant 4 : i32
    %246 = vector.broadcast %c4_i32_93 : i32 to vector<1x128xi32>
    %247 = arith.cmpi slt, %245, %246 : vector<1x128xi32>
    %248 = arith.andi %243, %247 : vector<1x128xi1>
    %c-1_i32_94 = arith.constant -1 : i32
    %249 = vector.broadcast %c-1_i32_94 : i32 to vector<1x128xi32>
    %250 = arith.addi %10, %249 : vector<1x128xi32>
    %c0_i32_95 = arith.constant 0 : i32
    %251 = vector.broadcast %c0_i32_95 : i32 to vector<1x128xi32>
    %252 = arith.cmpi sge, %250, %251 : vector<1x128xi32>
    %253 = arith.andi %248, %252 : vector<1x128xi1>
    %c-1_i32_96 = arith.constant -1 : i32
    %254 = vector.broadcast %c-1_i32_96 : i32 to vector<1x128xi32>
    %255 = arith.addi %10, %254 : vector<1x128xi32>
    %c4_i32_97 = arith.constant 4 : i32
    %256 = vector.broadcast %c4_i32_97 : i32 to vector<1x128xi32>
    %257 = arith.cmpi slt, %255, %256 : vector<1x128xi32>
    %258 = arith.andi %253, %257 : vector<1x128xi1>
    %cst_98 = arith.constant 0.000000e+00 : bf16
    %259 = vector.broadcast %cst_98 : bf16 to vector<32x128xbf16>
    %260 = vector.shape_cast %258 : vector<1x128xi1> to vector<1x128xi1>
    %261 = vector.broadcast %260 : vector<1x128xi1> to vector<32x128xi1>
    %262 = arith.select %261, %229, %259 : vector<32x128xi1>, vector<32x128xbf16>
    %c192 = arith.constant 192 : index
    %c0_99 = arith.constant 0 : index
    %263 = vector.load %arg6[%c192, %c0_99] : memref<864x128xbf16, #tpu.memory_space<vmem>>, vector<32x128xbf16>
    tpu.vector_store %arg6[%c192, %c0_99], %262 {strides = array<i32>} : memref<864x128xbf16, #tpu.memory_space<vmem>>, vector<32x128xbf16>,
    %264 = vector.extract_strided_slice %2 {offsets = [0, 9], sizes = [32, 128], strides = [1, 1]} : vector<32x256xbf16> to vector<32x128xbf16>
    %c-1_i32_100 = arith.constant -1 : i32
    %265 = vector.broadcast %c-1_i32_100 : i32 to vector<1x128xi32>
    %266 = arith.addi %18, %265 : vector<1x128xi32>
    %c0_i32_101 = arith.constant 0 : i32
    %267 = vector.broadcast %c0_i32_101 : i32 to vector<1x128xi32>
    %268 = arith.cmpi sge, %266, %267 : vector<1x128xi32>
    %c-1_i32_102 = arith.constant -1 : i32
    %269 = vector.broadcast %c-1_i32_102 : i32 to vector<1x128xi32>
    %270 = arith.addi %18, %269 : vector<1x128xi32>
    %c4_i32_103 = arith.constant 4 : i32
    %271 = vector.broadcast %c4_i32_103 : i32 to vector<1x128xi32>
    %272 = arith.cmpi slt, %270, %271 : vector<1x128xi32>
    %273 = arith.andi %268, %272 : vector<1x128xi1>
    %c1_i32_104 = arith.constant 1 : i32
    %274 = vector.broadcast %c1_i32_104 : i32 to vector<1x128xi32>
    %275 = arith.addi %14, %274 : vector<1x128xi32>
    %c0_i32_105 = arith.constant 0 : i32
    %276 = vector.broadcast %c0_i32_105 : i32 to vector<1x128xi32>
    %277 = arith.cmpi sge, %275, %276 : vector<1x128xi32>
    %278 = arith.andi %273, %277 : vector<1x128xi1>
    %c1_i32_106 = arith.constant 1 : i32
    %279 = vector.broadcast %c1_i32_106 : i32 to vector<1x128xi32>
    %280 = arith.addi %14, %279 : vector<1x128xi32>
    %c4_i32_107 = arith.constant 4 : i32
    %281 = vector.broadcast %c4_i32_107 : i32 to vector<1x128xi32>
    %282 = arith.cmpi slt, %280, %281 : vector<1x128xi32>
    %283 = arith.andi %278, %282 : vector<1x128xi1>
    %c0_i32_108 = arith.constant 0 : i32
    %284 = vector.broadcast %c0_i32_108 : i32 to vector<1x128xi32>
    %285 = arith.addi %10, %284 : vector<1x128xi32>
    %c0_i32_109 = arith.constant 0 : i32
    %286 = vector.broadcast %c0_i32_109 : i32 to vector<1x128xi32>
    %287 = arith.cmpi sge, %285, %286 : vector<1x128xi32>
    %288 = arith.andi %283, %287 : vector<1x128xi1>
    %c0_i32_110 = arith.constant 0 : i32
    %289 = vector.broadcast %c0_i32_110 : i32 to vector<1x128xi32>
    %290 = arith.addi %10, %289 : vector<1x128xi32>
    %c4_i32_111 = arith.constant 4 : i32
    %291 = vector.broadcast %c4_i32_111 : i32 to vector<1x128xi32>
    %292 = arith.cmpi slt, %290, %291 : vector<1x128xi32>
    %293 = arith.andi %288, %292 : vector<1x128xi1>
    %cst_112 = arith.constant 0.000000e+00 : bf16
    %294 = vector.broadcast %cst_112 : bf16 to vector<32x128xbf16>
    %295 = vector.shape_cast %293 : vector<1x128xi1> to vector<1x128xi1>
    %296 = vector.broadcast %295 : vector<1x128xi1> to vector<32x128xi1>
    %297 = arith.select %296, %264, %294 : vector<32x128xi1>, vector<32x128xbf16>
    %c224 = arith.constant 224 : index
    %c0_113 = arith.constant 0 : index
    %298 = vector.load %arg6[%c224, %c0_113] : memref<864x128xbf16, #tpu.memory_space<vmem>>, vector<32x128xbf16>
    tpu.vector_store %arg6[%c224, %c0_113], %297 {strides = array<i32>} : memref<864x128xbf16, #tpu.memory_space<vmem>>, vector<32x128xbf16>,
    %299 = vector.extract_strided_slice %2 {offsets = [0, 10], sizes = [32, 128], strides = [1, 1]} : vector<32x256xbf16> to vector<32x128xbf16>
    %c-1_i32_114 = arith.constant -1 : i32
    %300 = vector.broadcast %c-1_i32_114 : i32 to vector<1x128xi32>
    %301 = arith.addi %18, %300 : vector<1x128xi32>
    %c0_i32_115 = arith.constant 0 : i32
    %302 = vector.broadcast %c0_i32_115 : i32 to vector<1x128xi32>
    %303 = arith.cmpi sge, %301, %302 : vector<1x128xi32>
    %c-1_i32_116 = arith.constant -1 : i32
    %304 = vector.broadcast %c-1_i32_116 : i32 to vector<1x128xi32>
    %305 = arith.addi %18, %304 : vector<1x128xi32>
    %c4_i32_117 = arith.constant 4 : i32
    %306 = vector.broadcast %c4_i32_117 : i32 to vector<1x128xi32>
    %307 = arith.cmpi slt, %305, %306 : vector<1x128xi32>
    %308 = arith.andi %303, %307 : vector<1x128xi1>
    %c1_i32_118 = arith.constant 1 : i32
    %309 = vector.broadcast %c1_i32_118 : i32 to vector<1x128xi32>
    %310 = arith.addi %14, %309 : vector<1x128xi32>
    %c0_i32_119 = arith.constant 0 : i32
    %311 = vector.broadcast %c0_i32_119 : i32 to vector<1x128xi32>
    %312 = arith.cmpi sge, %310, %311 : vector<1x128xi32>
    %313 = arith.andi %308, %312 : vector<1x128xi1>
    %c1_i32_120 = arith.constant 1 : i32
    %314 = vector.broadcast %c1_i32_120 : i32 to vector<1x128xi32>
    %315 = arith.addi %14, %314 : vector<1x128xi32>
    %c4_i32_121 = arith.constant 4 : i32
    %316 = vector.broadcast %c4_i32_121 : i32 to vector<1x128xi32>
    %317 = arith.cmpi slt, %315, %316 : vector<1x128xi32>
    %318 = arith.andi %313, %317 : vector<1x128xi1>
    %c1_i32_122 = arith.constant 1 : i32
    %319 = vector.broadcast %c1_i32_122 : i32 to vector<1x128xi32>
    %320 = arith.addi %10, %319 : vector<1x128xi32>
    %c0_i32_123 = arith.constant 0 : i32
    %321 = vector.broadcast %c0_i32_123 : i32 to vector<1x128xi32>
    %322 = arith.cmpi sge, %320, %321 : vector<1x128xi32>
    %323 = arith.andi %318, %322 : vector<1x128xi1>
    %c1_i32_124 = arith.constant 1 : i32
    %324 = vector.broadcast %c1_i32_124 : i32 to vector<1x128xi32>
    %325 = arith.addi %10, %324 : vector<1x128xi32>
    %c4_i32_125 = arith.constant 4 : i32
    %326 = vector.broadcast %c4_i32_125 : i32 to vector<1x128xi32>
    %327 = arith.cmpi slt, %325, %326 : vector<1x128xi32>
    %328 = arith.andi %323, %327 : vector<1x128xi1>
    %cst_126 = arith.constant 0.000000e+00 : bf16
    %329 = vector.broadcast %cst_126 : bf16 to vector<32x128xbf16>
    %330 = vector.shape_cast %328 : vector<1x128xi1> to vector<1x128xi1>
    %331 = vector.broadcast %330 : vector<1x128xi1> to vector<32x128xi1>
    %332 = arith.select %331, %299, %329 : vector<32x128xi1>, vector<32x128xbf16>
    %c256 = arith.constant 256 : index
    %c0_127 = arith.constant 0 : index
    %333 = vector.load %arg6[%c256, %c0_127] : memref<864x128xbf16, #tpu.memory_space<vmem>>, vector<32x128xbf16>
    tpu.vector_store %arg6[%c256, %c0_127], %332 {strides = array<i32>} : memref<864x128xbf16, #tpu.memory_space<vmem>>, vector<32x128xbf16>,
    %334 = vector.extract_strided_slice %2 {offsets = [0, 16], sizes = [32, 128], strides = [1, 1]} : vector<32x256xbf16> to vector<32x128xbf16>
    %c0_i32_128 = arith.constant 0 : i32
    %335 = vector.broadcast %c0_i32_128 : i32 to vector<1x128xi32>
    %336 = arith.addi %18, %335 : vector<1x128xi32>
    %c0_i32_129 = arith.constant 0 : i32
    %337 = vector.broadcast %c0_i32_129 : i32 to vector<1x128xi32>
    %338 = arith.cmpi sge, %336, %337 : vector<1x128xi32>
    %c0_i32_130 = arith.constant 0 : i32
    %339 = vector.broadcast %c0_i32_130 : i32 to vector<1x128xi32>
    %340 = arith.addi %18, %339 : vector<1x128xi32>
    %c4_i32_131 = arith.constant 4 : i32
    %341 = vector.broadcast %c4_i32_131 : i32 to vector<1x128xi32>
    %342 = arith.cmpi slt, %340, %341 : vector<1x128xi32>
    %343 = arith.andi %338, %342 : vector<1x128xi1>
    %c-1_i32_132 = arith.constant -1 : i32
    %344 = vector.broadcast %c-1_i32_132 : i32 to vector<1x128xi32>
    %345 = arith.addi %14, %344 : vector<1x128xi32>
    %c0_i32_133 = arith.constant 0 : i32
    %346 = vector.broadcast %c0_i32_133 : i32 to vector<1x128xi32>
    %347 = arith.cmpi sge, %345, %346 : vector<1x128xi32>
    %348 = arith.andi %343, %347 : vector<1x128xi1>
    %c-1_i32_134 = arith.constant -1 : i32
    %349 = vector.broadcast %c-1_i32_134 : i32 to vector<1x128xi32>
    %350 = arith.addi %14, %349 : vector<1x128xi32>
    %c4_i32_135 = arith.constant 4 : i32
    %351 = vector.broadcast %c4_i32_135 : i32 to vector<1x128xi32>
    %352 = arith.cmpi slt, %350, %351 : vector<1x128xi32>
    %353 = arith.andi %348, %352 : vector<1x128xi1>
    %c-1_i32_136 = arith.constant -1 : i32
    %354 = vector.broadcast %c-1_i32_136 : i32 to vector<1x128xi32>
    %355 = arith.addi %10, %354 : vector<1x128xi32>
    %c0_i32_137 = arith.constant 0 : i32
    %356 = vector.broadcast %c0_i32_137 : i32 to vector<1x128xi32>
    %357 = arith.cmpi sge, %355, %356 : vector<1x128xi32>
    %358 = arith.andi %353, %357 : vector<1x128xi1>
    %c-1_i32_138 = arith.constant -1 : i32
    %359 = vector.broadcast %c-1_i32_138 : i32 to vector<1x128xi32>
    %360 = arith.addi %10, %359 : vector<1x128xi32>
    %c4_i32_139 = arith.constant 4 : i32
    %361 = vector.broadcast %c4_i32_139 : i32 to vector<1x128xi32>
    %362 = arith.cmpi slt, %360, %361 : vector<1x128xi32>
    %363 = arith.andi %358, %362 : vector<1x128xi1>
    %cst_140 = arith.constant 0.000000e+00 : bf16
    %364 = vector.broadcast %cst_140 : bf16 to vector<32x128xbf16>
    %365 = vector.shape_cast %363 : vector<1x128xi1> to vector<1x128xi1>
    %366 = vector.broadcast %365 : vector<1x128xi1> to vector<32x128xi1>
    %367 = arith.select %366, %334, %364 : vector<32x128xi1>, vector<32x128xbf16>
    %c288 = arith.constant 288 : index
    %c0_141 = arith.constant 0 : index
    %368 = vector.load %arg6[%c288, %c0_141] : memref<864x128xbf16, #tpu.memory_space<vmem>>, vector<32x128xbf16>
    tpu.vector_store %arg6[%c288, %c0_141], %367 {strides = array<i32>} : memref<864x128xbf16, #tpu.memory_space<vmem>>, vector<32x128xbf16>,
    %369 = vector.extract_strided_slice %2 {offsets = [0, 17], sizes = [32, 128], strides = [1, 1]} : vector<32x256xbf16> to vector<32x128xbf16>
    %c0_i32_142 = arith.constant 0 : i32
    %370 = vector.broadcast %c0_i32_142 : i32 to vector<1x128xi32>
    %371 = arith.addi %18, %370 : vector<1x128xi32>
    %c0_i32_143 = arith.constant 0 : i32
    %372 = vector.broadcast %c0_i32_143 : i32 to vector<1x128xi32>
    %373 = arith.cmpi sge, %371, %372 : vector<1x128xi32>
    %c0_i32_144 = arith.constant 0 : i32
    %374 = vector.broadcast %c0_i32_144 : i32 to vector<1x128xi32>
    %375 = arith.addi %18, %374 : vector<1x128xi32>
    %c4_i32_145 = arith.constant 4 : i32
    %376 = vector.broadcast %c4_i32_145 : i32 to vector<1x128xi32>
    %377 = arith.cmpi slt, %375, %376 : vector<1x128xi32>
    %378 = arith.andi %373, %377 : vector<1x128xi1>
    %c-1_i32_146 = arith.constant -1 : i32
    %379 = vector.broadcast %c-1_i32_146 : i32 to vector<1x128xi32>
    %380 = arith.addi %14, %379 : vector<1x128xi32>
    %c0_i32_147 = arith.constant 0 : i32
    %381 = vector.broadcast %c0_i32_147 : i32 to vector<1x128xi32>
    %382 = arith.cmpi sge, %380, %381 : vector<1x128xi32>
    %383 = arith.andi %378, %382 : vector<1x128xi1>
    %c-1_i32_148 = arith.constant -1 : i32
    %384 = vector.broadcast %c-1_i32_148 : i32 to vector<1x128xi32>
    %385 = arith.addi %14, %384 : vector<1x128xi32>
    %c4_i32_149 = arith.constant 4 : i32
    %386 = vector.broadcast %c4_i32_149 : i32 to vector<1x128xi32>
    %387 = arith.cmpi slt, %385, %386 : vector<1x128xi32>
    %388 = arith.andi %383, %387 : vector<1x128xi1>
    %c0_i32_150 = arith.constant 0 : i32
    %389 = vector.broadcast %c0_i32_150 : i32 to vector<1x128xi32>
    %390 = arith.addi %10, %389 : vector<1x128xi32>
    %c0_i32_151 = arith.constant 0 : i32
    %391 = vector.broadcast %c0_i32_151 : i32 to vector<1x128xi32>
    %392 = arith.cmpi sge, %390, %391 : vector<1x128xi32>
    %393 = arith.andi %388, %392 : vector<1x128xi1>
    %c0_i32_152 = arith.constant 0 : i32
    %394 = vector.broadcast %c0_i32_152 : i32 to vector<1x128xi32>
    %395 = arith.addi %10, %394 : vector<1x128xi32>
    %c4_i32_153 = arith.constant 4 : i32
    %396 = vector.broadcast %c4_i32_153 : i32 to vector<1x128xi32>
    %397 = arith.cmpi slt, %395, %396 : vector<1x128xi32>
    %398 = arith.andi %393, %397 : vector<1x128xi1>
    %cst_154 = arith.constant 0.000000e+00 : bf16
    %399 = vector.broadcast %cst_154 : bf16 to vector<32x128xbf16>
    %400 = vector.shape_cast %398 : vector<1x128xi1> to vector<1x128xi1>
    %401 = vector.broadcast %400 : vector<1x128xi1> to vector<32x128xi1>
    %402 = arith.select %401, %369, %399 : vector<32x128xi1>, vector<32x128xbf16>
    %c320 = arith.constant 320 : index
    %c0_155 = arith.constant 0 : index
    %403 = vector.load %arg6[%c320, %c0_155] : memref<864x128xbf16, #tpu.memory_space<vmem>>, vector<32x128xbf16>
    tpu.vector_store %arg6[%c320, %c0_155], %402 {strides = array<i32>} : memref<864x128xbf16, #tpu.memory_space<vmem>>, vector<32x128xbf16>,
    %404 = vector.extract_strided_slice %2 {offsets = [0, 18], sizes = [32, 128], strides = [1, 1]} : vector<32x256xbf16> to vector<32x128xbf16>
    %c0_i32_156 = arith.constant 0 : i32
    %405 = vector.broadcast %c0_i32_156 : i32 to vector<1x128xi32>
    %406 = arith.addi %18, %405 : vector<1x128xi32>
    %c0_i32_157 = arith.constant 0 : i32
    %407 = vector.broadcast %c0_i32_157 : i32 to vector<1x128xi32>
    %408 = arith.cmpi sge, %406, %407 : vector<1x128xi32>
    %c0_i32_158 = arith.constant 0 : i32
    %409 = vector.broadcast %c0_i32_158 : i32 to vector<1x128xi32>
    %410 = arith.addi %18, %409 : vector<1x128xi32>
    %c4_i32_159 = arith.constant 4 : i32
    %411 = vector.broadcast %c4_i32_159 : i32 to vector<1x128xi32>
    %412 = arith.cmpi slt, %410, %411 : vector<1x128xi32>
    %413 = arith.andi %408, %412 : vector<1x128xi1>
    %c-1_i32_160 = arith.constant -1 : i32
    %414 = vector.broadcast %c-1_i32_160 : i32 to vector<1x128xi32>
    %415 = arith.addi %14, %414 : vector<1x128xi32>
    %c0_i32_161 = arith.constant 0 : i32
    %416 = vector.broadcast %c0_i32_161 : i32 to vector<1x128xi32>
    %417 = arith.cmpi sge, %415, %416 : vector<1x128xi32>
    %418 = arith.andi %413, %417 : vector<1x128xi1>
    %c-1_i32_162 = arith.constant -1 : i32
    %419 = vector.broadcast %c-1_i32_162 : i32 to vector<1x128xi32>
    %420 = arith.addi %14, %419 : vector<1x128xi32>
    %c4_i32_163 = arith.constant 4 : i32
    %421 = vector.broadcast %c4_i32_163 : i32 to vector<1x128xi32>
    %422 = arith.cmpi slt, %420, %421 : vector<1x128xi32>
    %423 = arith.andi %418, %422 : vector<1x128xi1>
    %c1_i32_164 = arith.constant 1 : i32
    %424 = vector.broadcast %c1_i32_164 : i32 to vector<1x128xi32>
    %425 = arith.addi %10, %424 : vector<1x128xi32>
    %c0_i32_165 = arith.constant 0 : i32
    %426 = vector.broadcast %c0_i32_165 : i32 to vector<1x128xi32>
    %427 = arith.cmpi sge, %425, %426 : vector<1x128xi32>
    %428 = arith.andi %423, %427 : vector<1x128xi1>
    %c1_i32_166 = arith.constant 1 : i32
    %429 = vector.broadcast %c1_i32_166 : i32 to vector<1x128xi32>
    %430 = arith.addi %10, %429 : vector<1x128xi32>
    %c4_i32_167 = arith.constant 4 : i32
    %431 = vector.broadcast %c4_i32_167 : i32 to vector<1x128xi32>
    %432 = arith.cmpi slt, %430, %431 : vector<1x128xi32>
    %433 = arith.andi %428, %432 : vector<1x128xi1>
    %cst_168 = arith.constant 0.000000e+00 : bf16
    %434 = vector.broadcast %cst_168 : bf16 to vector<32x128xbf16>
    %435 = vector.shape_cast %433 : vector<1x128xi1> to vector<1x128xi1>
    %436 = vector.broadcast %435 : vector<1x128xi1> to vector<32x128xi1>
    %437 = arith.select %436, %404, %434 : vector<32x128xi1>, vector<32x128xbf16>
    %c352 = arith.constant 352 : index
    %c0_169 = arith.constant 0 : index
    %438 = vector.load %arg6[%c352, %c0_169] : memref<864x128xbf16, #tpu.memory_space<vmem>>, vector<32x128xbf16>
    tpu.vector_store %arg6[%c352, %c0_169], %437 {strides = array<i32>} : memref<864x128xbf16, #tpu.memory_space<vmem>>, vector<32x128xbf16>,
    %439 = vector.extract_strided_slice %2 {offsets = [0, 20], sizes = [32, 128], strides = [1, 1]} : vector<32x256xbf16> to vector<32x128xbf16>
    %c0_i32_170 = arith.constant 0 : i32
    %440 = vector.broadcast %c0_i32_170 : i32 to vector<1x128xi32>
    %441 = arith.addi %18, %440 : vector<1x128xi32>
    %c0_i32_171 = arith.constant 0 : i32
    %442 = vector.broadcast %c0_i32_171 : i32 to vector<1x128xi32>
    %443 = arith.cmpi sge, %441, %442 : vector<1x128xi32>
    %c0_i32_172 = arith.constant 0 : i32
    %444 = vector.broadcast %c0_i32_172 : i32 to vector<1x128xi32>
    %445 = arith.addi %18, %444 : vector<1x128xi32>
    %c4_i32_173 = arith.constant 4 : i32
    %446 = vector.broadcast %c4_i32_173 : i32 to vector<1x128xi32>
    %447 = arith.cmpi slt, %445, %446 : vector<1x128xi32>
    %448 = arith.andi %443, %447 : vector<1x128xi1>
    %c0_i32_174 = arith.constant 0 : i32
    %449 = vector.broadcast %c0_i32_174 : i32 to vector<1x128xi32>
    %450 = arith.addi %14, %449 : vector<1x128xi32>
    %c0_i32_175 = arith.constant 0 : i32
    %451 = vector.broadcast %c0_i32_175 : i32 to vector<1x128xi32>
    %452 = arith.cmpi sge, %450, %451 : vector<1x128xi32>
    %453 = arith.andi %448, %452 : vector<1x128xi1>
    %c0_i32_176 = arith.constant 0 : i32
    %454 = vector.broadcast %c0_i32_176 : i32 to vector<1x128xi32>
    %455 = arith.addi %14, %454 : vector<1x128xi32>
    %c4_i32_177 = arith.constant 4 : i32
    %456 = vector.broadcast %c4_i32_177 : i32 to vector<1x128xi32>
    %457 = arith.cmpi slt, %455, %456 : vector<1x128xi32>
    %458 = arith.andi %453, %457 : vector<1x128xi1>
    %c-1_i32_178 = arith.constant -1 : i32
    %459 = vector.broadcast %c-1_i32_178 : i32 to vector<1x128xi32>
    %460 = arith.addi %10, %459 : vector<1x128xi32>
    %c0_i32_179 = arith.constant 0 : i32
    %461 = vector.broadcast %c0_i32_179 : i32 to vector<1x128xi32>
    %462 = arith.cmpi sge, %460, %461 : vector<1x128xi32>
    %463 = arith.andi %458, %462 : vector<1x128xi1>
    %c-1_i32_180 = arith.constant -1 : i32
    %464 = vector.broadcast %c-1_i32_180 : i32 to vector<1x128xi32>
    %465 = arith.addi %10, %464 : vector<1x128xi32>
    %c4_i32_181 = arith.constant 4 : i32
    %466 = vector.broadcast %c4_i32_181 : i32 to vector<1x128xi32>
    %467 = arith.cmpi slt, %465, %466 : vector<1x128xi32>
    %468 = arith.andi %463, %467 : vector<1x128xi1>
    %cst_182 = arith.constant 0.000000e+00 : bf16
    %469 = vector.broadcast %cst_182 : bf16 to vector<32x128xbf16>
    %470 = vector.shape_cast %468 : vector<1x128xi1> to vector<1x128xi1>
    %471 = vector.broadcast %470 : vector<1x128xi1> to vector<32x128xi1>
    %472 = arith.select %471, %439, %469 : vector<32x128xi1>, vector<32x128xbf16>
    %c384 = arith.constant 384 : index
    %c0_183 = arith.constant 0 : index
    %473 = vector.load %arg6[%c384, %c0_183] : memref<864x128xbf16, #tpu.memory_space<vmem>>, vector<32x128xbf16>
    tpu.vector_store %arg6[%c384, %c0_183], %472 {strides = array<i32>} : memref<864x128xbf16, #tpu.memory_space<vmem>>, vector<32x128xbf16>,
    %474 = vector.extract_strided_slice %2 {offsets = [0, 21], sizes = [32, 128], strides = [1, 1]} : vector<32x256xbf16> to vector<32x128xbf16>
    %c0_i32_184 = arith.constant 0 : i32
    %475 = vector.broadcast %c0_i32_184 : i32 to vector<1x128xi32>
    %476 = arith.addi %18, %475 : vector<1x128xi32>
    %c0_i32_185 = arith.constant 0 : i32
    %477 = vector.broadcast %c0_i32_185 : i32 to vector<1x128xi32>
    %478 = arith.cmpi sge, %476, %477 : vector<1x128xi32>
    %c0_i32_186 = arith.constant 0 : i32
    %479 = vector.broadcast %c0_i32_186 : i32 to vector<1x128xi32>
    %480 = arith.addi %18, %479 : vector<1x128xi32>
    %c4_i32_187 = arith.constant 4 : i32
    %481 = vector.broadcast %c4_i32_187 : i32 to vector<1x128xi32>
    %482 = arith.cmpi slt, %480, %481 : vector<1x128xi32>
    %483 = arith.andi %478, %482 : vector<1x128xi1>
    %c0_i32_188 = arith.constant 0 : i32
    %484 = vector.broadcast %c0_i32_188 : i32 to vector<1x128xi32>
    %485 = arith.addi %14, %484 : vector<1x128xi32>
    %c0_i32_189 = arith.constant 0 : i32
    %486 = vector.broadcast %c0_i32_189 : i32 to vector<1x128xi32>
    %487 = arith.cmpi sge, %485, %486 : vector<1x128xi32>
    %488 = arith.andi %483, %487 : vector<1x128xi1>
    %c0_i32_190 = arith.constant 0 : i32
    %489 = vector.broadcast %c0_i32_190 : i32 to vector<1x128xi32>
    %490 = arith.addi %14, %489 : vector<1x128xi32>
    %c4_i32_191 = arith.constant 4 : i32
    %491 = vector.broadcast %c4_i32_191 : i32 to vector<1x128xi32>
    %492 = arith.cmpi slt, %490, %491 : vector<1x128xi32>
    %493 = arith.andi %488, %492 : vector<1x128xi1>
    %c0_i32_192 = arith.constant 0 : i32
    %494 = vector.broadcast %c0_i32_192 : i32 to vector<1x128xi32>
    %495 = arith.addi %10, %494 : vector<1x128xi32>
    %c0_i32_193 = arith.constant 0 : i32
    %496 = vector.broadcast %c0_i32_193 : i32 to vector<1x128xi32>
    %497 = arith.cmpi sge, %495, %496 : vector<1x128xi32>
    %498 = arith.andi %493, %497 : vector<1x128xi1>
    %c0_i32_194 = arith.constant 0 : i32
    %499 = vector.broadcast %c0_i32_194 : i32 to vector<1x128xi32>
    %500 = arith.addi %10, %499 : vector<1x128xi32>
    %c4_i32_195 = arith.constant 4 : i32
    %501 = vector.broadcast %c4_i32_195 : i32 to vector<1x128xi32>
    %502 = arith.cmpi slt, %500, %501 : vector<1x128xi32>
    %503 = arith.andi %498, %502 : vector<1x128xi1>
    %cst_196 = arith.constant 0.000000e+00 : bf16
    %504 = vector.broadcast %cst_196 : bf16 to vector<32x128xbf16>
    %505 = vector.shape_cast %503 : vector<1x128xi1> to vector<1x128xi1>
    %506 = vector.broadcast %505 : vector<1x128xi1> to vector<32x128xi1>
    %507 = arith.select %506, %474, %504 : vector<32x128xi1>, vector<32x128xbf16>
    %c416 = arith.constant 416 : index
    %c0_197 = arith.constant 0 : index
    %508 = vector.load %arg6[%c416, %c0_197] : memref<864x128xbf16, #tpu.memory_space<vmem>>, vector<32x128xbf16>
    tpu.vector_store %arg6[%c416, %c0_197], %507 {strides = array<i32>} : memref<864x128xbf16, #tpu.memory_space<vmem>>, vector<32x128xbf16>,
    %509 = vector.extract_strided_slice %2 {offsets = [0, 22], sizes = [32, 128], strides = [1, 1]} : vector<32x256xbf16> to vector<32x128xbf16>
    %c0_i32_198 = arith.constant 0 : i32
    %510 = vector.broadcast %c0_i32_198 : i32 to vector<1x128xi32>
    %511 = arith.addi %18, %510 : vector<1x128xi32>
    %c0_i32_199 = arith.constant 0 : i32
    %512 = vector.broadcast %c0_i32_199 : i32 to vector<1x128xi32>
    %513 = arith.cmpi sge, %511, %512 : vector<1x128xi32>
    %c0_i32_200 = arith.constant 0 : i32
    %514 = vector.broadcast %c0_i32_200 : i32 to vector<1x128xi32>
    %515 = arith.addi %18, %514 : vector<1x128xi32>
    %c4_i32_201 = arith.constant 4 : i32
    %516 = vector.broadcast %c4_i32_201 : i32 to vector<1x128xi32>
    %517 = arith.cmpi slt, %515, %516 : vector<1x128xi32>
    %518 = arith.andi %513, %517 : vector<1x128xi1>
    %c0_i32_202 = arith.constant 0 : i32
    %519 = vector.broadcast %c0_i32_202 : i32 to vector<1x128xi32>
    %520 = arith.addi %14, %519 : vector<1x128xi32>
    %c0_i32_203 = arith.constant 0 : i32
    %521 = vector.broadcast %c0_i32_203 : i32 to vector<1x128xi32>
    %522 = arith.cmpi sge, %520, %521 : vector<1x128xi32>
    %523 = arith.andi %518, %522 : vector<1x128xi1>
    %c0_i32_204 = arith.constant 0 : i32
    %524 = vector.broadcast %c0_i32_204 : i32 to vector<1x128xi32>
    %525 = arith.addi %14, %524 : vector<1x128xi32>
    %c4_i32_205 = arith.constant 4 : i32
    %526 = vector.broadcast %c4_i32_205 : i32 to vector<1x128xi32>
    %527 = arith.cmpi slt, %525, %526 : vector<1x128xi32>
    %528 = arith.andi %523, %527 : vector<1x128xi1>
    %c1_i32_206 = arith.constant 1 : i32
    %529 = vector.broadcast %c1_i32_206 : i32 to vector<1x128xi32>
    %530 = arith.addi %10, %529 : vector<1x128xi32>
    %c0_i32_207 = arith.constant 0 : i32
    %531 = vector.broadcast %c0_i32_207 : i32 to vector<1x128xi32>
    %532 = arith.cmpi sge, %530, %531 : vector<1x128xi32>
    %533 = arith.andi %528, %532 : vector<1x128xi1>
    %c1_i32_208 = arith.constant 1 : i32
    %534 = vector.broadcast %c1_i32_208 : i32 to vector<1x128xi32>
    %535 = arith.addi %10, %534 : vector<1x128xi32>
    %c4_i32_209 = arith.constant 4 : i32
    %536 = vector.broadcast %c4_i32_209 : i32 to vector<1x128xi32>
    %537 = arith.cmpi slt, %535, %536 : vector<1x128xi32>
    %538 = arith.andi %533, %537 : vector<1x128xi1>
    %cst_210 = arith.constant 0.000000e+00 : bf16
    %539 = vector.broadcast %cst_210 : bf16 to vector<32x128xbf16>
    %540 = vector.shape_cast %538 : vector<1x128xi1> to vector<1x128xi1>
    %541 = vector.broadcast %540 : vector<1x128xi1> to vector<32x128xi1>
    %542 = arith.select %541, %509, %539 : vector<32x128xi1>, vector<32x128xbf16>
    %c448 = arith.constant 448 : index
    %c0_211 = arith.constant 0 : index
    %543 = vector.load %arg6[%c448, %c0_211] : memref<864x128xbf16, #tpu.memory_space<vmem>>, vector<32x128xbf16>
    tpu.vector_store %arg6[%c448, %c0_211], %542 {strides = array<i32>} : memref<864x128xbf16, #tpu.memory_space<vmem>>, vector<32x128xbf16>,
    %544 = vector.extract_strided_slice %2 {offsets = [0, 24], sizes = [32, 128], strides = [1, 1]} : vector<32x256xbf16> to vector<32x128xbf16>
    %c0_i32_212 = arith.constant 0 : i32
    %545 = vector.broadcast %c0_i32_212 : i32 to vector<1x128xi32>
    %546 = arith.addi %18, %545 : vector<1x128xi32>
    %c0_i32_213 = arith.constant 0 : i32
    %547 = vector.broadcast %c0_i32_213 : i32 to vector<1x128xi32>
    %548 = arith.cmpi sge, %546, %547 : vector<1x128xi32>
    %c0_i32_214 = arith.constant 0 : i32
    %549 = vector.broadcast %c0_i32_214 : i32 to vector<1x128xi32>
    %550 = arith.addi %18, %549 : vector<1x128xi32>
    %c4_i32_215 = arith.constant 4 : i32
    %551 = vector.broadcast %c4_i32_215 : i32 to vector<1x128xi32>
    %552 = arith.cmpi slt, %550, %551 : vector<1x128xi32>
    %553 = arith.andi %548, %552 : vector<1x128xi1>
    %c1_i32_216 = arith.constant 1 : i32
    %554 = vector.broadcast %c1_i32_216 : i32 to vector<1x128xi32>
    %555 = arith.addi %14, %554 : vector<1x128xi32>
    %c0_i32_217 = arith.constant 0 : i32
    %556 = vector.broadcast %c0_i32_217 : i32 to vector<1x128xi32>
    %557 = arith.cmpi sge, %555, %556 : vector<1x128xi32>
    %558 = arith.andi %553, %557 : vector<1x128xi1>
    %c1_i32_218 = arith.constant 1 : i32
    %559 = vector.broadcast %c1_i32_218 : i32 to vector<1x128xi32>
    %560 = arith.addi %14, %559 : vector<1x128xi32>
    %c4_i32_219 = arith.constant 4 : i32
    %561 = vector.broadcast %c4_i32_219 : i32 to vector<1x128xi32>
    %562 = arith.cmpi slt, %560, %561 : vector<1x128xi32>
    %563 = arith.andi %558, %562 : vector<1x128xi1>
    %c-1_i32_220 = arith.constant -1 : i32
    %564 = vector.broadcast %c-1_i32_220 : i32 to vector<1x128xi32>
    %565 = arith.addi %10, %564 : vector<1x128xi32>
    %c0_i32_221 = arith.constant 0 : i32
    %566 = vector.broadcast %c0_i32_221 : i32 to vector<1x128xi32>
    %567 = arith.cmpi sge, %565, %566 : vector<1x128xi32>
    %568 = arith.andi %563, %567 : vector<1x128xi1>
    %c-1_i32_222 = arith.constant -1 : i32
    %569 = vector.broadcast %c-1_i32_222 : i32 to vector<1x128xi32>
    %570 = arith.addi %10, %569 : vector<1x128xi32>
    %c4_i32_223 = arith.constant 4 : i32
    %571 = vector.broadcast %c4_i32_223 : i32 to vector<1x128xi32>
    %572 = arith.cmpi slt, %570, %571 : vector<1x128xi32>
    %573 = arith.andi %568, %572 : vector<1x128xi1>
    %cst_224 = arith.constant 0.000000e+00 : bf16
    %574 = vector.broadcast %cst_224 : bf16 to vector<32x128xbf16>
    %575 = vector.shape_cast %573 : vector<1x128xi1> to vector<1x128xi1>
    %576 = vector.broadcast %575 : vector<1x128xi1> to vector<32x128xi1>
    %577 = arith.select %576, %544, %574 : vector<32x128xi1>, vector<32x128xbf16>
    %c480 = arith.constant 480 : index
    %c0_225 = arith.constant 0 : index
    %578 = vector.load %arg6[%c480, %c0_225] : memref<864x128xbf16, #tpu.memory_space<vmem>>, vector<32x128xbf16>
    tpu.vector_store %arg6[%c480, %c0_225], %577 {strides = array<i32>} : memref<864x128xbf16, #tpu.memory_space<vmem>>, vector<32x128xbf16>,
    %579 = vector.extract_strided_slice %2 {offsets = [0, 25], sizes = [32, 128], strides = [1, 1]} : vector<32x256xbf16> to vector<32x128xbf16>
    %c0_i32_226 = arith.constant 0 : i32
    %580 = vector.broadcast %c0_i32_226 : i32 to vector<1x128xi32>
    %581 = arith.addi %18, %580 : vector<1x128xi32>
    %c0_i32_227 = arith.constant 0 : i32
    %582 = vector.broadcast %c0_i32_227 : i32 to vector<1x128xi32>
    %583 = arith.cmpi sge, %581, %582 : vector<1x128xi32>
    %c0_i32_228 = arith.constant 0 : i32
    %584 = vector.broadcast %c0_i32_228 : i32 to vector<1x128xi32>
    %585 = arith.addi %18, %584 : vector<1x128xi32>
    %c4_i32_229 = arith.constant 4 : i32
    %586 = vector.broadcast %c4_i32_229 : i32 to vector<1x128xi32>
    %587 = arith.cmpi slt, %585, %586 : vector<1x128xi32>
    %588 = arith.andi %583, %587 : vector<1x128xi1>
    %c1_i32_230 = arith.constant 1 : i32
    %589 = vector.broadcast %c1_i32_230 : i32 to vector<1x128xi32>
    %590 = arith.addi %14, %589 : vector<1x128xi32>
    %c0_i32_231 = arith.constant 0 : i32
    %591 = vector.broadcast %c0_i32_231 : i32 to vector<1x128xi32>
    %592 = arith.cmpi sge, %590, %591 : vector<1x128xi32>
    %593 = arith.andi %588, %592 : vector<1x128xi1>
    %c1_i32_232 = arith.constant 1 : i32
    %594 = vector.broadcast %c1_i32_232 : i32 to vector<1x128xi32>
    %595 = arith.addi %14, %594 : vector<1x128xi32>
    %c4_i32_233 = arith.constant 4 : i32
    %596 = vector.broadcast %c4_i32_233 : i32 to vector<1x128xi32>
    %597 = arith.cmpi slt, %595, %596 : vector<1x128xi32>
    %598 = arith.andi %593, %597 : vector<1x128xi1>
    %c0_i32_234 = arith.constant 0 : i32
    %599 = vector.broadcast %c0_i32_234 : i32 to vector<1x128xi32>
    %600 = arith.addi %10, %599 : vector<1x128xi32>
    %c0_i32_235 = arith.constant 0 : i32
    %601 = vector.broadcast %c0_i32_235 : i32 to vector<1x128xi32>
    %602 = arith.cmpi sge, %600, %601 : vector<1x128xi32>
    %603 = arith.andi %598, %602 : vector<1x128xi1>
    %c0_i32_236 = arith.constant 0 : i32
    %604 = vector.broadcast %c0_i32_236 : i32 to vector<1x128xi32>
    %605 = arith.addi %10, %604 : vector<1x128xi32>
    %c4_i32_237 = arith.constant 4 : i32
    %606 = vector.broadcast %c4_i32_237 : i32 to vector<1x128xi32>
    %607 = arith.cmpi slt, %605, %606 : vector<1x128xi32>
    %608 = arith.andi %603, %607 : vector<1x128xi1>
    %cst_238 = arith.constant 0.000000e+00 : bf16
    %609 = vector.broadcast %cst_238 : bf16 to vector<32x128xbf16>
    %610 = vector.shape_cast %608 : vector<1x128xi1> to vector<1x128xi1>
    %611 = vector.broadcast %610 : vector<1x128xi1> to vector<32x128xi1>
    %612 = arith.select %611, %579, %609 : vector<32x128xi1>, vector<32x128xbf16>
    %c512 = arith.constant 512 : index
    %c0_239 = arith.constant 0 : index
    %613 = vector.load %arg6[%c512, %c0_239] : memref<864x128xbf16, #tpu.memory_space<vmem>>, vector<32x128xbf16>
    tpu.vector_store %arg6[%c512, %c0_239], %612 {strides = array<i32>} : memref<864x128xbf16, #tpu.memory_space<vmem>>, vector<32x128xbf16>,
    %614 = vector.extract_strided_slice %2 {offsets = [0, 26], sizes = [32, 128], strides = [1, 1]} : vector<32x256xbf16> to vector<32x128xbf16>
    %c0_i32_240 = arith.constant 0 : i32
    %615 = vector.broadcast %c0_i32_240 : i32 to vector<1x128xi32>
    %616 = arith.addi %18, %615 : vector<1x128xi32>
    %c0_i32_241 = arith.constant 0 : i32
    %617 = vector.broadcast %c0_i32_241 : i32 to vector<1x128xi32>
    %618 = arith.cmpi sge, %616, %617 : vector<1x128xi32>
    %c0_i32_242 = arith.constant 0 : i32
    %619 = vector.broadcast %c0_i32_242 : i32 to vector<1x128xi32>
    %620 = arith.addi %18, %619 : vector<1x128xi32>
    %c4_i32_243 = arith.constant 4 : i32
    %621 = vector.broadcast %c4_i32_243 : i32 to vector<1x128xi32>
    %622 = arith.cmpi slt, %620, %621 : vector<1x128xi32>
    %623 = arith.andi %618, %622 : vector<1x128xi1>
    %c1_i32_244 = arith.constant 1 : i32
    %624 = vector.broadcast %c1_i32_244 : i32 to vector<1x128xi32>
    %625 = arith.addi %14, %624 : vector<1x128xi32>
    %c0_i32_245 = arith.constant 0 : i32
    %626 = vector.broadcast %c0_i32_245 : i32 to vector<1x128xi32>
    %627 = arith.cmpi sge, %625, %626 : vector<1x128xi32>
    %628 = arith.andi %623, %627 : vector<1x128xi1>
    %c1_i32_246 = arith.constant 1 : i32
    %629 = vector.broadcast %c1_i32_246 : i32 to vector<1x128xi32>
    %630 = arith.addi %14, %629 : vector<1x128xi32>
    %c4_i32_247 = arith.constant 4 : i32
    %631 = vector.broadcast %c4_i32_247 : i32 to vector<1x128xi32>
    %632 = arith.cmpi slt, %630, %631 : vector<1x128xi32>
    %633 = arith.andi %628, %632 : vector<1x128xi1>
    %c1_i32_248 = arith.constant 1 : i32
    %634 = vector.broadcast %c1_i32_248 : i32 to vector<1x128xi32>
    %635 = arith.addi %10, %634 : vector<1x128xi32>
    %c0_i32_249 = arith.constant 0 : i32
    %636 = vector.broadcast %c0_i32_249 : i32 to vector<1x128xi32>
    %637 = arith.cmpi sge, %635, %636 : vector<1x128xi32>
    %638 = arith.andi %633, %637 : vector<1x128xi1>
    %c1_i32_250 = arith.constant 1 : i32
    %639 = vector.broadcast %c1_i32_250 : i32 to vector<1x128xi32>
    %640 = arith.addi %10, %639 : vector<1x128xi32>
    %c4_i32_251 = arith.constant 4 : i32
    %641 = vector.broadcast %c4_i32_251 : i32 to vector<1x128xi32>
    %642 = arith.cmpi slt, %640, %641 : vector<1x128xi32>
    %643 = arith.andi %638, %642 : vector<1x128xi1>
    %cst_252 = arith.constant 0.000000e+00 : bf16
    %644 = vector.broadcast %cst_252 : bf16 to vector<32x128xbf16>
    %645 = vector.shape_cast %643 : vector<1x128xi1> to vector<1x128xi1>
    %646 = vector.broadcast %645 : vector<1x128xi1> to vector<32x128xi1>
    %647 = arith.select %646, %614, %644 : vector<32x128xi1>, vector<32x128xbf16>
    %c544 = arith.constant 544 : index
    %c0_253 = arith.constant 0 : index
    %648 = vector.load %arg6[%c544, %c0_253] : memref<864x128xbf16, #tpu.memory_space<vmem>>, vector<32x128xbf16>
    tpu.vector_store %arg6[%c544, %c0_253], %647 {strides = array<i32>} : memref<864x128xbf16, #tpu.memory_space<vmem>>, vector<32x128xbf16>,
    %649 = vector.extract_strided_slice %2 {offsets = [0, 32], sizes = [32, 128], strides = [1, 1]} : vector<32x256xbf16> to vector<32x128xbf16>
    %c1_i32_254 = arith.constant 1 : i32
    %650 = vector.broadcast %c1_i32_254 : i32 to vector<1x128xi32>
    %651 = arith.addi %18, %650 : vector<1x128xi32>
    %c0_i32_255 = arith.constant 0 : i32
    %652 = vector.broadcast %c0_i32_255 : i32 to vector<1x128xi32>
    %653 = arith.cmpi sge, %651, %652 : vector<1x128xi32>
    %c1_i32_256 = arith.constant 1 : i32
    %654 = vector.broadcast %c1_i32_256 : i32 to vector<1x128xi32>
    %655 = arith.addi %18, %654 : vector<1x128xi32>
    %c4_i32_257 = arith.constant 4 : i32
    %656 = vector.broadcast %c4_i32_257 : i32 to vector<1x128xi32>
    %657 = arith.cmpi slt, %655, %656 : vector<1x128xi32>
    %658 = arith.andi %653, %657 : vector<1x128xi1>
    %c-1_i32_258 = arith.constant -1 : i32
    %659 = vector.broadcast %c-1_i32_258 : i32 to vector<1x128xi32>
    %660 = arith.addi %14, %659 : vector<1x128xi32>
    %c0_i32_259 = arith.constant 0 : i32
    %661 = vector.broadcast %c0_i32_259 : i32 to vector<1x128xi32>
    %662 = arith.cmpi sge, %660, %661 : vector<1x128xi32>
    %663 = arith.andi %658, %662 : vector<1x128xi1>
    %c-1_i32_260 = arith.constant -1 : i32
    %664 = vector.broadcast %c-1_i32_260 : i32 to vector<1x128xi32>
    %665 = arith.addi %14, %664 : vector<1x128xi32>
    %c4_i32_261 = arith.constant 4 : i32
    %666 = vector.broadcast %c4_i32_261 : i32 to vector<1x128xi32>
    %667 = arith.cmpi slt, %665, %666 : vector<1x128xi32>
    %668 = arith.andi %663, %667 : vector<1x128xi1>
    %c-1_i32_262 = arith.constant -1 : i32
    %669 = vector.broadcast %c-1_i32_262 : i32 to vector<1x128xi32>
    %670 = arith.addi %10, %669 : vector<1x128xi32>
    %c0_i32_263 = arith.constant 0 : i32
    %671 = vector.broadcast %c0_i32_263 : i32 to vector<1x128xi32>
    %672 = arith.cmpi sge, %670, %671 : vector<1x128xi32>
    %673 = arith.andi %668, %672 : vector<1x128xi1>
    %c-1_i32_264 = arith.constant -1 : i32
    %674 = vector.broadcast %c-1_i32_264 : i32 to vector<1x128xi32>
    %675 = arith.addi %10, %674 : vector<1x128xi32>
    %c4_i32_265 = arith.constant 4 : i32
    %676 = vector.broadcast %c4_i32_265 : i32 to vector<1x128xi32>
    %677 = arith.cmpi slt, %675, %676 : vector<1x128xi32>
    %678 = arith.andi %673, %677 : vector<1x128xi1>
    %cst_266 = arith.constant 0.000000e+00 : bf16
    %679 = vector.broadcast %cst_266 : bf16 to vector<32x128xbf16>
    %680 = vector.shape_cast %678 : vector<1x128xi1> to vector<1x128xi1>
    %681 = vector.broadcast %680 : vector<1x128xi1> to vector<32x128xi1>
    %682 = arith.select %681, %649, %679 : vector<32x128xi1>, vector<32x128xbf16>
    %c576 = arith.constant 576 : index
    %c0_267 = arith.constant 0 : index
    %683 = vector.load %arg6[%c576, %c0_267] : memref<864x128xbf16, #tpu.memory_space<vmem>>, vector<32x128xbf16>
    tpu.vector_store %arg6[%c576, %c0_267], %682 {strides = array<i32>} : memref<864x128xbf16, #tpu.memory_space<vmem>>, vector<32x128xbf16>,
    %684 = vector.extract_strided_slice %2 {offsets = [0, 33], sizes = [32, 128], strides = [1, 1]} : vector<32x256xbf16> to vector<32x128xbf16>
    %c1_i32_268 = arith.constant 1 : i32
    %685 = vector.broadcast %c1_i32_268 : i32 to vector<1x128xi32>
    %686 = arith.addi %18, %685 : vector<1x128xi32>
    %c0_i32_269 = arith.constant 0 : i32
    %687 = vector.broadcast %c0_i32_269 : i32 to vector<1x128xi32>
    %688 = arith.cmpi sge, %686, %687 : vector<1x128xi32>
    %c1_i32_270 = arith.constant 1 : i32
    %689 = vector.broadcast %c1_i32_270 : i32 to vector<1x128xi32>
    %690 = arith.addi %18, %689 : vector<1x128xi32>
    %c4_i32_271 = arith.constant 4 : i32
    %691 = vector.broadcast %c4_i32_271 : i32 to vector<1x128xi32>
    %692 = arith.cmpi slt, %690, %691 : vector<1x128xi32>
    %693 = arith.andi %688, %692 : vector<1x128xi1>
    %c-1_i32_272 = arith.constant -1 : i32
    %694 = vector.broadcast %c-1_i32_272 : i32 to vector<1x128xi32>
    %695 = arith.addi %14, %694 : vector<1x128xi32>
    %c0_i32_273 = arith.constant 0 : i32
    %696 = vector.broadcast %c0_i32_273 : i32 to vector<1x128xi32>
    %697 = arith.cmpi sge, %695, %696 : vector<1x128xi32>
    %698 = arith.andi %693, %697 : vector<1x128xi1>
    %c-1_i32_274 = arith.constant -1 : i32
    %699 = vector.broadcast %c-1_i32_274 : i32 to vector<1x128xi32>
    %700 = arith.addi %14, %699 : vector<1x128xi32>
    %c4_i32_275 = arith.constant 4 : i32
    %701 = vector.broadcast %c4_i32_275 : i32 to vector<1x128xi32>
    %702 = arith.cmpi slt, %700, %701 : vector<1x128xi32>
    %703 = arith.andi %698, %702 : vector<1x128xi1>
    %c0_i32_276 = arith.constant 0 : i32
    %704 = vector.broadcast %c0_i32_276 : i32 to vector<1x128xi32>
    %705 = arith.addi %10, %704 : vector<1x128xi32>
    %c0_i32_277 = arith.constant 0 : i32
    %706 = vector.broadcast %c0_i32_277 : i32 to vector<1x128xi32>
    %707 = arith.cmpi sge, %705, %706 : vector<1x128xi32>
    %708 = arith.andi %703, %707 : vector<1x128xi1>
    %c0_i32_278 = arith.constant 0 : i32
    %709 = vector.broadcast %c0_i32_278 : i32 to vector<1x128xi32>
    %710 = arith.addi %10, %709 : vector<1x128xi32>
    %c4_i32_279 = arith.constant 4 : i32
    %711 = vector.broadcast %c4_i32_279 : i32 to vector<1x128xi32>
    %712 = arith.cmpi slt, %710, %711 : vector<1x128xi32>
    %713 = arith.andi %708, %712 : vector<1x128xi1>
    %cst_280 = arith.constant 0.000000e+00 : bf16
    %714 = vector.broadcast %cst_280 : bf16 to vector<32x128xbf16>
    %715 = vector.shape_cast %713 : vector<1x128xi1> to vector<1x128xi1>
    %716 = vector.broadcast %715 : vector<1x128xi1> to vector<32x128xi1>
    %717 = arith.select %716, %684, %714 : vector<32x128xi1>, vector<32x128xbf16>
    %c608 = arith.constant 608 : index
    %c0_281 = arith.constant 0 : index
    %718 = vector.load %arg6[%c608, %c0_281] : memref<864x128xbf16, #tpu.memory_space<vmem>>, vector<32x128xbf16>
    tpu.vector_store %arg6[%c608, %c0_281], %717 {strides = array<i32>} : memref<864x128xbf16, #tpu.memory_space<vmem>>, vector<32x128xbf16>,
    %719 = vector.extract_strided_slice %2 {offsets = [0, 34], sizes = [32, 128], strides = [1, 1]} : vector<32x256xbf16> to vector<32x128xbf16>
    %c1_i32_282 = arith.constant 1 : i32
    %720 = vector.broadcast %c1_i32_282 : i32 to vector<1x128xi32>
    %721 = arith.addi %18, %720 : vector<1x128xi32>
    %c0_i32_283 = arith.constant 0 : i32
    %722 = vector.broadcast %c0_i32_283 : i32 to vector<1x128xi32>
    %723 = arith.cmpi sge, %721, %722 : vector<1x128xi32>
    %c1_i32_284 = arith.constant 1 : i32
    %724 = vector.broadcast %c1_i32_284 : i32 to vector<1x128xi32>
    %725 = arith.addi %18, %724 : vector<1x128xi32>
    %c4_i32_285 = arith.constant 4 : i32
    %726 = vector.broadcast %c4_i32_285 : i32 to vector<1x128xi32>
    %727 = arith.cmpi slt, %725, %726 : vector<1x128xi32>
    %728 = arith.andi %723, %727 : vector<1x128xi1>
    %c-1_i32_286 = arith.constant -1 : i32
    %729 = vector.broadcast %c-1_i32_286 : i32 to vector<1x128xi32>
    %730 = arith.addi %14, %729 : vector<1x128xi32>
    %c0_i32_287 = arith.constant 0 : i32
    %731 = vector.broadcast %c0_i32_287 : i32 to vector<1x128xi32>
    %732 = arith.cmpi sge, %730, %731 : vector<1x128xi32>
    %733 = arith.andi %728, %732 : vector<1x128xi1>
    %c-1_i32_288 = arith.constant -1 : i32
    %734 = vector.broadcast %c-1_i32_288 : i32 to vector<1x128xi32>
    %735 = arith.addi %14, %734 : vector<1x128xi32>
    %c4_i32_289 = arith.constant 4 : i32
    %736 = vector.broadcast %c4_i32_289 : i32 to vector<1x128xi32>
    %737 = arith.cmpi slt, %735, %736 : vector<1x128xi32>
    %738 = arith.andi %733, %737 : vector<1x128xi1>
    %c1_i32_290 = arith.constant 1 : i32
    %739 = vector.broadcast %c1_i32_290 : i32 to vector<1x128xi32>
    %740 = arith.addi %10, %739 : vector<1x128xi32>
    %c0_i32_291 = arith.constant 0 : i32
    %741 = vector.broadcast %c0_i32_291 : i32 to vector<1x128xi32>
    %742 = arith.cmpi sge, %740, %741 : vector<1x128xi32>
    %743 = arith.andi %738, %742 : vector<1x128xi1>
    %c1_i32_292 = arith.constant 1 : i32
    %744 = vector.broadcast %c1_i32_292 : i32 to vector<1x128xi32>
    %745 = arith.addi %10, %744 : vector<1x128xi32>
    %c4_i32_293 = arith.constant 4 : i32
    %746 = vector.broadcast %c4_i32_293 : i32 to vector<1x128xi32>
    %747 = arith.cmpi slt, %745, %746 : vector<1x128xi32>
    %748 = arith.andi %743, %747 : vector<1x128xi1>
    %cst_294 = arith.constant 0.000000e+00 : bf16
    %749 = vector.broadcast %cst_294 : bf16 to vector<32x128xbf16>
    %750 = vector.shape_cast %748 : vector<1x128xi1> to vector<1x128xi1>
    %751 = vector.broadcast %750 : vector<1x128xi1> to vector<32x128xi1>
    %752 = arith.select %751, %719, %749 : vector<32x128xi1>, vector<32x128xbf16>
    %c640 = arith.constant 640 : index
    %c0_295 = arith.constant 0 : index
    %753 = vector.load %arg6[%c640, %c0_295] : memref<864x128xbf16, #tpu.memory_space<vmem>>, vector<32x128xbf16>
    tpu.vector_store %arg6[%c640, %c0_295], %752 {strides = array<i32>} : memref<864x128xbf16, #tpu.memory_space<vmem>>, vector<32x128xbf16>,
    %754 = vector.extract_strided_slice %2 {offsets = [0, 36], sizes = [32, 128], strides = [1, 1]} : vector<32x256xbf16> to vector<32x128xbf16>
    %c1_i32_296 = arith.constant 1 : i32
    %755 = vector.broadcast %c1_i32_296 : i32 to vector<1x128xi32>
    %756 = arith.addi %18, %755 : vector<1x128xi32>
    %c0_i32_297 = arith.constant 0 : i32
    %757 = vector.broadcast %c0_i32_297 : i32 to vector<1x128xi32>
    %758 = arith.cmpi sge, %756, %757 : vector<1x128xi32>
    %c1_i32_298 = arith.constant 1 : i32
    %759 = vector.broadcast %c1_i32_298 : i32 to vector<1x128xi32>
    %760 = arith.addi %18, %759 : vector<1x128xi32>
    %c4_i32_299 = arith.constant 4 : i32
    %761 = vector.broadcast %c4_i32_299 : i32 to vector<1x128xi32>
    %762 = arith.cmpi slt, %760, %761 : vector<1x128xi32>
    %763 = arith.andi %758, %762 : vector<1x128xi1>
    %c0_i32_300 = arith.constant 0 : i32
    %764 = vector.broadcast %c0_i32_300 : i32 to vector<1x128xi32>
    %765 = arith.addi %14, %764 : vector<1x128xi32>
    %c0_i32_301 = arith.constant 0 : i32
    %766 = vector.broadcast %c0_i32_301 : i32 to vector<1x128xi32>
    %767 = arith.cmpi sge, %765, %766 : vector<1x128xi32>
    %768 = arith.andi %763, %767 : vector<1x128xi1>
    %c0_i32_302 = arith.constant 0 : i32
    %769 = vector.broadcast %c0_i32_302 : i32 to vector<1x128xi32>
    %770 = arith.addi %14, %769 : vector<1x128xi32>
    %c4_i32_303 = arith.constant 4 : i32
    %771 = vector.broadcast %c4_i32_303 : i32 to vector<1x128xi32>
    %772 = arith.cmpi slt, %770, %771 : vector<1x128xi32>
    %773 = arith.andi %768, %772 : vector<1x128xi1>
    %c-1_i32_304 = arith.constant -1 : i32
    %774 = vector.broadcast %c-1_i32_304 : i32 to vector<1x128xi32>
    %775 = arith.addi %10, %774 : vector<1x128xi32>
    %c0_i32_305 = arith.constant 0 : i32
    %776 = vector.broadcast %c0_i32_305 : i32 to vector<1x128xi32>
    %777 = arith.cmpi sge, %775, %776 : vector<1x128xi32>
    %778 = arith.andi %773, %777 : vector<1x128xi1>
    %c-1_i32_306 = arith.constant -1 : i32
    %779 = vector.broadcast %c-1_i32_306 : i32 to vector<1x128xi32>
    %780 = arith.addi %10, %779 : vector<1x128xi32>
    %c4_i32_307 = arith.constant 4 : i32
    %781 = vector.broadcast %c4_i32_307 : i32 to vector<1x128xi32>
    %782 = arith.cmpi slt, %780, %781 : vector<1x128xi32>
    %783 = arith.andi %778, %782 : vector<1x128xi1>
    %cst_308 = arith.constant 0.000000e+00 : bf16
    %784 = vector.broadcast %cst_308 : bf16 to vector<32x128xbf16>
    %785 = vector.shape_cast %783 : vector<1x128xi1> to vector<1x128xi1>
    %786 = vector.broadcast %785 : vector<1x128xi1> to vector<32x128xi1>
    %787 = arith.select %786, %754, %784 : vector<32x128xi1>, vector<32x128xbf16>
    %c672 = arith.constant 672 : index
    %c0_309 = arith.constant 0 : index
    %788 = vector.load %arg6[%c672, %c0_309] : memref<864x128xbf16, #tpu.memory_space<vmem>>, vector<32x128xbf16>
    tpu.vector_store %arg6[%c672, %c0_309], %787 {strides = array<i32>} : memref<864x128xbf16, #tpu.memory_space<vmem>>, vector<32x128xbf16>,
    %789 = vector.extract_strided_slice %2 {offsets = [0, 37], sizes = [32, 128], strides = [1, 1]} : vector<32x256xbf16> to vector<32x128xbf16>
    %c1_i32_310 = arith.constant 1 : i32
    %790 = vector.broadcast %c1_i32_310 : i32 to vector<1x128xi32>
    %791 = arith.addi %18, %790 : vector<1x128xi32>
    %c0_i32_311 = arith.constant 0 : i32
    %792 = vector.broadcast %c0_i32_311 : i32 to vector<1x128xi32>
    %793 = arith.cmpi sge, %791, %792 : vector<1x128xi32>
    %c1_i32_312 = arith.constant 1 : i32
    %794 = vector.broadcast %c1_i32_312 : i32 to vector<1x128xi32>
    %795 = arith.addi %18, %794 : vector<1x128xi32>
    %c4_i32_313 = arith.constant 4 : i32
    %796 = vector.broadcast %c4_i32_313 : i32 to vector<1x128xi32>
    %797 = arith.cmpi slt, %795, %796 : vector<1x128xi32>
    %798 = arith.andi %793, %797 : vector<1x128xi1>
    %c0_i32_314 = arith.constant 0 : i32
    %799 = vector.broadcast %c0_i32_314 : i32 to vector<1x128xi32>
    %800 = arith.addi %14, %799 : vector<1x128xi32>
    %c0_i32_315 = arith.constant 0 : i32
    %801 = vector.broadcast %c0_i32_315 : i32 to vector<1x128xi32>
    %802 = arith.cmpi sge, %800, %801 : vector<1x128xi32>
    %803 = arith.andi %798, %802 : vector<1x128xi1>
    %c0_i32_316 = arith.constant 0 : i32
    %804 = vector.broadcast %c0_i32_316 : i32 to vector<1x128xi32>
    %805 = arith.addi %14, %804 : vector<1x128xi32>
    %c4_i32_317 = arith.constant 4 : i32
    %806 = vector.broadcast %c4_i32_317 : i32 to vector<1x128xi32>
    %807 = arith.cmpi slt, %805, %806 : vector<1x128xi32>
    %808 = arith.andi %803, %807 : vector<1x128xi1>
    %c0_i32_318 = arith.constant 0 : i32
    %809 = vector.broadcast %c0_i32_318 : i32 to vector<1x128xi32>
    %810 = arith.addi %10, %809 : vector<1x128xi32>
    %c0_i32_319 = arith.constant 0 : i32
    %811 = vector.broadcast %c0_i32_319 : i32 to vector<1x128xi32>
    %812 = arith.cmpi sge, %810, %811 : vector<1x128xi32>
    %813 = arith.andi %808, %812 : vector<1x128xi1>
    %c0_i32_320 = arith.constant 0 : i32
    %814 = vector.broadcast %c0_i32_320 : i32 to vector<1x128xi32>
    %815 = arith.addi %10, %814 : vector<1x128xi32>
    %c4_i32_321 = arith.constant 4 : i32
    %816 = vector.broadcast %c4_i32_321 : i32 to vector<1x128xi32>
    %817 = arith.cmpi slt, %815, %816 : vector<1x128xi32>
    %818 = arith.andi %813, %817 : vector<1x128xi1>
    %cst_322 = arith.constant 0.000000e+00 : bf16
    %819 = vector.broadcast %cst_322 : bf16 to vector<32x128xbf16>
    %820 = vector.shape_cast %818 : vector<1x128xi1> to vector<1x128xi1>
    %821 = vector.broadcast %820 : vector<1x128xi1> to vector<32x128xi1>
    %822 = arith.select %821, %789, %819 : vector<32x128xi1>, vector<32x128xbf16>
    %c704 = arith.constant 704 : index
    %c0_323 = arith.constant 0 : index
    %823 = vector.load %arg6[%c704, %c0_323] : memref<864x128xbf16, #tpu.memory_space<vmem>>, vector<32x128xbf16>
    tpu.vector_store %arg6[%c704, %c0_323], %822 {strides = array<i32>} : memref<864x128xbf16, #tpu.memory_space<vmem>>, vector<32x128xbf16>,
    %824 = vector.extract_strided_slice %2 {offsets = [0, 38], sizes = [32, 128], strides = [1, 1]} : vector<32x256xbf16> to vector<32x128xbf16>
    %c1_i32_324 = arith.constant 1 : i32
    %825 = vector.broadcast %c1_i32_324 : i32 to vector<1x128xi32>
    %826 = arith.addi %18, %825 : vector<1x128xi32>
    %c0_i32_325 = arith.constant 0 : i32
    %827 = vector.broadcast %c0_i32_325 : i32 to vector<1x128xi32>
    %828 = arith.cmpi sge, %826, %827 : vector<1x128xi32>
    %c1_i32_326 = arith.constant 1 : i32
    %829 = vector.broadcast %c1_i32_326 : i32 to vector<1x128xi32>
    %830 = arith.addi %18, %829 : vector<1x128xi32>
    %c4_i32_327 = arith.constant 4 : i32
    %831 = vector.broadcast %c4_i32_327 : i32 to vector<1x128xi32>
    %832 = arith.cmpi slt, %830, %831 : vector<1x128xi32>
    %833 = arith.andi %828, %832 : vector<1x128xi1>
    %c0_i32_328 = arith.constant 0 : i32
    %834 = vector.broadcast %c0_i32_328 : i32 to vector<1x128xi32>
    %835 = arith.addi %14, %834 : vector<1x128xi32>
    %c0_i32_329 = arith.constant 0 : i32
    %836 = vector.broadcast %c0_i32_329 : i32 to vector<1x128xi32>
    %837 = arith.cmpi sge, %835, %836 : vector<1x128xi32>
    %838 = arith.andi %833, %837 : vector<1x128xi1>
    %c0_i32_330 = arith.constant 0 : i32
    %839 = vector.broadcast %c0_i32_330 : i32 to vector<1x128xi32>
    %840 = arith.addi %14, %839 : vector<1x128xi32>
    %c4_i32_331 = arith.constant 4 : i32
    %841 = vector.broadcast %c4_i32_331 : i32 to vector<1x128xi32>
    %842 = arith.cmpi slt, %840, %841 : vector<1x128xi32>
    %843 = arith.andi %838, %842 : vector<1x128xi1>
    %c1_i32_332 = arith.constant 1 : i32
    %844 = vector.broadcast %c1_i32_332 : i32 to vector<1x128xi32>
    %845 = arith.addi %10, %844 : vector<1x128xi32>
    %c0_i32_333 = arith.constant 0 : i32
    %846 = vector.broadcast %c0_i32_333 : i32 to vector<1x128xi32>
    %847 = arith.cmpi sge, %845, %846 : vector<1x128xi32>
    %848 = arith.andi %843, %847 : vector<1x128xi1>
    %c1_i32_334 = arith.constant 1 : i32
    %849 = vector.broadcast %c1_i32_334 : i32 to vector<1x128xi32>
    %850 = arith.addi %10, %849 : vector<1x128xi32>
    %c4_i32_335 = arith.constant 4 : i32
    %851 = vector.broadcast %c4_i32_335 : i32 to vector<1x128xi32>
    %852 = arith.cmpi slt, %850, %851 : vector<1x128xi32>
    %853 = arith.andi %848, %852 : vector<1x128xi1>
    %cst_336 = arith.constant 0.000000e+00 : bf16
    %854 = vector.broadcast %cst_336 : bf16 to vector<32x128xbf16>
    %855 = vector.shape_cast %853 : vector<1x128xi1> to vector<1x128xi1>
    %856 = vector.broadcast %855 : vector<1x128xi1> to vector<32x128xi1>
    %857 = arith.select %856, %824, %854 : vector<32x128xi1>, vector<32x128xbf16>
    %c736 = arith.constant 736 : index
    %c0_337 = arith.constant 0 : index
    %858 = vector.load %arg6[%c736, %c0_337] : memref<864x128xbf16, #tpu.memory_space<vmem>>, vector<32x128xbf16>
    tpu.vector_store %arg6[%c736, %c0_337], %857 {strides = array<i32>} : memref<864x128xbf16, #tpu.memory_space<vmem>>, vector<32x128xbf16>,
    %859 = vector.extract_strided_slice %2 {offsets = [0, 40], sizes = [32, 128], strides = [1, 1]} : vector<32x256xbf16> to vector<32x128xbf16>
    %c1_i32_338 = arith.constant 1 : i32
    %860 = vector.broadcast %c1_i32_338 : i32 to vector<1x128xi32>
    %861 = arith.addi %18, %860 : vector<1x128xi32>
    %c0_i32_339 = arith.constant 0 : i32
    %862 = vector.broadcast %c0_i32_339 : i32 to vector<1x128xi32>
    %863 = arith.cmpi sge, %861, %862 : vector<1x128xi32>
    %c1_i32_340 = arith.constant 1 : i32
    %864 = vector.broadcast %c1_i32_340 : i32 to vector<1x128xi32>
    %865 = arith.addi %18, %864 : vector<1x128xi32>
    %c4_i32_341 = arith.constant 4 : i32
    %866 = vector.broadcast %c4_i32_341 : i32 to vector<1x128xi32>
    %867 = arith.cmpi slt, %865, %866 : vector<1x128xi32>
    %868 = arith.andi %863, %867 : vector<1x128xi1>
    %c1_i32_342 = arith.constant 1 : i32
    %869 = vector.broadcast %c1_i32_342 : i32 to vector<1x128xi32>
    %870 = arith.addi %14, %869 : vector<1x128xi32>
    %c0_i32_343 = arith.constant 0 : i32
    %871 = vector.broadcast %c0_i32_343 : i32 to vector<1x128xi32>
    %872 = arith.cmpi sge, %870, %871 : vector<1x128xi32>
    %873 = arith.andi %868, %872 : vector<1x128xi1>
    %c1_i32_344 = arith.constant 1 : i32
    %874 = vector.broadcast %c1_i32_344 : i32 to vector<1x128xi32>
    %875 = arith.addi %14, %874 : vector<1x128xi32>
    %c4_i32_345 = arith.constant 4 : i32
    %876 = vector.broadcast %c4_i32_345 : i32 to vector<1x128xi32>
    %877 = arith.cmpi slt, %875, %876 : vector<1x128xi32>
    %878 = arith.andi %873, %877 : vector<1x128xi1>
    %c-1_i32_346 = arith.constant -1 : i32
    %879 = vector.broadcast %c-1_i32_346 : i32 to vector<1x128xi32>
    %880 = arith.addi %10, %879 : vector<1x128xi32>
    %c0_i32_347 = arith.constant 0 : i32
    %881 = vector.broadcast %c0_i32_347 : i32 to vector<1x128xi32>
    %882 = arith.cmpi sge, %880, %881 : vector<1x128xi32>
    %883 = arith.andi %878, %882 : vector<1x128xi1>
    %c-1_i32_348 = arith.constant -1 : i32
    %884 = vector.broadcast %c-1_i32_348 : i32 to vector<1x128xi32>
    %885 = arith.addi %10, %884 : vector<1x128xi32>
    %c4_i32_349 = arith.constant 4 : i32
    %886 = vector.broadcast %c4_i32_349 : i32 to vector<1x128xi32>
    %887 = arith.cmpi slt, %885, %886 : vector<1x128xi32>
    %888 = arith.andi %883, %887 : vector<1x128xi1>
    %cst_350 = arith.constant 0.000000e+00 : bf16
    %889 = vector.broadcast %cst_350 : bf16 to vector<32x128xbf16>
    %890 = vector.shape_cast %888 : vector<1x128xi1> to vector<1x128xi1>
    %891 = vector.broadcast %890 : vector<1x128xi1> to vector<32x128xi1>
    %892 = arith.select %891, %859, %889 : vector<32x128xi1>, vector<32x128xbf16>
    %c768 = arith.constant 768 : index
    %c0_351 = arith.constant 0 : index
    %893 = vector.load %arg6[%c768, %c0_351] : memref<864x128xbf16, #tpu.memory_space<vmem>>, vector<32x128xbf16>
    tpu.vector_store %arg6[%c768, %c0_351], %892 {strides = array<i32>} : memref<864x128xbf16, #tpu.memory_space<vmem>>, vector<32x128xbf16>,
    %894 = vector.extract_strided_slice %2 {offsets = [0, 41], sizes = [32, 128], strides = [1, 1]} : vector<32x256xbf16> to vector<32x128xbf16>
    %c1_i32_352 = arith.constant 1 : i32
    %895 = vector.broadcast %c1_i32_352 : i32 to vector<1x128xi32>
    %896 = arith.addi %18, %895 : vector<1x128xi32>
    %c0_i32_353 = arith.constant 0 : i32
    %897 = vector.broadcast %c0_i32_353 : i32 to vector<1x128xi32>
    %898 = arith.cmpi sge, %896, %897 : vector<1x128xi32>
    %c1_i32_354 = arith.constant 1 : i32
    %899 = vector.broadcast %c1_i32_354 : i32 to vector<1x128xi32>
    %900 = arith.addi %18, %899 : vector<1x128xi32>
    %c4_i32_355 = arith.constant 4 : i32
    %901 = vector.broadcast %c4_i32_355 : i32 to vector<1x128xi32>
    %902 = arith.cmpi slt, %900, %901 : vector<1x128xi32>
    %903 = arith.andi %898, %902 : vector<1x128xi1>
    %c1_i32_356 = arith.constant 1 : i32
    %904 = vector.broadcast %c1_i32_356 : i32 to vector<1x128xi32>
    %905 = arith.addi %14, %904 : vector<1x128xi32>
    %c0_i32_357 = arith.constant 0 : i32
    %906 = vector.broadcast %c0_i32_357 : i32 to vector<1x128xi32>
    %907 = arith.cmpi sge, %905, %906 : vector<1x128xi32>
    %908 = arith.andi %903, %907 : vector<1x128xi1>
    %c1_i32_358 = arith.constant 1 : i32
    %909 = vector.broadcast %c1_i32_358 : i32 to vector<1x128xi32>
    %910 = arith.addi %14, %909 : vector<1x128xi32>
    %c4_i32_359 = arith.constant 4 : i32
    %911 = vector.broadcast %c4_i32_359 : i32 to vector<1x128xi32>
    %912 = arith.cmpi slt, %910, %911 : vector<1x128xi32>
    %913 = arith.andi %908, %912 : vector<1x128xi1>
    %c0_i32_360 = arith.constant 0 : i32
    %914 = vector.broadcast %c0_i32_360 : i32 to vector<1x128xi32>
    %915 = arith.addi %10, %914 : vector<1x128xi32>
    %c0_i32_361 = arith.constant 0 : i32
    %916 = vector.broadcast %c0_i32_361 : i32 to vector<1x128xi32>
    %917 = arith.cmpi sge, %915, %916 : vector<1x128xi32>
    %918 = arith.andi %913, %917 : vector<1x128xi1>
    %c0_i32_362 = arith.constant 0 : i32
    %919 = vector.broadcast %c0_i32_362 : i32 to vector<1x128xi32>
    %920 = arith.addi %10, %919 : vector<1x128xi32>
    %c4_i32_363 = arith.constant 4 : i32
    %921 = vector.broadcast %c4_i32_363 : i32 to vector<1x128xi32>
    %922 = arith.cmpi slt, %920, %921 : vector<1x128xi32>
    %923 = arith.andi %918, %922 : vector<1x128xi1>
    %cst_364 = arith.constant 0.000000e+00 : bf16
    %924 = vector.broadcast %cst_364 : bf16 to vector<32x128xbf16>
    %925 = vector.shape_cast %923 : vector<1x128xi1> to vector<1x128xi1>
    %926 = vector.broadcast %925 : vector<1x128xi1> to vector<32x128xi1>
    %927 = arith.select %926, %894, %924 : vector<32x128xi1>, vector<32x128xbf16>
    %c800 = arith.constant 800 : index
    %c0_365 = arith.constant 0 : index
    %928 = vector.load %arg6[%c800, %c0_365] : memref<864x128xbf16, #tpu.memory_space<vmem>>, vector<32x128xbf16>
    tpu.vector_store %arg6[%c800, %c0_365], %927 {strides = array<i32>} : memref<864x128xbf16, #tpu.memory_space<vmem>>, vector<32x128xbf16>,
    %929 = vector.extract_strided_slice %2 {offsets = [0, 42], sizes = [32, 128], strides = [1, 1]} : vector<32x256xbf16> to vector<32x128xbf16>
    %c1_i32_366 = arith.constant 1 : i32
    %930 = vector.broadcast %c1_i32_366 : i32 to vector<1x128xi32>
    %931 = arith.addi %18, %930 : vector<1x128xi32>
    %c0_i32_367 = arith.constant 0 : i32
    %932 = vector.broadcast %c0_i32_367 : i32 to vector<1x128xi32>
    %933 = arith.cmpi sge, %931, %932 : vector<1x128xi32>
    %c1_i32_368 = arith.constant 1 : i32
    %934 = vector.broadcast %c1_i32_368 : i32 to vector<1x128xi32>
    %935 = arith.addi %18, %934 : vector<1x128xi32>
    %c4_i32_369 = arith.constant 4 : i32
    %936 = vector.broadcast %c4_i32_369 : i32 to vector<1x128xi32>
    %937 = arith.cmpi slt, %935, %936 : vector<1x128xi32>
    %938 = arith.andi %933, %937 : vector<1x128xi1>
    %c1_i32_370 = arith.constant 1 : i32
    %939 = vector.broadcast %c1_i32_370 : i32 to vector<1x128xi32>
    %940 = arith.addi %14, %939 : vector<1x128xi32>
    %c0_i32_371 = arith.constant 0 : i32
    %941 = vector.broadcast %c0_i32_371 : i32 to vector<1x128xi32>
    %942 = arith.cmpi sge, %940, %941 : vector<1x128xi32>
    %943 = arith.andi %938, %942 : vector<1x128xi1>
    %c1_i32_372 = arith.constant 1 : i32
    %944 = vector.broadcast %c1_i32_372 : i32 to vector<1x128xi32>
    %945 = arith.addi %14, %944 : vector<1x128xi32>
    %c4_i32_373 = arith.constant 4 : i32
    %946 = vector.broadcast %c4_i32_373 : i32 to vector<1x128xi32>
    %947 = arith.cmpi slt, %945, %946 : vector<1x128xi32>
    %948 = arith.andi %943, %947 : vector<1x128xi1>
    %c1_i32_374 = arith.constant 1 : i32
    %949 = vector.broadcast %c1_i32_374 : i32 to vector<1x128xi32>
    %950 = arith.addi %10, %949 : vector<1x128xi32>
    %c0_i32_375 = arith.constant 0 : i32
    %951 = vector.broadcast %c0_i32_375 : i32 to vector<1x128xi32>
    %952 = arith.cmpi sge, %950, %951 : vector<1x128xi32>
    %953 = arith.andi %948, %952 : vector<1x128xi1>
    %c1_i32_376 = arith.constant 1 : i32
    %954 = vector.broadcast %c1_i32_376 : i32 to vector<1x128xi32>
    %955 = arith.addi %10, %954 : vector<1x128xi32>
    %c4_i32_377 = arith.constant 4 : i32
    %956 = vector.broadcast %c4_i32_377 : i32 to vector<1x128xi32>
    %957 = arith.cmpi slt, %955, %956 : vector<1x128xi32>
    %958 = arith.andi %953, %957 : vector<1x128xi1>
    %cst_378 = arith.constant 0.000000e+00 : bf16
    %959 = vector.broadcast %cst_378 : bf16 to vector<32x128xbf16>
    %960 = vector.shape_cast %958 : vector<1x128xi1> to vector<1x128xi1>
    %961 = vector.broadcast %960 : vector<1x128xi1> to vector<32x128xi1>
    %962 = arith.select %961, %929, %959 : vector<32x128xi1>, vector<32x128xbf16>
    %c832 = arith.constant 832 : index
    %c0_379 = arith.constant 0 : index
    %963 = vector.load %arg6[%c832, %c0_379] : memref<864x128xbf16, #tpu.memory_space<vmem>>, vector<32x128xbf16>
    tpu.vector_store %arg6[%c832, %c0_379], %962 {strides = array<i32>} : memref<864x128xbf16, #tpu.memory_space<vmem>>, vector<32x128xbf16>,
    %c0_380 = arith.constant 0 : index
    %c0_381 = arith.constant 0 : index
    %964 = vector.load %arg3[%c0_380, %c0_381] : memref<32x864xbf16, #tpu.memory_space<vmem>>, vector<32x864xbf16>
    %c0_382 = arith.constant 0 : index
    %c0_383 = arith.constant 0 : index
    %965 = vector.load %arg6[%c0_382, %c0_383] : memref<864x128xbf16, #tpu.memory_space<vmem>>, vector<864x128xbf16>
    %cst_384 = arith.constant dense<0.000000e+00> : vector<32x128xf32>
    %966 = tpu.matmul %964, %965, %cst_384 {dimension_numbers = #tpu.dot_dimension_numbers<[1], [0], [0], [1], [0, 0, 1, 1], [], []>} : vector<32x864xbf16>, vector<864x128xbf16>, vector<32x128xf32> -> vector<32x128xf32>
    %c0_385 = arith.constant 0 : index
    %c0_386 = arith.constant 0 : index
    %967 = vector.load %arg4[%c0_385, %c0_386] : memref<32x1xf32, #tpu.memory_space<vmem>>, vector<32x1xf32>
    %968 = vector.broadcast %967 : vector<32x1xf32> to vector<32x128xf32>
    %969 = arith.addf %966, %968 : vector<32x128xf32>
    %cst_387 = arith.constant 0.000000e+00 : f32
    %970 = vector.broadcast %cst_387 : f32 to vector<32x128xf32>
    %971 = arith.maximumf %969, %970 : vector<32x128xf32>
    %972 = arith.truncf %971 : vector<32x128xf32> to vector<32x128xbf16>
    %c0_388 = arith.constant 0 : index
    %c0_389 = arith.constant 0 : index
    %973 = vector.load %arg5[%c0_388, %c0_389] : memref<32x128xbf16, #tpu.memory_space<vmem>>, vector<32x128xbf16>
    tpu.vector_store %arg5[%c0_388, %c0_389], %972 {strides = array<i32>} : memref<32x128xbf16, #tpu.memory_space<vmem>>, vector<32x128xbf16>,
    return
  }
  func.func @transform_0(%arg0: i32) -> (i32, i32) {
    %c0_i32 = arith.constant 0 : i32
    %c0_i32_0 = arith.constant 0 : i32
    return %c0_i32, %arg0 : i32, i32
  }
  func.func @transform_1(%arg0: i32) -> (i32, i32) {
    %c1_i32 = arith.constant 1 : i32
    %0 = arith.addi %arg0, %c1_i32 : i32
    %c0_i32 = arith.constant 0 : i32
    %c0_i32_0 = arith.constant 0 : i32
    return %c0_i32, %0 : i32, i32
  }
  func.func @transform_2(%arg0: i32) -> (i32, i32) {
    %c0_i32 = arith.constant 0 : i32
    %c0_i32_0 = arith.constant 0 : i32
    %c0_i32_1 = arith.constant 0 : i32
    return %c0_i32, %c0_i32_0 : i32, i32
  }
  func.func @transform_3(%arg0: i32) -> (i32, i32) {
    %c0_i32 = arith.constant 0 : i32
    %c0_i32_0 = arith.constant 0 : i32
    %c0_i32_1 = arith.constant 0 : i32
    return %c0_i32, %c0_i32_0 : i32, i32
  }
  func.func @transform_4(%arg0: i32) -> (i32, i32) {
    %c0_i32 = arith.constant 0 : i32
    %c0_i32_0 = arith.constant 0 : i32
    return %c0_i32, %arg0 : i32, i32
  }
}

module attributes {stable_mosaic.version = 11 : i64} {
  func.func @_header_kernel(%arg0: i32, %arg1: memref<2x256xbf16, #tpu.memory_space<vmem>>, %arg2: memref<256x128xbf16, #tpu.memory_space<vmem>>, %arg3: memref<1x128xf32, #tpu.memory_space<vmem>>, %arg4: memref<128x10xf32, #tpu.memory_space<vmem>>, %arg5: memref<1x10xf32, #tpu.memory_space<vmem>>, %arg6: memref<2x10xf32, #tpu.memory_space<vmem>>, %arg7: memref<2x128xf32, #tpu.memory_space<vmem>>) attributes {dimension_semantics = [#tpu.dimension_semantics<arbitrary>], iteration_bounds = array<i64: 1>, scalar_prefetch = 0 : i64, scratch_operands = 1 : i64, tpu.core_type = #tpu.core_type<tc>, window_params = [{transform_indices = @transform_0, window_bounds = array<i64: 2, 256>}, {transform_indices = @transform_1, window_bounds = array<i64: 256, 128>}, {pipeline_mode = #tpu.pipeline_mode<synchronous>, transform_indices = @transform_2, window_bounds = array<i64: 1, 128>}, {pipeline_mode = #tpu.pipeline_mode<synchronous>, transform_indices = @transform_3, window_bounds = array<i64: 128, 10>}, {pipeline_mode = #tpu.pipeline_mode<synchronous>, transform_indices = @transform_4, window_bounds = array<i64: 1, 10>}, {pipeline_mode = #tpu.pipeline_mode<synchronous>, transform_indices = @transform_5, window_bounds = array<i64: 2, 10>}]} {
    %c0_i32 = arith.constant 0 : i32
    %0 = arith.cmpi eq, %arg0, %c0_i32 : i32
    %1 = arith.extui %0 : i1 to i32
    %c0_i32_0 = arith.constant 0 : i32
    %2 = arith.cmpi ne, %1, %c0_i32_0 : i32
    scf.if %2 {
      %cst_10 = arith.constant 0.000000e+00 : f32
      %12 = vector.broadcast %cst_10 : f32 to vector<2x128xf32>
      %c0_11 = arith.constant 0 : index
      %c0_12 = arith.constant 0 : index
      %13 = vector.load %arg7[%c0_11, %c0_12] : memref<2x128xf32, #tpu.memory_space<vmem>>, vector<2x128xf32>
      tpu.vector_store %arg7[%c0_11, %c0_12], %12 {strides = array<i32>} : memref<2x128xf32, #tpu.memory_space<vmem>>, vector<2x128xf32>,
    } else {
    }
    %c0 = arith.constant 0 : index
    %c0_1 = arith.constant 0 : index
    %3 = vector.load %arg7[%c0, %c0_1] : memref<2x128xf32, #tpu.memory_space<vmem>>, vector<2x128xf32>
    %c0_2 = arith.constant 0 : index
    %c0_3 = arith.constant 0 : index
    %4 = vector.load %arg1[%c0_2, %c0_3] : memref<2x256xbf16, #tpu.memory_space<vmem>>, vector<2x256xbf16>
    %c0_4 = arith.constant 0 : index
    %c0_5 = arith.constant 0 : index
    %5 = vector.load %arg2[%c0_4, %c0_5] : memref<256x128xbf16, #tpu.memory_space<vmem>>, vector<256x128xbf16>
    %cst = arith.constant dense<0.000000e+00> : vector<2x128xf32>
    %6 = tpu.matmul %4, %5, %cst {dimension_numbers = #tpu.dot_dimension_numbers<[1], [0], [0], [1], [0, 0, 1, 1], [], []>} : vector<2x256xbf16>, vector<256x128xbf16>, vector<2x128xf32> -> vector<2x128xf32>
    %7 = arith.addf %3, %6 : vector<2x128xf32>
    %c0_6 = arith.constant 0 : index
    %c0_7 = arith.constant 0 : index
    %8 = vector.load %arg7[%c0_6, %c0_7] : memref<2x128xf32, #tpu.memory_space<vmem>>, vector<2x128xf32>
    tpu.vector_store %arg7[%c0_6, %c0_7], %7 {strides = array<i32>} : memref<2x128xf32, #tpu.memory_space<vmem>>, vector<2x128xf32>,
    %c0_i32_8 = arith.constant 0 : i32
    %9 = arith.cmpi eq, %arg0, %c0_i32_8 : i32
    %10 = arith.extui %9 : i1 to i32
    %c0_i32_9 = arith.constant 0 : i32
    %11 = arith.cmpi ne, %10, %c0_i32_9 : i32
    scf.if %11 {
      %c0_10 = arith.constant 0 : index
      %c0_11 = arith.constant 0 : index
      %12 = vector.load %arg7[%c0_10, %c0_11] : memref<2x128xf32, #tpu.memory_space<vmem>>, vector<2x128xf32>
      %c0_12 = arith.constant 0 : index
      %c0_13 = arith.constant 0 : index
      %13 = vector.load %arg3[%c0_12, %c0_13] : memref<1x128xf32, #tpu.memory_space<vmem>>, vector<1x128xf32>
      %14 = vector.broadcast %13 : vector<1x128xf32> to vector<2x128xf32>
      %15 = arith.addf %12, %14 : vector<2x128xf32>
      %cst_14 = arith.constant 0.000000e+00 : f32
      %16 = vector.broadcast %cst_14 : f32 to vector<2x128xf32>
      %17 = arith.cmpf ogt, %15, %16 : vector<2x128xf32>
      %cst_15 = arith.constant 0.00999999977 : f32
      %18 = vector.broadcast %cst_15 : f32 to vector<2x128xf32>
      %19 = arith.mulf %18, %15 : vector<2x128xf32>
      %20 = arith.select %17, %15, %19 : vector<2x128xi1>, vector<2x128xf32>
      %c0_16 = arith.constant 0 : index
      %c0_17 = arith.constant 0 : index
      %21 = vector.load %arg4[%c0_16, %c0_17] : memref<128x10xf32, #tpu.memory_space<vmem>>, vector<128x10xf32>
      %cst_18 = arith.constant dense<0.000000e+00> : vector<2x10xf32>
      %22 = tpu.matmul %20, %21, %cst_18 {dimension_numbers = #tpu.dot_dimension_numbers<[1], [0], [0], [1], [0, 0, 1, 1], [], []>} : vector<2x128xf32>, vector<128x10xf32>, vector<2x10xf32> -> vector<2x10xf32>
      %c0_19 = arith.constant 0 : index
      %c0_20 = arith.constant 0 : index
      %23 = vector.load %arg5[%c0_19, %c0_20] : memref<1x10xf32, #tpu.memory_space<vmem>>, vector<1x10xf32>
      %24 = vector.broadcast %23 : vector<1x10xf32> to vector<2x10xf32>
      %25 = arith.addf %22, %24 : vector<2x10xf32>
      %c0_21 = arith.constant 0 : index
      %c0_22 = arith.constant 0 : index
      %26 = vector.load %arg6[%c0_21, %c0_22] : memref<2x10xf32, #tpu.memory_space<vmem>>, vector<2x10xf32>
      tpu.vector_store %arg6[%c0_21, %c0_22], %25 {strides = array<i32>} : memref<2x10xf32, #tpu.memory_space<vmem>>, vector<2x10xf32>,
    } else {
    }
    return
  }
  func.func @transform_0(%arg0: i32) -> (i32, i32) {
    %c0_i32 = arith.constant 0 : i32
    %c0_i32_0 = arith.constant 0 : i32
    return %c0_i32, %arg0 : i32, i32
  }
  func.func @transform_1(%arg0: i32) -> (i32, i32) {
    %c0_i32 = arith.constant 0 : i32
    %c0_i32_0 = arith.constant 0 : i32
    return %arg0, %c0_i32 : i32, i32
  }
  func.func @transform_2(%arg0: i32) -> (i32, i32) {
    %c0_i32 = arith.constant 0 : i32
    %c0_i32_0 = arith.constant 0 : i32
    %c0_i32_1 = arith.constant 0 : i32
    return %c0_i32, %c0_i32_0 : i32, i32
  }
  func.func @transform_3(%arg0: i32) -> (i32, i32) {
    %c0_i32 = arith.constant 0 : i32
    %c0_i32_0 = arith.constant 0 : i32
    %c0_i32_1 = arith.constant 0 : i32
    return %c0_i32, %c0_i32_0 : i32, i32
  }
  func.func @transform_4(%arg0: i32) -> (i32, i32) {
    %c0_i32 = arith.constant 0 : i32
    %c0_i32_0 = arith.constant 0 : i32
    %c0_i32_1 = arith.constant 0 : i32
    return %c0_i32, %c0_i32_0 : i32, i32
  }
  func.func @transform_5(%arg0: i32) -> (i32, i32) {
    %c0_i32 = arith.constant 0 : i32
    %c0_i32_0 = arith.constant 0 : i32
    %c0_i32_1 = arith.constant 0 : i32
    return %c0_i32, %c0_i32_0 : i32, i32
  }
}

</mosaic_0001>

<bundles_post_ra>
// kernel: _lambda_.4
= control target key start
LH: loop header
LB: loop body
LE: loop exit
PB: predicated region body
PF: predicated region fallthrough
CT: control target
= control target key end

     0   :  { %vm115_vm0 = vcmask 1045504   ;;  %v222_v2 = vmov 0   ;;  %vm108_vm1 = vcmask 883712   ;;  %s291_s1 = inlined_call_operand.vmem [shape: bf16[108,128], index: 1, kind: input, shape index: {}]   ;;  %s292_s2 = inlined_call_operand.vmem [shape: f32[32,1], index: 2, kind: input, shape index: {}]   ;;  %s293_s0 = inlined_call_operand.vmem [shape: bf16[32,108], index: 0, kind: input, shape index: {}]   ;;  %s294_s3 = inlined_call_operand.vmem [shape: bf16[32,128], index: 3, kind: output, shape index: {}]  }
   0x1   :  { %v188_v0 = vld [vmem:[%s291_s1 + $0x30] sm:$0xf]  ;;  %v200_v1 = vld [vmem:[%s291_s1 + $0x30] sm:$0x30]  ;;  %221 = vset.pattern.permute.xlu1 %v222_v2  ;;  %220 = vset.pattern.permute.xlu0 %v222_v2  ;;  %v33_v6 = vld [vmem:[%s292_s2] sm:$0xff] }
   0x2   :  { %v189_v3 = vor.u32 %v200_v1, %v188_v0  ;;  %v35_v5 = vld [vmem:[%s292_s2 + $0x10] sm:$0xff]  ;;  %v199_v7 = vld [vmem:[%s291_s1 + $0x28] sm:$0xff]  ;;  %39 = vperm.xlu0 %220, %v33_v6   ;;  %v198_v8 = vld [vmem:[%s291_s1 + $0x20] sm:$0xff] }
   0x3   :  { %49 = vperm.xlu1 %221, %v35_v5   ;;  %v36_v9 = vld [vmem:[%s292_s2 + $0x18] sm:$0xff]  ;;  %v34_v10 = vld [vmem:[%s292_s2 + $0x8] sm:$0xff]  ;;  %v196_v12 = vld [vmem:[%s291_s1 + $0x10] sm:$0xff] }
   0x4   :  { %v117_v4 = vsel %vm115_vm0, %v189_v3, 0  ;;  %v197_v11 = vld [vmem:[%s291_s1 + $0x18] sm:$0xff]  ;;  %v195_v13 = vld [vmem:[%s291_s1 + $0x8] sm:$0xff]  ;;  %v194_v14 = vld [vmem:[%s291_s1] sm:$0xff] }
   0x5   :  { %120 = vmatpush.bf16.msra.mxu0 %v117_v4  ;;  %212 = vmatpush.bf16.msra.mxu1 %v117_v4  ;;  %v192_v15 = vld [vmem:[%s293_s0] sm:$0xff]  ;;  %v193_v16 = vld [vmem:[%s293_s0 + $0x8] sm:$0xff] }
   0x9   :  { %121 = vmatpush.bf16.msra.mxu0 %v199_v7  ;;  %213 = vmatpush.bf16.msra.mxu1 %v199_v7 }
   0xa   :  { %44 = vperm.xlu0 %220, %v34_v10  }
   0xb   :  { %54 = vperm.xlu1 %221, %v36_v9  }
   0xd   :  { %122 = vmatpush.bf16.msra.mxu0 %v198_v8  ;;  %214 = vmatpush.bf16.msra.mxu1 %v198_v8 }
  0x11   :  { %123 = vmatpush.bf16.msra.mxu0 %v197_v11  ;;  %215 = vmatpush.bf16.msra.mxu1 %v197_v11 }
  0x15   :  { %124 = vmatpush.bf16.msra.mxu0 %v196_v12  ;;  %216 = vmatpush.bf16.msra.mxu1 %v196_v12 }
  0x19   :  { %125 = vmatpush.bf16.msra.mxu0 %v195_v13  ;;  %217 = vmatpush.bf16.msra.mxu1 %v195_v13 }
  0x1d   :  { %126 = vmatpush.bf16.msra.mxu0 %v194_v14  ;;  %218 = vmatpush.bf16.msra.mxu1 %v194_v14 }
  0x20   :  { %190 = vmatmul.msk.bf16.vlgmr.msra.gmra.mxu0 %vm108_vm1, %v192_v15  ;;  %191 = vmatmul.msk.bf16.vlgmr.msra.gmra.mxu1 %vm108_vm1, %v193_v16 }
  0x74   :  { %v40_v18 = vpop.permute.xlu0 %39 }
  0x75   :  { %v50_v17 = vpop.permute.xlu1 %49 }
  0x7c   :  { %v45_v22 = vpop.permute.xlu0 %44 }
  0x7d   :  { %v55_v21 = vpop.permute.xlu1 %54 }
  0x9d   :  { %v128_v19 = vpop.f32.mrf.mxu0  ;;  %v133_v20 = vpop.f32.mrf.mxu1 }
  0x9e   :  { %v129_v23 = vadd.f32 %v128_v19, %v40_v18  ;;  %v134_v24 = vadd.f32 %v133_v20, %v50_v17 }
  0xa0   :  { %v138_v29 = vmax.f32 %v129_v23, 0.0  ;;  %v140_v30 = vmax.f32 %v134_v24, 0.0 }
  0xa5   :  { %v130_v25 = vpop.f32.mrf.mxu0  ;;  %v135_v26 = vpop.f32.mrf.mxu1 }
  0xa6   :  { %v131_v27 = vadd.f32 %v130_v25, %v45_v22  ;;  %v136_v28 = vadd.f32 %v135_v26, %v55_v21 }
  0xa8   :  { %v139_v31 = vmax.f32 %v131_v27, 0.0  ;;  %v141_v32 = vmax.f32 %v136_v28, 0.0 }
  0xaa   :  { %v204_v33 = vpack.c.bf16 %v139_v31, %v138_v29  ;;  %v209_v34 = vpack.c.bf16 %v141_v32, %v140_v30 }
  0xac   :  { %205 = vst [vmem:[%s294_s3] sm:$0xff] %v204_v33  }
  0xad   :  { %211 = vst [vmem:[%s294_s3 + $0x8] sm:$0xff] %v209_v34  }

// kernel: _lambda_.7
= control target key start
LH: loop header
LB: loop body
LE: loop exit
PB: predicated region body
PF: predicated region fallthrough
CT: control target
= control target key end

     0   :  { %s510_s0 = inlined_call_operand.vmem [shape: bf16[2,256], index: 0, kind: input, shape index: {}]   ;;  %s511_s1 = inlined_call_operand.vmem [shape: bf16[256,128], index: 1, kind: input, shape index: {}]   ;;  %s512_s2 = inlined_call_operand.vmem [shape: f32[1,128], index: 2, kind: input, shape index: {}]   ;;  %s513_s3 = inlined_call_operand.vmem [shape: f32[128,10], index: 3, kind: input, shape index: {}]   ;;  %s514_s4 = inlined_call_operand.vmem [shape: f32[1,10], index: 4, kind: input, shape index: {}]   ;;  %s515_s5 = inlined_call_operand.hbm [shape: f32[2,10], index: 5, kind: output, shape index: {}]  }
   0x1   :  { %v331_v0 = vld [vmem:[%s511_s1 + $0x38] sm:$0xff]  ;;  %v330_v2 = vld [vmem:[%s511_s1 + $0x30] sm:$0xff]  ;;  %v27_v4 = vld [vmem:[%s510_s0] sm:$0x3] }
   0x2   :  { %v339_v1 = vld [vmem:[%s511_s1 + $0x78] sm:$0xff]  ;;  %162 = vmatpush.bf16.msra.mxu0 %v331_v0  ;;  %v338_v3 = vld [vmem:[%s511_s1 + $0x70] sm:$0xff]  ;;  %v329_v6 = vld [vmem:[%s511_s1 + $0x28] sm:$0xff]  ;;  %61 = vst [vmem:[#allocation1] ss:$9 sm:$0xff] %v27_v4 }
   0x3   :  { %175 = vmatpush.bf16.msra.mxu1 %v339_v1  ;;  %v217_v5 = vld [vmem:[%s513_s3 + $0x78] sm:$0xff]  ;;  %v337_v7 = vld [vmem:[%s511_s1 + $0x68] sm:$0xff]  ;;  %v216_v8 = vld [vmem:[%s513_s3 + $0x70] sm:$0xff] }
   0x4   :  { %222 = vmatpush.msra.mxu2 %v217_v5  ;;  %v215_v9 = vld [vmem:[%s513_s3 + $0x68] sm:$0xff] }
   0x6   :  { %163 = vmatpush.bf16.msra.mxu0 %v330_v2 }
   0x7   :  { %176 = vmatpush.bf16.msra.mxu1 %v338_v3 }
   0x8   :  { %10 = vsyncpa [#allocation4], 0  ;;  %223 = vmatpush.msra.mxu2 %v216_v8  ;;  %v328_v10 = vld [vmem:[%s511_s1 + $0x20] sm:$0xff]  ;;  %v213_v13 = vld [vmem:[%s513_s3 + $0x58] sm:$0xff]  ;;  %v370_v26 = vmov 0.0   ;;  %s371_s9 = smov [#allocation3]  }
   0x9   :  { %v336_v11 = vld [vmem:[%s511_s1 + $0x60] sm:$0xff]  ;;  %v327_v14 = vld [vmem:[%s511_s1 + $0x18] sm:$0xff]  ;;  %v212_v16 = vld [vmem:[%s513_s3 + $0x50] sm:$0xff]  ;;  %25 = vst [vmem:[#allocation2] sm:$0x3] %v370_v26  ;;  %s249_s10 = sshll.u32 %s371_s9, 4  ;;  %s250_s10 = int_to_ptr.vmem [resolvable:$true] %s249_s10 }
   0xa   :  { %164 = vmatpush.bf16.msra.mxu0 %v329_v6  ;;  %v214_v12 = vld [vmem:[%s513_s3 + $0x60] sm:$0xff]  ;;  %224 = vmatpush.msra.mxu2 %v215_v9  ;;  %v335_v15 = vld [vmem:[%s511_s1 + $0x58] sm:$0xff]  ;;  %v211_v17 = vld [vmem:[%s513_s3 + $0x48] sm:$0xff]  ;;  %s251_s12 = sshll.u32 %s515_s5, 4  ;;  %vm242_vm1 = vcmask 74752   ;;  %s252_s12 = int_to_ptr.hbm [resolvable:$true] %s251_s12 }
   0xb   :  { %177 = vmatpush.bf16.msra.mxu1 %v337_v7  ;;  %v326_v18 = vld [vmem:[%s511_s1 + $0x10] sm:$0xff]  ;;  %v325_v20 = vld [vmem:[%s511_s1 + $0x8] sm:$0xff]  ;;  %v324_v22 = vld [vmem:[%s511_s1] sm:$0xff] }
   0xc   :  { %225 = vmatpush.msra.mxu2 %v214_v12  ;;  %v334_v19 = vld [vmem:[%s511_s1 + $0x50] sm:$0xff]  ;;  %v333_v21 = vld [vmem:[%s511_s1 + $0x48] sm:$0xff]  ;;  %v332_v23 = vld [vmem:[%s511_s1 + $0x40] sm:$0xff] }
   0xd   :  { %v62_v24 = vld [vmem:[#allocation1] sm:$0xff]  ;;  %v63_v25 = vld [vmem:[#allocation1 + $0x9] sm:$0xff]  ;;  %v209_v28 = vld [vmem:[%s513_s3 + $0x38] sm:$0xff] }
   0xe   :  { %165 = vmatpush.bf16.msra.mxu0 %v328_v10  ;;  %226 = vmatpush.msra.mxu2 %v213_v13  ;;  %v210_v27 = vld [vmem:[%s513_s3 + $0x40] sm:$0xff]  ;;  %v208_v29 = vld [vmem:[%s513_s3 + $0x30] sm:$0xff]  ;;  %v207_v30 = vld [vmem:[%s513_s3 + $0x28] sm:$0xff] }
   0xf   :  { %178 = vmatpush.bf16.msra.mxu1 %v336_v11  ;;  %v206_v31 = vld [vmem:[%s513_s3 + $0x20] sm:$0xff]  ;;  %v205_v32 = vld [vmem:[%s513_s3 + $0x18] sm:$0xff]  ;;  %v204_v33 = vld [vmem:[%s513_s3 + $0x10] sm:$0xff] }
  0x10   :  { %227 = vmatpush.msra.mxu2 %v212_v16  ;;  %v203_v34 = vld [vmem:[%s513_s3 + $0x8] sm:$0xff]  ;;  %v202_v35 = vld [vmem:[%s513_s3] sm:$0xff] }
  0x11   :  { %v26_v37 = vld [vmem:[#allocation2] sm:$0x3]  ;;  %v342_v43 = vld [vmem:[%s512_s2] ss:$0 sm:$0xff] }
  0x12   :  { %166 = vmatpush.bf16.msra.mxu0 %v327_v14  ;;  %228 = vmatpush.msra.mxu2 %v211_v17  ;;  %v343_v48 = vld [vmem:[%s514_s4] ss:$0 sm:$0xff] }
  0x13   :  { %179 = vmatpush.bf16.msra.mxu1 %v335_v15 }
  0x14   :  { %229 = vmatpush.msra.mxu2 %v210_v27 }
  0x16   :  { %167 = vmatpush.bf16.msra.mxu0 %v326_v18  ;;  %230 = vmatpush.msra.mxu2 %v209_v28 }
  0x17   :  { %180 = vmatpush.bf16.msra.mxu1 %v334_v19 }
  0x18   :  { %231 = vmatpush.msra.mxu2 %v208_v29 }
  0x1a   :  { %168 = vmatpush.bf16.msra.mxu0 %v325_v20  ;;  %232 = vmatpush.msra.mxu2 %v207_v30 }
  0x1b   :  { %181 = vmatpush.bf16.msra.mxu1 %v333_v21 }
  0x1c   :  { %233 = vmatpush.msra.mxu2 %v206_v31 }
  0x1e   :  { %169 = vmatpush.bf16.msra.mxu0 %v324_v22  ;;  %234 = vmatpush.msra.mxu2 %v205_v32 }
  0x1f   :  { %182 = vmatpush.bf16.msra.mxu1 %v332_v23 }
  0x20   :  { %235 = vmatpush.msra.mxu2 %v204_v33 }
  0x21   :  { %170 = vmatmul.bf16.vlgmr.msra.gmra.mxu0 %v62_v24 }
  0x22   :  { %183 = vmatmul.bf16.vlgmr.msra.gmra.mxu1 %v63_v25  ;;  %236 = vmatpush.msra.mxu2 %v203_v34 }
  0x24   :  { %237 = vmatpush.msra.mxu2 %v202_v35 }
  0x9e   :  { %v171_v36 = vpop.f32.mrf.mxu0 }
  0x9f   :  { %v184_v38 = vpop.f32.mrf.mxu1 }
  0xa0   :  { %v185_v39 = vadd.f32 %v184_v38, %v171_v36 }
  0xa2   :  { %v188_v40 = vadd.f32 %v185_v39, %v26_v37 }
  0xa4   :  { %189 = vst [vmem:[#allocation2] sm:$0x3] %v188_v40 }
  0xa6   :  { %v173_v41 = vpop.f32.mrf.mxu0 }
  0xa7   :  { %v186_v42 = vpop.f32.mrf.mxu1 }
  0xab   :  { %v193_v44 = vld [vmem:[#allocation2] sm:$0x3] }
  0xac   :  { %v198_v45 = vadd.f32 %v342_v43, %v193_v44 }
  0xae   :  { %vm199_vm0 = vcmp.gt.f32.partialorder %v198_v45, 0.0  ;;  %v200_v46 = vmul.f32 0.01, %v198_v45 }
  0xb0   :  { %v201_v47 = vsel %vm199_vm0, %v198_v45, %v200_v46 }
  0xb1   :  { %238 = vmatmul.f32.vlgmr.msra.gmra.mxu2 %v201_v47 }
 0x134   :  { %v239_v49 = vpop.f32.mrf.mxu2 }
 0x135   :  { %v240_v50 = vadd.f32 %v343_v48, %v239_v49 }
 0x137   :  { %243 = vst.msk [vmem:[#allocation3] sm:$0x3] %vm242_vm1, %v240_v50 }
 0x138   :  { %254 = dma.vmem_to_hbm [thread:$0]  %s250_s10, 32, %s252_s12, [#allocation4]  }
 0x139   :  { %368 = dma.done.wait [#allocation4], 32  }
 0x13a   :  { %369 = vsyncadd [#allocation4], 4294967264 }
 0x13b   :  { %259 = vsyncpa [#allocation4], 1 }

// kernel: _lambda_.5
= control target key start
LH: loop header
LB: loop body
LE: loop exit
PB: predicated region body
PF: predicated region fallthrough
CT: control target
= control target key end

     0   :  { %v166_v0 = vlaneseq  ;;  %v2996_v5 = vmov 0   ;;  %s2998_s23 = smov 4   ;;  %s2999_s24 = smov 5   ;;  %s4612_s0 = inlined_call_operand.vmem [shape: bf16[32,256], index: 0, kind: input, shape index: {}, may-alias: {0,1}]   ;;  %s4613_s1 = inlined_call_operand.vmem [shape: bf16[32,256], index: 1, kind: input, shape index: {}, may-alias: {0,1}]   ;;  %s4614_s2 = inlined_call_operand.vmem [shape: bf16[32,864], index: 2, kind: input, shape index: {}]   ;;  %s4615_s3 = inlined_call_operand.vmem [shape: f32[32,1], index: 3, kind: input, shape index: {}]   ;;  %s4616_s4 = inlined_call_operand.vmem [shape: bf16[32,128], index: 4, kind: output, shape index: {}]  }
   0x1   :  { %v27_v1 = vld [vmem:[%s4612_s0] sm:$0xf]  ;;  %v29_v2 = vld [vmem:[%s4612_s0 + $0x8] sm:$0xf]  ;;  %v31_v3 = vld [vmem:[%s4612_s0 + $0x10] sm:$0xf]  ;;  %2987 = vset.pattern.permute.xlu1 %v2996_v5  ;;  %2989 = vset.pattern.permute.xlu0 %v2996_v5  ;;  %v3152_v26 = vunpack.c.l.b16 %v2996_v5  ;;  %v3155_v27 = vunpack.c.h.b16 %v2996_v5 }
   0x2   :  { %28 = vst [vmem:[#allocation3] sm:$0xf] %v27_v1  ;;  %v33_v4 = vld [vmem:[%s4612_s0 + $0x18] sm:$0xf]  ;;  %v167_v6 = vand.u32 127, %v166_v0  ;;  %2988 = vset.pattern.permute.xlu2 %v2996_v5  ;;  %s2997_s0 = smov 1  }
   0x3   :  { %30 = vst [vmem:[#allocation3 + $0x4] sm:$0xf] %v29_v2  ;;  %s3000_s25 = smov 8   ;;  %s3001_s26 = smov 18   ;;  %v2552_v34 = vld [vmem:[%s4613_s1 + $0x1c] sm:$0xf] }
   0x4   :  { %32 = vst [vmem:[#allocation3 + $0x8] sm:$0xf] %v31_v3  ;;  %v171_v7 = vand.u32 63, %v167_v6  ;;  %s3002_s27 = smov 2   ;;  %s3003_s28 = smov 9  }
   0x5   :  { %34 = vst [vmem:[#allocation3 + $0xc] sm:$0xf] %v33_v4  ;;  %s3004_s29 = smov 17   ;;  %s3005_s30 = smov 6  }
   0x6   :  { %v173_v8 = vshra.s32 %v171_v7, 2  ;;  %v175_v9 = vshra.s32 %v171_v7, 4  ;;  %v172_v10 = vand.u32 3, %v171_v7  ;;  %s3006_s5 = smov 24   ;;  %s3007_s6 = smov 16  }
   0x7   :  { %s3008_s7 = smov 22   ;;  %s3009_s8 = smov 10   ;;  %92 = vst [vmem:[#allocation4 + $0xc] sm:$0xf] %v2552_v34 }
   0x8   :  { %v3089_v11 = vand.u32 3, %v173_v8  ;;  %v3091_v12 = vand.u32 3, %v175_v9  ;;  %v3097_v15 = vadd.s32 4294967295, %v172_v10  ;;  %v3162_v32 = vadd.s32 1, %v172_v10  ;;  %s3010_s9 = smov 42   ;;  %s3011_s10 = smov 36  }
   0x9   :  { %s3012_s19 = smov 40   ;;  %s3013_s20 = smov 38  }
   0xa   :  { %v177_v13 = vadd.s32 4294967295, %v3091_v12  ;;  %v3095_v14 = vadd.s32 4294967295, %v3089_v11  ;;  %vm4618_vm7 = vcmp.ge.s32.totalorder %v3089_v11, 0  ;;  %vm187_vm9 = vcmp.ge.s32.totalorder %v3097_v15, 0  ;;  %v3173_v35 = vld [vmem:[#allocation3] sm:$0xff]  ;;  %s3015_s21 = smov 37  }
   0xb   :  { %vm4617_vm10 = vcmp.lt.s32.totalorder %v3089_v11, 4  ;;  %v3122_v18 = vadd.s32 1, %v3089_v11  ;;  %v1283_v63 = vadd.s32 1, %v3091_v12  ;;  %s3016_s22 = smov 20   ;;  %s3032_s11 = smov 112  }
   0xc   :  { %vm178_vm0 = vcmp.ge.s32.totalorder %v177_v13, 0  ;;  %vm179_vm1 = vcmp.lt.s32.totalorder %v177_v13, 4  ;;  %vm182_vm2 = vcmp.ge.s32.totalorder %v3095_v14, 0  ;;  %vm4620_vm3 = vcmp.lt.s32.totalorder %v3095_v14, 4  ;;  %v3175_v36 = vld [vmem:[#allocation3 + $0x8] sm:$0xff]  ;;  %s3033_s12 = smov 25  }
   0xd   :  { %vm3101_vm4 = vmand %vm178_vm0, %vm179_vm1  ;;  %vm538_vm0 = vcmp.ge.s32.totalorder %v3122_v18, 0  ;;  %s3034_s13 = smov 106   ;;  %s3035_s14 = smov 118  }
   0xe   :  { %vm183_vm5 = vmand %vm3101_vm4, %vm182_vm2  ;;  %s3036_s15 = smov 107   ;;  %s3037_s16 = smov 108  }
   0xf   :  { %vm3111_vm6 = vmand %vm183_vm5, %vm4620_vm3  ;;  %s3038_s17 = smov 90   ;;  %s3039_s18 = smov 95  }
  0x10   :  { %vm229_vm8 = vmpackc.low %vm3111_vm6, %vm3111_vm6 }
  0x11   :  { %v230_v19 = vsel %vm229_vm8, 65537, %v2996_v5  ;;  %vm188_vm11 = vmand %vm3111_vm6, %vm187_vm9  ;;  %vm4619_vm8 = vcmp.lt.s32.totalorder %v3122_v18, 4 }
  0x12   :  { %v231_v20 = vperm.slane %v230_v19, 0  ;;  %v191_v21 = vsel %vm188_vm11, 1, %v2996_v5  ;;  %vm351_vm12 = vmand %vm3101_vm4, %vm4618_vm7  ;;  %vm289_vm7 = vcmp.lt.s32.totalorder %v3162_v32, 4 }
  0x13   :  { %vm192_vm13 = vcmp.eq.s32.totalorder %v191_v21, 1  ;;  %vm3136_vm14 = vmand %vm351_vm12, %vm4617_vm10 }
  0x14   :  { %232 = vrot.lane.b32.xlu0 %v231_v20, %s2997_s0  ;;  %vm193_vm15 = vmpackc.low %vm192_vm13, %vm192_vm13  ;;  %s3017_s0 = smov 41  }
  0x15   :  { %v194_v23 = vsel %vm193_vm15, 65537, %v2996_v5  ;;  %vm354_vm1 = vmand %vm3136_vm14, %vm187_vm9 }
  0x16   :  { %v195_v24 = vperm.slane %v194_v23, 0  ;;  %v356_v25 = vsel %vm354_vm1, 1, %v2996_v5  ;;  %vm419_vm5 = vmpackc.low %vm3136_vm14, %vm3136_vm14  ;;  %vm725_vm1 = vcmp.ge.s32.totalorder %v3091_v12, 0 }
  0x17   :  { %vm357_vm11 = vcmp.eq.s32.totalorder %v356_v25, 1  ;;  %v420_v28 = vsel %vm419_vm5, 65537, %v2996_v5  ;;  %vm539_vm12 = vmand %vm3101_vm4, %vm538_vm0  ;;  %vm726_vm5 = vcmp.lt.s32.totalorder %v3091_v12, 4 }
  0x18   :  { %v196_v29 = vunpack.c.l.b16 %v195_v24  ;;  %v197_v30 = vunpack.c.h.b16 %v195_v24  ;;  %vm358_vm13 = vmpackc.low %vm357_vm11, %vm357_vm11  ;;  %v421_v31 = vperm.slane %v420_v28, 0 }
  0x19   :  { %v359_v33 = vsel %vm358_vm13, 65537, %v2996_v5  ;;  %vm3167_vm15 = vmand %vm539_vm12, %vm4619_vm8 }
  0x1a   :  { %vm200_vm4 = vcmp.ne.s32.totalorder %v196_v29, %v3152_v26  ;;  %vm201_vm11 = vcmp.ne.s32.totalorder %v197_v30, %v3155_v27  ;;  %v360_v37 = vperm.slane %v359_v33, 0  ;;  %vm542_vm12 = vmand %vm3167_vm15, %vm187_vm9  ;;  %v2551_v33 = vld [vmem:[%s4613_s1 + $0x14] sm:$0xf] }
  0x1b   :  { %vm202_vm13 = vmpackc.low %vm201_vm11, %vm200_vm4  ;;  %v544_v38 = vsel %vm542_vm12, 1, %v2996_v5  ;;  %90 = vst [vmem:[#allocation4 + $0x8] sm:$0xf] %v2551_v33 }
  0x1c   :  { %v203_v39 = vsel %vm202_vm13, %v3173_v35, 0  ;;  %v204_v40 = vsel %vm202_vm13, %v3175_v36, 0  ;;  %361 = vrot.lane.b32.xlu1 %v360_v37, %s2998_s23  ;;  %422 = vrot.lane.b32.xlu0 %v421_v31, %s2999_s24  ;;  %vm545_vm10 = vcmp.eq.s32.totalorder %v544_v38, 1  ;;  %vm3191_vm8 = vmand %vm725_vm1, %vm726_vm5  ;;  %v2549_v38 = vld [vmem:[%s4613_s1 + $0x4] sm:$0xf]  ;;  %s3018_s23 = smov 33  }
  0x1d   :  { %v207_v42 = vunpack.c.l.b16 %v203_v39  ;;  %v208_v43 = vunpack.c.h.b16 %v203_v39  ;;  %v209_v44 = vunpack.c.l.b16 %v204_v40  ;;  %v210_v45 = vunpack.c.h.b16 %v204_v40  ;;  %vm546_vm4 = vmpackc.low %vm545_vm10, %vm545_vm10  ;;  %v2550_v40 = vld [vmem:[%s4613_s1 + $0xc] sm:$0xf]  ;;  %86 = vst [vmem:[#allocation4] sm:$0xf] %v2549_v38  ;;  %s3014_s1 = smov 21   ;;  %s3019_s24 = smov 32  }
  0x1e   :  { %v547_v46 = vsel %vm546_vm4, 65537, %v2996_v5  ;;  %vm728_vm11 = vmand %vm3191_vm8, %vm182_vm2  ;;  %88 = vst [vmem:[#allocation4 + $0x4] sm:$0xf] %v2550_v40 }
  0x1f   :  { %v211_v47 = vpack.c.b16 %v207_v42, %v207_v42  ;;  %v212_v48 = vpack.c.b16 %v208_v43, %v208_v43  ;;  %v213_v49 = vpack.c.b16 %v209_v44, %v209_v44  ;;  %vm3202_vm1 = vmand %vm728_vm11, %vm4620_vm3  ;;  %v214_v51 = vpack.c.b16 %v210_v45, %v210_v45 }
  0x20   :  { %v548_v52 = vperm.slane %v547_v46, 0  ;;  %vm853_vm10 = vmand %vm3202_vm1, %vm289_vm7 }
  0x21   :  { %219 = vst [vmem:[#allocation2] sm:$0xf] %v211_v47  ;;  %v854_v53 = vsel %vm853_vm10, 1, %v2996_v5  ;;  %vm607_vm5 = vmpackc.low %vm3167_vm15, %vm3167_vm15 }
  0x22   :  { %220 = vst [vmem:[#allocation2 + $0x4] sm:$0xf] %v212_v48  ;;  %vm855_vm12 = vcmp.eq.s32.totalorder %v854_v53, 1  ;;  %vm795_vm13 = vmpackc.low %vm3202_vm1, %vm3202_vm1  ;;  %v608_v55 = vsel %vm607_vm5, 65537, %v2996_v5 }
  0x23   :  { %221 = vst [vmem:[#allocation2 + $0x8] sm:$0xf] %v213_v49  ;;  %vm856_vm4 = vmpackc.low %vm855_vm12, %vm855_vm12  ;;  %v609_v59 = vperm.slane %v608_v55, 0  ;;  %v796_v61 = vsel %vm795_vm13, 65537, %v2996_v5  ;;  %vm4635_vm13 = vcmp.lt.s32.totalorder %v3122_v18, 4 }
  0x24   :  { %222 = vst [vmem:[#allocation2 + $0xc] sm:$0xf] %v214_v51  ;;  %549 = vrot.lane.b32.xlu1 %v548_v52, %s3000_s25  ;;  %v857_v54 = vsel %vm856_vm4, 65537, %v2996_v5  ;;  %vm290_vm11 = vmand %vm3111_vm6, %vm289_vm7  ;;  %v797_v2 = vperm.slane %v796_v61, 0  ;;  %v3386_v61 = vld [vmem:[#allocation4 + $0x8] sm:$0xff]  ;;  %s3020_s25 = smov 127  }
  0x25   :  { %v858_v56 = vperm.slane %v857_v54, 0  ;;  %v291_v57 = vsel %vm290_vm11, 1, %v2996_v5  ;;  %vm477_vm10 = vmand %vm3136_vm14, %vm289_vm7 }
  0x26   :  { %vm292_vm12 = vcmp.eq.s32.totalorder %v291_v57, 1  ;;  %v478_v58 = vsel %vm477_vm10, 1, %v2996_v5  ;;  %vm730_vm5 = vmand %vm3202_vm1, %vm187_vm9 }
  0x27   :  { %859 = vrot.lane.b32.xlu0 %v858_v56, %s3001_s26  ;;  %vm293_vm6 = vmpackc.low %vm292_vm12, %vm292_vm12  ;;  %vm479_vm4 = vcmp.eq.s32.totalorder %v478_v58, 1  ;;  %v732_v60 = vsel %vm730_vm5, 1, %v2996_v5  ;;  %vm1284_vm5 = vcmp.ge.s32.totalorder %v1283_v63, 0  ;;  %s3021_s26 = smov 123  }
  0x28   :  { %v294_v62 = vsel %vm293_vm6, 65537, %v2996_v5  ;;  %vm733_vm14 = vcmp.eq.s32.totalorder %v732_v60, 1  ;;  %vm480_vm11 = vmpackc.low %vm479_vm4, %vm479_vm4  ;;  %vm1285_vm6 = vcmp.lt.s32.totalorder %v1283_v63, 4 }
  0x29   :  { %v295_v0 = vperm.slane %v294_v62, 0  ;;  %vm3242_vm10 = vmpackc.low %vm733_vm14, %vm733_vm14  ;;  %v481_v3 = vsel %vm480_vm11, 65537, %v2996_v5 }
  0x2a   :  { %vm1098_vm1 = vmand %vm3191_vm8, %vm538_vm0  ;;  %v482_v6 = vperm.slane %v481_v3, 0  ;;  %v735_v13 = vsel %vm3242_vm10, 65537, %v2996_v5 }
  0x2b   :  { %296 = vrot.lane.b32.xlu2 %v295_v0, %s3002_s27  ;;  %vm3253_vm12 = vmand %vm1098_vm1, %vm4635_vm13  ;;  %v736_v17 = vperm.slane %v735_v13, 0  ;;  %s3022_s27 = smov 119  }
  0x2c   :  { %610 = vrot.lane.b32.xlu1 %v609_v59, %s3003_s28  ;;  %vm665_vm4 = vmand %vm3167_vm15, %vm289_vm7  ;;  %s3023_s28 = smov 111  }
  0x2d   :  { %vm1100_vm14 = vmand %vm3253_vm12, %vm187_vm9  ;;  %v666_v9 = vsel %vm665_vm4, 1, %v2996_v5 }
  0x2e   :  { %v1102_v7 = vsel %vm1100_vm14, 1, %v2996_v5  ;;  %vm3266_vm11 = vmand %vm1284_vm5, %vm1285_vm6  ;;  %vm667_vm3 = vcmp.eq.s32.totalorder %v666_v9, 1  ;;  %vm4640_vm5 = vcmp.lt.s32.totalorder %v3122_v18, 4  ;;  %vm4643_vm14 = vcmp.ge.s32.totalorder %v3089_v11, 0 }
  0x2f   :  { %798 = vrot.lane.b32.xlu0 %v797_v2, %s3004_s29  ;;  %vm1103_vm1 = vcmp.eq.s32.totalorder %v1102_v7, 1  ;;  %vm1657_vm15 = vmand %vm3266_vm11, %vm538_vm0  ;;  %s3024_s29 = smov 110  }
  0x30   :  { %vm1104_vm13 = vmpackc.low %vm1103_vm1, %vm1103_vm1  ;;  %vm4644_vm1 = vcmp.lt.s32.totalorder %v3089_v11, 4 }
  0x31   :  { %v1105_v10 = vsel %vm1104_vm13, 65537, %v2996_v5  ;;  %vm3281_vm6 = vmand %vm1657_vm15, %vm4640_vm5 }
  0x32   :  { %v1106_v12 = vperm.slane %v1105_v10, 0  ;;  %vm668_vm0 = vmpackc.low %vm667_vm3, %vm667_vm3  ;;  %v3411_v10 = vld [vmem:[#allocation4] sm:$0xff] }
  0x33   :  { %483 = vrot.lane.b32.xlu2 %v482_v6, %s3005_s30  ;;  %vm1782_vm4 = vmand %vm3281_vm6, %vm289_vm7  ;;  %v669_v20 = vsel %vm668_vm0, 65537, %v2996_v5  ;;  %s3025_s30 = smov 126  }
  0x34   :  { %1107 = vrot.lane.b32.xlu1 %v1106_v12, %s3006_s5  ;;  %vm913_vm10 = vmand %vm3191_vm8, %vm4643_vm14  ;;  %v1783_v19 = vsel %vm1782_vm4, 1, %v2996_v5  ;;  %v670_v23 = vperm.slane %v669_v20, 0  ;;  %s3026_s5 = smov 124  }
  0x35   :  { %vm3295_vm15 = vmand %vm913_vm10, %vm4644_vm1 }
  0x36   :  { %vm4647_vm13 = vmmov %vm4643_vm14 }
  0x37   :  { %vm1472_vm3 = vmand %vm3266_vm11, %vm4647_vm13 }
  0x38   :  { %vm1038_vm8 = vmand %vm3295_vm15, %vm289_vm7 }
  0x39   :  { %v1039_v21 = vsel %vm1038_vm8, 1, %v2996_v5  ;;  %vm4648_vm5 = vmmov %vm4644_vm1  ;;  %vm1784_vm1 = vcmp.eq.s32.totalorder %v1783_v19, 1 }
  0x3a   :  { %vm3312_vm14 = vmand %vm1472_vm3, %vm4648_vm5  ;;  %vm1040_vm10 = vcmp.eq.s32.totalorder %v1039_v21, 1 }
  0x3b   :  { %737 = vrot.lane.b32.xlu2 %v736_v17, %s3007_s6  ;;  %vm1041_vm13 = vmpackc.low %vm1040_vm10, %vm1040_vm10  ;;  %s3027_s6 = smov 122  }
  0x3c   :  { %v1042_v24 = vsel %vm1041_vm13, 65537, %v2996_v5  ;;  %vm1474_vm4 = vmand %vm3312_vm14, %vm187_vm9 }
  0x3d   :  { %v1043_v25 = vperm.slane %v1042_v24, 0  ;;  %vm1785_vm0 = vmpackc.low %vm1784_vm1, %vm1784_vm1  ;;  %v1476_v11 = vsel %vm1474_vm4, 1, %v2996_v5 }
  0x3e   :  { %v1786_v28 = vsel %vm1785_vm0, 65537, %v2996_v5  ;;  %vm1477_vm3 = vcmp.eq.s32.totalorder %v1476_v11, 1  ;;  %vm1659_vm5 = vmand %vm3281_vm6, %vm187_vm9 }
  0x3f   :  { %1044 = vrot.lane.b32.xlu1 %v1043_v25, %s3008_s7  ;;  %v1787_v29 = vperm.slane %v1786_v28, 0  ;;  %vm1478_vm8 = vmpackc.low %vm1477_vm3, %vm1477_vm3  ;;  %v1661_v37 = vsel %vm1659_vm5, 1, %v2996_v5  ;;  %s3028_s7 = smov 120  }
  0x40   :  { %v1479_v30 = vsel %vm1478_vm8, 65537, %v2996_v5  ;;  %vm1597_vm10 = vmand %vm3312_vm14, %vm289_vm7  ;;  %vm1662_vm1 = vcmp.eq.s32.totalorder %v1661_v37, 1 }
  0x41   :  { %v1480_v31 = vperm.slane %v1479_v30, 0  ;;  %v1598_v39 = vsel %vm1597_vm10, 1, %v2996_v5  ;;  %vm1663_vm13 = vmpackc.low %vm1662_vm1, %vm1662_vm1 }
  0x42   :  { %vm1599_vm4 = vcmp.eq.s32.totalorder %v1598_v39, 1  ;;  %v1664_v41 = vsel %vm1663_vm13, 65537, %v2996_v5  ;;  %vm980_vm3 = vmpackc.low %vm3295_vm15, %vm3295_vm15 }
  0x43   :  { %671 = vrot.lane.b32.xlu2 %v670_v23, %s3009_s8  ;;  %vm1600_vm0 = vmpackc.low %vm1599_vm4, %vm1599_vm4  ;;  %v1665_v42 = vperm.slane %v1664_v41, 0  ;;  %v981_v45 = vsel %vm980_vm3, 65537, %v2996_v5  ;;  %s3029_s8 = smov 104  }
  0x44   :  { %v1601_v43 = vsel %vm1600_vm0, 65537, %v2996_v5  ;;  %vm1539_vm8 = vmpackc.low %vm3312_vm14, %vm3312_vm14  ;;  %v982_v46 = vperm.slane %v981_v45, 0 }
  0x45   :  { %v1602_v44 = vperm.slane %v1601_v43, 0  ;;  %v1540_v47 = vsel %vm1539_vm8, 65537, %v2996_v5  ;;  %vm915_vm5 = vmand %vm3295_vm15, %vm187_vm9  ;;  %vm4651_vm15 = vcmp.lt.s32.totalorder %v3095_v14, 4 }
  0x46   :  { %v1541_v48 = vperm.slane %v1540_v47, 0  ;;  %983 = vrot.lane.b32.xlu0 %v982_v46, %s3014_s1  ;;  %v917_v49 = vsel %vm915_vm5, 1, %v2996_v5  ;;  %vm1724_vm14 = vmpackc.low %vm3281_vm6, %vm3281_vm6  ;;  %s3042_s1 = smov 96  }
  0x47   :  { %1603 = vrot.lane.b32.xlu1 %v1602_v44, %s3013_s20  ;;  %vm918_vm10 = vcmp.eq.s32.totalorder %v917_v49, 1  ;;  %v1725_v52 = vsel %vm1724_vm14, 65537, %v2996_v5  ;;  %vm1287_vm13 = vmand %vm3266_vm11, %vm182_vm2  ;;  %s3041_s20 = smov 91  }
  0x48   :  { %vm919_vm1 = vmpackc.low %vm918_vm10, %vm918_vm10  ;;  %v1726_v53 = vperm.slane %v1725_v52, 0 }
  0x49   :  { %v920_v50 = vsel %vm919_vm1, 65537, %v2996_v5  ;;  %vm3372_vm4 = vmand %vm1287_vm13, %vm4651_vm15 }
  0x4a   :  { %v921_v51 = vperm.slane %v920_v50, 0  ;;  %vm1289_vm6 = vmand %vm3372_vm4, %vm187_vm9 }
  0x4b   :  { %1788 = vrot.lane.b32.xlu2 %v1787_v29, %s3010_s9  ;;  %v1291_v55 = vsel %vm1289_vm6, 1, %v2996_v5  ;;  %vm1354_vm2 = vmpackc.low %vm3372_vm4, %vm3372_vm4  ;;  %s3030_s9 = smov 34  }
  0x4c   :  { %vm1292_vm0 = vcmp.eq.s32.totalorder %v1291_v55, 1  ;;  %v1355_v14 = vsel %vm1354_vm2, 65537, %v2996_v5 }
  0x4d   :  { %vm1293_vm11 = vmpackc.low %vm1292_vm0, %vm1292_vm0  ;;  %v1356_v56 = vperm.slane %v1355_v14, 0 }
  0x4e   :  { %922 = vrot.lane.b32.xlu0 %v921_v51, %s3016_s22  ;;  %v1294_v57 = vsel %vm1293_vm11, 65537, %v2996_v5  ;;  %s3044_s22 = smov 92  }
  0x4f   :  { %1542 = vrot.lane.b32.xlu1 %v1541_v48, %s3015_s21  ;;  %v1295_v58 = vperm.slane %v1294_v57, 0  ;;  %s3043_s21 = smov 87  }
  0x53   :  { %1481 = vrot.lane.b32.xlu2 %v1480_v31, %s3011_s10  ;;  %s3031_s10 = smov 26  }
  0x56   :  { %1357 = vrot.lane.b32.xlu0 %v1356_v56, %s3018_s23  ;;  %s3046_s23 = smov 88  }
  0x57   :  { %1727 = vrot.lane.b32.xlu1 %v1726_v53, %s3017_s0  ;;  %s3045_s0 = smov 102  }
  0x5b   :  { %1666 = vrot.lane.b32.xlu2 %v1665_v42, %s3012_s19  ;;  %s3040_s19 = smov 86  }
  0x5f   :  { %1296 = vrot.lane.b32.xlu1 %v1295_v58, %s3019_s24  ;;  %s3047_s24 = smov 94  }
  0x85   :  { %v297_v34 = vpop.permute.xlu2 %296 }
  0x86   :  { %v233_v15 = vpop.permute.xlu0 %232 }
  0x87   :  { %v234_v59 = vunpack.c.l.b16 %v233_v15  ;;  %v235_v60 = vunpack.c.h.b16 %v233_v15 }
  0x89   :  { %vm238_vm9 = vcmp.ne.s32.totalorder %v234_v59, %v3152_v26  ;;  %vm239_vm3 = vcmp.ne.s32.totalorder %v235_v60, %v3155_v27 }
  0x8a   :  { %vm3390_vm8 = vmpackc.low %vm239_vm3, %vm238_vm9 }
  0x8b   :  { %v3397_v63 = vsel %vm3390_vm8, %v3175_v36, 0  ;;  %v3402_v0 = vsel %vm3390_vm8, %v3386_v61, 0  ;;  %v241_v53 = vsel %vm3390_vm8, %v3173_v35, 0  ;;  %v242_v55 = vsel %vm3390_vm8, %v3411_v10, 0 }
  0x8c   :  { %v255_v1 = vunpack.c.h.b16 %v3397_v63  ;;  %v256_v2 = vunpack.c.h.b16 %v3402_v0  ;;  %v251_v57 = vunpack.c.h.b16 %v241_v53  ;;  %v252_v58 = vunpack.c.h.b16 %v242_v55 }
  0x8d   :  { %v249_v15 = vunpack.c.l.b16 %v241_v53  ;;  %v250_v59 = vunpack.c.l.b16 %v242_v55  ;;  %v3477_v60 = vpop.permute.xlu2 %483 }
  0x8e   :  { %v3406_v3 = vpop.permute.xlu1 %361  ;;  %v423_v6 = vpop.permute.xlu0 %422  ;;  %v260_v7 = vpack.c.b16 %v256_v2, %v255_v1  ;;  %v258_v2 = vpack.c.b16 %v252_v58, %v251_v57 }
  0x8f   :  { %v424_v8 = vunpack.c.l.b16 %v423_v6  ;;  %v425_v9 = vunpack.c.h.b16 %v423_v6  ;;  %v257_v6 = vpack.c.b16 %v250_v59, %v249_v15 }
  0x90   :  { %267 = vrot.lane.b32.xlu2 %v260_v7, %s3020_s25 }
  0x91   :  { %vm428_vm5 = vcmp.ne.s32.totalorder %v424_v8, %v3152_v26  ;;  %vm429_vm10 = vcmp.ne.s32.totalorder %v425_v9, %v3155_v27 }
  0x92   :  { %vm3413_vm1 = vmpackc.low %vm429_vm10, %vm428_vm5 }
  0x93   :  { %v3420_v13 = vsel %vm3413_vm1, %v3173_v35, 0  ;;  %v3425_v16 = vsel %vm3413_vm1, %v3411_v10, 0  ;;  %v433_v9 = vsel %vm3413_vm1, %v3175_v36, 0 }
  0x94   :  { %v441_v17 = vunpack.c.h.b16 %v3420_v13  ;;  %v442_v18 = vunpack.c.h.b16 %v3425_v16 }
  0x96   :  { %v3429_v19 = vpop.permute.xlu1 %549  ;;  %v448_v20 = vpack.c.b16 %v442_v18, %v441_v17  ;;  %v434_v17 = vsel %vm3413_vm1, %v3386_v61, 0  ;;  %v298_v18 = vunpack.c.l.b16 %v297_v34 }
  0x98   :  { %453 = vrot.lane.b32.xlu2 %v448_v20, %s3021_s26  ;;  %v299_v20 = vunpack.c.h.b16 %v297_v34  ;;  %vm302_vm8 = vcmp.ne.s32.totalorder %v298_v18, %v3152_v26 }
  0x99   :  { %v860_v21 = vpop.permute.xlu0 %859 }
  0x9a   :  { %v861_v37 = vunpack.c.l.b16 %v860_v21  ;;  %v862_v38 = vunpack.c.h.b16 %v860_v21  ;;  %v253_v21 = vunpack.c.l.b16 %v3397_v63  ;;  %vm303_vm5 = vcmp.ne.s32.totalorder %v299_v20, %v3155_v27  ;;  %v3512_v63 = vpop.permute.xlu2 %737 }
  0x9b   :  { %vm3514_vm10 = vmpackc.low %vm303_vm5, %vm302_vm8 }
  0x9c   :  { %vm865_vm11 = vcmp.ne.s32.totalorder %v861_v37, %v3152_v26  ;;  %vm866_vm9 = vcmp.ne.s32.totalorder %v862_v38, %v3155_v27 }
  0x9d   :  { %vm3473_vm3 = vmpackc.low %vm866_vm9, %vm865_vm11 }
  0x9e   :  { %v611_v22 = vpop.permute.xlu1 %610  ;;  %v3482_v62 = vsel %vm3473_vm3, %v3175_v36, 0  ;;  %v871_v1 = vsel %vm3473_vm3, %v3386_v61, 0  ;;  %v3504_v12 = vsel %vm3473_vm3, %v3173_v35, 0 }
  0x9f   :  { %v612_v23 = vunpack.c.l.b16 %v611_v22  ;;  %v613_v24 = vunpack.c.h.b16 %v611_v22  ;;  %v880_v7 = vunpack.c.l.b16 %v3482_v62  ;;  %v881_v8 = vunpack.c.l.b16 %v871_v1 }
  0xa0   :  { %v254_v22 = vunpack.c.l.b16 %v3402_v0  ;;  %v882_v53 = vunpack.c.h.b16 %v3482_v62  ;;  %v883_v55 = vunpack.c.h.b16 %v871_v1  ;;  %v485_v62 = vunpack.c.l.b16 %v3477_v60 }
  0xa1   :  { %vm616_vm14 = vcmp.ne.s32.totalorder %v612_v23, %v3152_v26  ;;  %vm617_vm13 = vcmp.ne.s32.totalorder %v613_v24, %v3155_v27  ;;  %v799_v25 = vpop.permute.xlu0 %798  ;;  %v443_v23 = vunpack.c.l.b16 %v433_v9  ;;  %v444_v24 = vunpack.c.l.b16 %v434_v17 }
  0xa2   :  { %vm618_vm15 = vmpackc.low %vm617_vm13, %vm616_vm14  ;;  %v800_v11 = vunpack.c.l.b16 %v799_v25  ;;  %v801_v28 = vunpack.c.h.b16 %v799_v25  ;;  %v886_v25 = vpack.c.b16 %v881_v8, %v880_v7  ;;  %v259_v0 = vpack.c.b16 %v254_v22, %v253_v21 }
  0xa3   :  { %v3435_v29 = vsel %vm618_vm15, %v3173_v35, 0  ;;  %v3438_v30 = vsel %vm618_vm15, %v3411_v10, 0  ;;  %v3449_v40 = vsel %vm618_vm15, %v3175_v36, 0  ;;  %v3452_v41 = vsel %vm618_vm15, %v3386_v61, 0 }
  0xa4   :  { %vm804_vm6 = vcmp.ne.s32.totalorder %v800_v11, %v3152_v26  ;;  %vm805_vm0 = vcmp.ne.s32.totalorder %v801_v28, %v3155_v27  ;;  %v627_v31 = vunpack.c.l.b16 %v3435_v29  ;;  %v628_v33 = vunpack.c.l.b16 %v3438_v30 }
  0xa5   :  { %vm3444_vm2 = vmpackc.low %vm805_vm0, %vm804_vm6  ;;  %v633_v49 = vunpack.c.h.b16 %v3449_v40  ;;  %v634_v50 = vunpack.c.h.b16 %v3452_v41  ;;  %v3509_v11 = vsel %vm3473_vm3, %v3411_v10, 0  ;;  %v449_v28 = vpack.c.b16 %v444_v24, %v443_v23 }
  0xa6   :  { %v635_v42 = vpack.c.b16 %v628_v33, %v627_v31  ;;  %v809_v43 = vsel %vm3444_vm2, %v3175_v36, 0  ;;  %v810_v44 = vsel %vm3444_vm2, %v3386_v61, 0  ;;  %v876_v33 = vunpack.c.l.b16 %v3504_v12 }
  0xa7   :  { %v821_v45 = vunpack.c.h.b16 %v809_v43  ;;  %v822_v46 = vunpack.c.h.b16 %v810_v44  ;;  %v819_v47 = vunpack.c.l.b16 %v809_v43  ;;  %v820_v48 = vunpack.c.l.b16 %v810_v44 }
  0xa8   :  { %639 = vrot.lane.b32.xlu2 %v635_v42, %s3022_s27  ;;  %v638_v56 = vpack.c.b16 %v634_v50, %v633_v49  ;;  %v877_v34 = vunpack.c.l.b16 %v3509_v11  ;;  %v629_v37 = vunpack.c.h.b16 %v3435_v29  ;;  %v630_v38 = vunpack.c.h.b16 %v3438_v30 }
  0xa9   :  { %v826_v51 = vpack.c.b16 %v822_v46, %v821_v45  ;;  %v825_v52 = vpack.c.b16 %v820_v48, %v819_v47  ;;  %v363_v42 = vunpack.c.l.b16 %v3406_v3  ;;  %v364_v43 = vunpack.c.h.b16 %v3406_v3  ;;  %v3543_v48 = vpop.permute.xlu2 %671 }
  0xaa   :  { %v439_v44 = vunpack.c.l.b16 %v3420_v13  ;;  %v440_v45 = vunpack.c.l.b16 %v3425_v16  ;;  %v3531_v46 = vsel %vm3514_vm10, %v3175_v36, 0  ;;  %v3536_v47 = vsel %vm3514_vm10, %v3386_v61, 0 }
  0xab   :  { %833 = vrot.lane.b32.xlu1 %v826_v51, %s3023_s28  ;;  %831 = vrot.lane.b32.xlu0 %v825_v52, %s3023_s28  ;;  %v884_v29 = vpack.c.b16 %v877_v34, %v876_v33  ;;  %v636_v30 = vpack.c.b16 %v630_v38, %v629_v37  ;;  %v317_v3 = vunpack.c.l.b16 %v3531_v46  ;;  %v318_v13 = vunpack.c.l.b16 %v3536_v47 }
  0xac   :  { %vm367_vm1 = vcmp.ne.s32.totalorder %v363_v42, %v3152_v26  ;;  %vm368_vm14 = vcmp.ne.s32.totalorder %v364_v43, %v3155_v27  ;;  %v447_v16 = vpack.c.b16 %v440_v45, %v439_v44  ;;  %v445_v51 = vunpack.c.h.b16 %v433_v9 }
  0xad   :  { %vm3547_vm13 = vmpackc.low %vm368_vm14, %vm367_vm1  ;;  %v323_v50 = vpack.c.b16 %v318_v13, %v317_v3  ;;  %v446_v52 = vunpack.c.h.b16 %v434_v17  ;;  %v887_v58 = vpack.c.b16 %v883_v55, %v882_v53  ;;  %v486_v1 = vunpack.c.h.b16 %v3477_v60 }
  0xae   :  { %v3555_v14 = vsel %vm3547_vm13, %v3173_v35, 0  ;;  %v632_v7 = vunpack.c.l.b16 %v3452_v41  ;;  %v878_v8 = vunpack.c.h.b16 %v3504_v12  ;;  %v879_v9 = vunpack.c.h.b16 %v3509_v11  ;;  %vm1412_vm14 = vmand %vm3372_vm4, %vm289_vm7 }
  0xaf   :  { %v450_v57 = vpack.c.b16 %v446_v52, %v445_v51  ;;  %v378_v15 = vunpack.c.l.b16 %v3555_v14  ;;  %vm489_vm15 = vcmp.ne.s32.totalorder %v485_v62, %v3152_v26  ;;  %vm490_vm6 = vcmp.ne.s32.totalorder %v486_v1, %v3155_v27  ;;  %v1108_v52 = vpop.permute.xlu1 %1107 }
  0xb0   :  { %645 = vrot.lane.b32.xlu2 %v638_v56, %s3022_s27  ;;  %v3560_v56 = vsel %vm3547_vm13, %v3411_v10, 0  ;;  %v372_v60 = vsel %vm3547_vm13, %v3175_v36, 0  ;;  %v373_v18 = vsel %vm3547_vm13, %v3386_v61, 0  ;;  %v306_v41 = vsel %vm3514_vm10, %v3411_v10, 0  ;;  %vm3590_vm0 = vmpackc.low %vm490_vm6, %vm489_vm15 }
  0xb1   :  { %v379_v59 = vunpack.c.l.b16 %v3560_v56  ;;  %v885_v21 = vpack.c.b16 %v879_v9, %v878_v8  ;;  %v384_v23 = vunpack.c.h.b16 %v372_v60  ;;  %v385_v24 = vunpack.c.h.b16 %v373_v18  ;;  %vm1223_vm13 = vmand %vm3253_vm12, %vm289_vm7 }
  0xb2   :  { %v316_v12 = vunpack.c.h.b16 %v306_v41  ;;  %v552_v31 = vunpack.c.h.b16 %v3429_v19  ;;  %v3601_v33 = vsel %vm3590_vm0, %v3175_v36, 0  ;;  %v3606_v34 = vsel %vm3590_vm0, %v3386_v61, 0 }
  0xb3   :  { %263 = vrot.lane.b32.xlu1 %v258_v2, %s3020_s25  ;;  %261 = vrot.lane.b32.xlu0 %v257_v6, %s3020_s25  ;;  %v3569_v2 = vpop.permute.xlu2 %1788  ;;  %v631_v6 = vunpack.c.l.b16 %v3449_v40  ;;  %v386_v17 = vpack.c.b16 %v379_v59, %v378_v15  ;;  %v305_v40 = vsel %vm3514_vm10, %v3173_v35, 0  ;;  %v389_v37 = vpack.c.b16 %v385_v24, %v384_v23 }
  0xb4   :  { %v313_v11 = vunpack.c.l.b16 %v305_v40  ;;  %v504_v44 = vunpack.c.l.b16 %v3601_v33  ;;  %vm556_vm9 = vcmp.ne.s32.totalorder %v552_v31, %v3155_v27  ;;  %v383_v3 = vunpack.c.l.b16 %v373_v18 }
  0xb5   :  { %v637_v20 = vpack.c.b16 %v632_v7, %v631_v6  ;;  %v319_v13 = vunpack.c.h.b16 %v3531_v46  ;;  %v492_v46 = vsel %vm3590_vm0, %v3173_v35, 0  ;;  %v1109_v62 = vunpack.c.l.b16 %v1108_v52 }
  0xb6   :  { %v502_v15 = vunpack.c.h.b16 %v492_v46  ;;  %v1110_v1 = vunpack.c.h.b16 %v1108_v52  ;;  %v380_v6 = vunpack.c.h.b16 %v3555_v14  ;;  %v381_v7 = vunpack.c.h.b16 %v3560_v56 }
  0xb7   :  { %vm1113_vm8 = vcmp.ne.s32.totalorder %v1109_v62, %v3152_v26  ;;  %vm273_vm1 = vcmask 1039360   ;;  %v3663_v23 = vpop.permute.xlu1 %1044  ;;  %v3691_v54 = vsel %vm3444_vm2, %v3173_v35, 0  ;;  %vm463_vm4 = vcmask 1006592  }
  0xb8   :  { %892 = vrot.lane.b32.xlu2 %v886_v25, %s3024_s29  ;;  %v315_v25 = vunpack.c.h.b16 %v305_v40  ;;  %vm1114_vm5 = vcmp.ne.s32.totalorder %v1110_v1, %v3155_v27  ;;  %v387_v14 = vpack.c.b16 %v381_v7, %v380_v6  ;;  %v1224_v45 = vsel %vm1223_vm13, 1, %v2996_v5  ;;  %v3733_v7 = vpop.permute.xlu0 %983 }
  0xb9   :  { %vm3657_vm10 = vmpackc.low %vm1114_vm5, %vm1113_vm8  ;;  %v507_v39 = vunpack.c.h.b16 %v3606_v34  ;;  %v739_v52 = vunpack.c.l.b16 %v3512_v63  ;;  %vm900_vm13 = vcmask 900096  }
  0xba   :  { %v322_v42 = vpack.c.b16 %v316_v12, %v315_v25  ;;  %v3727_v62 = vsel %vm3657_vm10, %v3411_v10, 0 }
  0xbb   :  { %265 = vrot.lane.b32.xlu1 %v259_v0, %s3020_s25  ;;  %455 = vrot.lane.b32.xlu0 %v449_v28, %s3021_s26  ;;  %v314_v0 = vunpack.c.l.b16 %v306_v41  ;;  %v551_v28 = vunpack.c.l.b16 %v3429_v19  ;;  %v3608_v38 = vpop.permute.xlu2 %1481  ;;  %v505_v19 = vunpack.c.l.b16 %v3606_v34  ;;  %s3048_s25 = smov 103  }
  0xbd   :  { %v321_v43 = vpack.c.b16 %v314_v0, %v313_v11  ;;  %vm555_vm11 = vcmp.ne.s32.totalorder %v551_v28, %v3152_v26  ;;  %v3669_v11 = vsel %vm3657_vm10, %v3175_v36, 0  ;;  %v3674_v0 = vsel %vm3657_vm10, %v3386_v61, 0 }
  0xbe   :  { %vm3617_vm3 = vmpackc.low %vm556_vm9, %vm555_vm11 }
  0xbf   :  { %v3626_v49 = vsel %vm3617_vm3, %v3173_v35, 0  ;;  %v560_v9 = vsel %vm3617_vm3, %v3175_v36, 0 }
  0xc0   :  { %888 = vrot.lane.b32.xlu2 %v884_v29, %s3024_s29  ;;  %v510_v29 = vpack.c.b16 %v505_v19, %v504_v44  ;;  %v572_v40 = vunpack.c.h.b16 %v560_v9  ;;  %v570_v24 = vunpack.c.l.b16 %v560_v9  ;;  %v3696_v19 = vsel %vm3444_vm2, %v3411_v10, 0 }
  0xc1   :  { %vm1225_vm2 = vcmp.eq.s32.totalorder %v1224_v45, 1  ;;  %v1130_v45 = vunpack.c.h.b16 %v3669_v11 }
  0xc2   :  { %vm1226_vm6 = vmpackc.low %vm1225_vm2, %vm1225_vm2  ;;  %vm839_vm2 = vcmask 908288  }
  0xc3   :  { %451 = vrot.lane.b32.xlu1 %v447_v16, %s3021_s26  ;;  %641 = vrot.lane.b32.xlu0 %v636_v30, %s3022_s27  ;;  %v382_v30 = vunpack.c.l.b16 %v372_v60  ;;  %v320_v16 = vunpack.c.h.b16 %v3536_v47  ;;  %v3634_v51 = vpop.permute.xlu2 %1666  ;;  %v493_v47 = vsel %vm3590_vm0, %v3411_v10, 0  ;;  %v561_v60 = vsel %vm3617_vm3, %v3386_v61, 0 }
  0xc4   :  { %v503_v59 = vunpack.c.h.b16 %v493_v47  ;;  %v573_v41 = vunpack.c.h.b16 %v561_v60  ;;  %v501_v22 = vunpack.c.l.b16 %v493_v47  ;;  %v571_v12 = vunpack.c.l.b16 %v561_v60 }
  0xc5   :  { %v388_v53 = vpack.c.b16 %v383_v3, %v382_v30  ;;  %v324_v55 = vpack.c.b16 %v320_v16, %v319_v13  ;;  %v817_v3 = vunpack.c.h.b16 %v3691_v54  ;;  %v818_v13 = vunpack.c.h.b16 %v3696_v19 }
  0xc6   :  { %v577_v28 = vpack.c.b16 %v573_v41, %v572_v40  ;;  %v576_v44 = vpack.c.b16 %v571_v12, %v570_v24  ;;  %v506_v16 = vunpack.c.h.b16 %v3601_v33  ;;  %vm743_vm0 = vcmp.ne.s32.totalorder %v739_v52, %v3152_v26  ;;  %v3786_v52 = vld [vmem:[#allocation3 + $0x8] sm:$0xff] }
  0xc7   :  { %v815_v40 = vunpack.c.l.b16 %v3691_v54  ;;  %v1047_v12 = vunpack.c.h.b16 %v3663_v23 }
  0xc8   :  { %329 = vrot.lane.b32.xlu2 %v323_v50, %s3025_s30  ;;  %v3631_v50 = vsel %vm3617_vm3, %v3411_v10, 0  ;;  %vm651_vm3 = vcmask 973824  }
  0xc9   :  { %vm1051_vm5 = vcmp.ne.s32.totalorder %v1047_v12, %v3155_v27 }
  0xcb   :  { %457 = vrot.lane.b32.xlu1 %v450_v57, %s3021_s26  ;;  %894 = vrot.lane.b32.xlu0 %v887_v58, %s3024_s29  ;;  %v566_v57 = vunpack.c.l.b16 %v3626_v49  ;;  %v567_v58 = vunpack.c.l.b16 %v3631_v50 }
  0xcd   :  { %v574_v8 = vpack.c.b16 %v567_v58, %v566_v57  ;;  %v511_v57 = vpack.c.b16 %v507_v39, %v506_v16  ;;  %v1227_v58 = vsel %vm1226_vm6, 65537, %v2996_v5  ;;  %v674_v16 = vunpack.c.h.b16 %v3543_v48 }
  0xce   :  { %v1228_v6 = vperm.slane %v1227_v58, 0 }
  0xd0   :  { %390 = vrot.lane.b32.xlu2 %v386_v17, %s3026_s5  ;;  %v509_v17 = vpack.c.b16 %v503_v59, %v502_v15  ;;  %v569_v15 = vunpack.c.h.b16 %v3631_v50  ;;  %v3722_v59 = vsel %vm3657_vm10, %v3173_v35, 0  ;;  %vm1165_vm10 = vmpackc.low %vm3253_vm12, %vm3253_vm12 }
  0xd1   :  { %v1124_v50 = vunpack.c.l.b16 %v3722_v59 }
  0xd3   :  { %643 = vrot.lane.b32.xlu1 %v637_v20, %s3022_s27  ;;  %890 = vrot.lane.b32.xlu0 %v885_v21, %s3024_s29  ;;  %v500_v21 = vunpack.c.l.b16 %v492_v46  ;;  %v3705_v46 = vpop.permute.xlu1 %1603 }
  0xd5   :  { %v508_v31 = vpack.c.b16 %v501_v22, %v500_v21  ;;  %v816_v21 = vunpack.c.l.b16 %v3696_v19 }
  0xd8   :  { %396 = vrot.lane.b32.xlu2 %v389_v37, %s3026_s5  ;;  %v1128_v37 = vunpack.c.l.b16 %v3669_v11 }
  0xdb   :  { %327 = vrot.lane.b32.xlu1 %v322_v42, %s3025_s30  ;;  %325 = vrot.lane.b32.xlu0 %v321_v43, %s3025_s30  ;;  %v1129_v42 = vunpack.c.l.b16 %v3674_v0  ;;  %v1413_v43 = vsel %vm1412_vm14, 1, %v2996_v5 }
  0xdc   :  { %vm1414_vm15 = vcmp.eq.s32.totalorder %v1413_v43, 1 }
  0xdd   :  { %v1134_v30 = vpack.c.b16 %v1129_v42, %v1128_v37  ;;  %vm1415_vm7 = vmpackc.low %vm1414_vm15, %vm1414_vm15  ;;  %v3764_v37 = vpop.permute.xlu0 %922  ;;  %vm678_vm15 = vcmp.ne.s32.totalorder %v674_v16, %v3155_v27 }
  0xde   :  { %v1416_v33 = vsel %vm1415_vm7, 65537, %v2996_v5  ;;  %v925_v16 = vunpack.c.h.b16 %v3764_v37 }
  0xdf   :  { %v1417_v34 = vperm.slane %v1416_v33, 0 }
  0xe0   :  { %516 = vrot.lane.b32.xlu2 %v510_v29, %s3027_s6 }
  0xe3   :  { %394 = vrot.lane.b32.xlu1 %v388_v53, %s3026_s5  ;;  %331 = vrot.lane.b32.xlu0 %v324_v55, %s3025_s30  ;;  %v740_v53 = vunpack.c.h.b16 %v3512_v63  ;;  %v824_v55 = vpack.c.b16 %v818_v13, %v817_v3  ;;  %v568_v63 = vunpack.c.h.b16 %v3626_v49  ;;  %v3735_v49 = vpop.permute.xlu1 %1542  ;;  %v673_v13 = vunpack.c.l.b16 %v3543_v48 }
  0xe5   :  { %vm744_vm11 = vcmp.ne.s32.totalorder %v740_v53, %v3155_v27  ;;  %v575_v9 = vpack.c.b16 %v569_v15, %v568_v63  ;;  %vm677_vm12 = vcmp.ne.s32.totalorder %v673_v13, %v3152_v26  ;;  %v924_v13 = vunpack.c.l.b16 %v3764_v37 }
  0xe6   :  { %vm3729_vm9 = vmpackc.low %vm744_vm11, %vm743_vm0  ;;  %vm337_vm11 = vcmask 1031168  }
  0xe7   :  { %v3742_v60 = vsel %vm3729_vm9, %v3175_v36, 0  ;;  %v746_v22 = vsel %vm3729_vm9, %v3173_v35, 0  ;;  %v747_v24 = vsel %vm3729_vm9, %v3411_v10, 0  ;;  %vm3811_vm7 = vmpackc.low %vm678_vm15, %vm677_vm12 }
  0xe8   :  { %578 = vrot.lane.b32.xlu2 %v574_v8, %s3028_s7  ;;  %v1125_v8 = vunpack.c.l.b16 %v3727_v62  ;;  %v757_v54 = vunpack.c.h.b16 %v747_v24  ;;  %v758_v33 = vunpack.c.l.b16 %v3742_v60 }
  0xea   :  { %v268_v18 = vpop.permute.xlu2 %267 }
  0xeb   :  { %514 = vrot.lane.b32.xlu1 %v509_v17, %s3027_s6  ;;  %392 = vrot.lane.b32.xlu0 %v387_v14, %s3026_s5  ;;  %v272_v20 = vrot.slane %v268_v18, 4  ;;  %v3747_v14 = vsel %vm3729_vm9, %v3386_v61, 0  ;;  %v3766_v42 = vpop.permute.xlu1 %1727 }
  0xec   :  { %v761_v36 = vunpack.c.h.b16 %v3747_v14  ;;  %v759_v15 = vunpack.c.l.b16 %v3747_v14 }
  0xed   :  { %v277_v25 = vsel %vm273_vm1, %v268_v18, %v272_v20  ;;  %v1132_v18 = vpack.c.b16 %v1125_v8, %v1124_v50  ;;  %v760_v20 = vunpack.c.h.b16 %v3742_v60 }
  0xee   :  { %285 = vst [vmem:[#allocation2 + $0x1c] sm:$0xf] %v277_v25  ;;  %v1046_v25 = vunpack.c.l.b16 %v3663_v23  ;;  %v754_v23 = vunpack.c.l.b16 %v746_v22 }
  0xf0   :  { %584 = vrot.lane.b32.xlu2 %v577_v28, %s3028_s7  ;;  %v765_v28 = vpack.c.b16 %v761_v36, %v760_v20  ;;  %vm1050_vm8 = vcmp.ne.s32.totalorder %v1046_v25, %v3152_v26  ;;  %v985_v20 = vunpack.c.l.b16 %v3733_v7  ;;  %v986_v36 = vunpack.c.h.b16 %v3733_v7 }
  0xf1   :  { %vm3778_vm14 = vmpackc.low %vm1051_vm5, %vm1050_vm8  ;;  %vm3881_vm8 = vcmp.ne.s32.totalorder %v924_v13, %v3152_v26  ;;  %vm929_vm5 = vcmp.ne.s32.totalorder %v925_v16, %v3155_v27 }
  0xf2   :  { %v454_v32 = vpop.permute.xlu2 %453  ;;  %v3791_v4 = vsel %vm3778_vm14, %v3786_v52, 0  ;;  %v3796_v53 = vsel %vm3778_vm14, %v3386_v61, 0  ;;  %v3825_v8 = vsel %vm3778_vm14, %v3411_v10, 0  ;;  %vm989_vm6 = vcmp.ne.s32.totalorder %v985_v20, %v3152_v26 }
  0xf3   :  { %582 = vrot.lane.b32.xlu1 %v576_v44, %s3028_s7  ;;  %512 = vrot.lane.b32.xlu0 %v508_v31, %s3027_s6  ;;  %v460_v29 = vrot.slane %v454_v32, 4  ;;  %v823_v31 = vpack.c.b16 %v816_v21, %v815_v40  ;;  %v756_v44 = vunpack.c.h.b16 %v746_v22  ;;  %v1067_v58 = vunpack.c.h.b16 %v3791_v4 }
  0xf4   :  { %v1068_v63 = vunpack.c.h.b16 %v3796_v53  ;;  %v3837_v40 = vsel %vm3811_vm7, %v3386_v61, 0  ;;  %v1126_v21 = vunpack.c.h.b16 %v3722_v59  ;;  %v1127_v22 = vunpack.c.h.b16 %v3727_v62 }
  0xf5   :  { %v465_v47 = vsel %vm463_vm4, %v454_v32, %v460_v29  ;;  %v755_v32 = vunpack.c.l.b16 %v747_v24  ;;  %v1131_v29 = vunpack.c.h.b16 %v3674_v0  ;;  %v1166_v0 = vsel %vm1165_vm10, 65537, %v2996_v5  ;;  %v3800_v5 = vpop.permute.xlu0 %1357 }
  0xf6   :  { %473 = vst [vmem:[#allocation2 + $0x44] sm:$0xf] %v465_v47  ;;  %v681_v59 = vsel %vm3811_vm7, %v3411_v10, 0  ;;  %vm990_vm0 = vcmp.ne.s32.totalorder %v986_v36, %v3155_v27  ;;  %vm402_vm10 = vcmask 1014784  }
  0xf7   :  { %v762_v39 = vpack.c.b16 %v755_v32, %v754_v23  ;;  %v1135_v11 = vpack.c.b16 %v1131_v29, %v1130_v45  ;;  %v691_v29 = vunpack.c.h.b16 %v681_v59  ;;  %vm3861_vm9 = vmpackc.low %vm990_vm0, %vm989_vm6 }
  0xf8   :  { %1140 = vrot.lane.b32.xlu2 %v1134_v30, %s3029_s8  ;;  %v763_v30 = vpack.c.b16 %v757_v54, %v756_v44  ;;  %v3878_v37 = vsel %vm3861_vm9, %v3411_v10, 0  ;;  %v3899_v20 = vsel %vm3861_vm9, %v3386_v61, 0 }
  0xfb   :  { %829 = vrot.lane.b32.xlu1 %v824_v55, %s3023_s28  ;;  %518 = vrot.lane.b32.xlu0 %v511_v57, %s3027_s6  ;;  %v3802_v55 = vpop.permute.xlu1 %1296  ;;  %v1167_v57 = vperm.slane %v1166_v0, 0 }
 0x100   :  { %1418 = vrot.lane.b32.xlu2 %v1417_v34, %s3030_s9 }
 0x102   :  { %v640_v17 = vpop.permute.xlu2 %639 }
 0x103   :  { %v647_v56 = vrot.slane %v640_v17, 4  ;;  %1229 = vrot.lane.b32.xlu1 %v1228_v6, %s3031_s10  ;;  %580 = vrot.lane.b32.xlu0 %v575_v9, %s3028_s7  ;;  %v3815_v6 = vld [vmem:[#allocation3] sm:$0xff]  ;;  %v1072_v9 = vpack.c.b16 %v1068_v63, %v1067_v58 }
 0x104   :  { %v3820_v50 = vsel %vm3778_vm14, %v3815_v6, 0  ;;  %v680_v7 = vsel %vm3811_vm7, %v3815_v6, 0  ;;  %vm3905_vm14 = vmpackc.low %vm929_vm5, %vm3881_vm8 }
 0x105   :  { %v652_v41 = vsel %vm651_vm3, %v640_v17, %v647_v56  ;;  %v764_v17 = vpack.c.b16 %v759_v15, %v758_v33  ;;  %v1061_v14 = vunpack.c.l.b16 %v3820_v50  ;;  %v1062_v56 = vunpack.c.l.b16 %v3825_v8 }
 0x106   :  { %660 = vst [vmem:[#allocation2 + $0x70] sm:$0xf] %v652_v41  ;;  %v690_v45 = vunpack.c.h.b16 %v680_v7  ;;  %v1066_v33 = vunpack.c.l.b16 %v3796_v53  ;;  %v3873_v15 = vsel %vm3861_vm9, %v3815_v6, 0  ;;  %v1063_v3 = vunpack.c.h.b16 %v3820_v50 }
 0x107   :  { %v1069_v54 = vpack.c.b16 %v1062_v56, %v1061_v14  ;;  %v1000_v56 = vunpack.c.l.b16 %v3873_v15  ;;  %v3939_v50 = vsel %vm3905_vm14, %v3815_v6, 0 }
 0x108   :  { %1136 = vrot.lane.b32.xlu2 %v1132_v18, %s3029_s8  ;;  %v3832_v18 = vsel %vm3811_vm7, %v3786_v52, 0  ;;  %v697_v63 = vpack.c.b16 %v691_v29, %v690_v45  ;;  %vm524_vm7 = vcmask 998400  }
 0x10a   :  { %v646_v43 = vpop.permute.xlu2 %645 }
 0x10b   :  { %v650_v35 = vrot.slane %v646_v43, 4  ;;  %772 = vrot.lane.b32.xlu1 %v765_v28, %s3032_s11  ;;  %827 = vrot.lane.b32.xlu0 %v823_v31, %s3023_s28  ;;  %v694_v28 = vunpack.c.h.b16 %v3832_v18  ;;  %v695_v31 = vunpack.c.h.b16 %v3837_v40 }
 0x10d   :  { %v655_v19 = vsel %vm651_vm3, %v646_v43, %v650_v35  ;;  %v699_v23 = vpack.c.b16 %v695_v31, %v694_v28  ;;  %v1007_v28 = vunpack.c.h.b16 %v3899_v20  ;;  %v692_v31 = vunpack.c.l.b16 %v3832_v18 }
 0x10e   :  { %663 = vst [vmem:[#allocation2 + $0x7c] sm:$0xf] %v655_v19  ;;  %v1133_v19 = vpack.c.b16 %v1127_v22, %v1126_v21  ;;  %v1360_v21 = vunpack.c.h.b16 %v3800_v5 }
 0x110   :  { %768 = vrot.lane.b32.xlu2 %v763_v30, %s3032_s11  ;;  %vm3987_vm0 = vcmp.ne.s32.totalorder %v1360_v21, %v3155_v27 }
 0x112   :  { %v893_v47 = vpop.permute.xlu2 %892 }
 0x113   :  { %v898_v48 = vrot.slane %v893_v47, 4  ;;  %766 = vrot.lane.b32.xlu1 %v762_v39, %s3032_s11  ;;  %1142 = vrot.lane.b32.xlu0 %v1135_v11, %s3029_s8  ;;  %v688_v39 = vunpack.c.l.b16 %v680_v7 }
 0x115   :  { %v903_v34 = vsel %vm900_vm13, %v893_v47, %v898_v48  ;;  %v689_v48 = vunpack.c.l.b16 %v681_v59  ;;  %v1605_v59 = vunpack.c.l.b16 %v3705_v46 }
 0x116   :  { %911 = vst [vmem:[#allocation2 + $0xb8] sm:$0xf] %v903_v34 }
 0x117   :  { %vm1609_vm12 = vcmp.ne.s32.totalorder %v1605_v59, %v3152_v26 }
 0x118   :  { %1168 = vrot.lane.b32.xlu2 %v1167_v57, %s3033_s12  ;;  %v1065_v57 = vunpack.c.l.b16 %v3791_v4 }
 0x11a   :  { %v889_v60 = vpop.permute.xlu2 %888 }
 0x11b   :  { %v896_v41 = vrot.slane %v889_v60, 4  ;;  %1079 = vrot.lane.b32.xlu1 %v1072_v9, %s3034_s13  ;;  %770 = vrot.lane.b32.xlu0 %v764_v17, %s3032_s11  ;;  %v696_v9 = vpack.c.b16 %v689_v48, %v688_v39  ;;  %v1071_v17 = vpack.c.b16 %v1066_v33, %v1065_v57  ;;  %v1003_v48 = vunpack.c.h.b16 %v3878_v37 }
 0x11d   :  { %v901_v24 = vsel %vm900_vm13, %v889_v60, %v896_v41  ;;  %v834_v25 = vpop.permute.xlu1 %833  ;;  %v832_v12 = vpop.permute.xlu0 %831  ;;  %v3892_v60 = vsel %vm3861_vm9, %v3786_v52, 0  ;;  %v1001_v41 = vunpack.c.l.b16 %v3878_v37  ;;  %vm590_vm9 = vcmask 982016  }
 0x11e   :  { %909 = vst [vmem:[#allocation2 + $0xb0] sm:$0xf] %v901_v24  ;;  %v838_v43 = vrot.slane %v834_v25, 4  ;;  %v837_v44 = vrot.slane %v832_v12, 4  ;;  %v1006_v22 = vunpack.c.h.b16 %v3892_v60 }
 0x11f   :  { %v1008_v7 = vpack.c.b16 %v1001_v41, %v1000_v56 }
 0x120   :  { %v843_v62 = vsel %vm839_vm2, %v834_v25, %v838_v43  ;;  %v842_v35 = vsel %vm839_vm2, %v832_v12, %v837_v44  ;;  %1073 = vrot.lane.b32.xlu2 %v1069_v54, %s3034_s13  ;;  %v693_v43 = vunpack.c.l.b16 %v3837_v40 }
 0x121   :  { %851 = vst [vmem:[#allocation2 + $0xac] sm:$0xf] %v843_v62  ;;  %v1606_v62 = vunpack.c.h.b16 %v3705_v46 }
 0x122   :  { %850 = vst [vmem:[#allocation2 + $0xa8] sm:$0xf] %v842_v35  ;;  %v330_v32 = vpop.permute.xlu2 %329  ;;  %v933_v35 = vsel %vm3905_vm14, %v3786_v52, 0 }
 0x123   :  { %v335_v30 = vrot.slane %v330_v32, 4  ;;  %706 = vrot.lane.b32.xlu1 %v699_v23, %s3035_s14  ;;  %1138 = vrot.lane.b32.xlu0 %v1133_v19, %s3029_s8  ;;  %v934_v23 = vsel %vm3905_vm14, %v3386_v61, 0  ;;  %v1011_v19 = vpack.c.b16 %v1007_v28, %v1006_v22  ;;  %v945_v45 = vunpack.c.h.b16 %v933_v35 }
 0x124   :  { %v946_v29 = vunpack.c.h.b16 %v934_v23  ;;  %vm1610_vm15 = vcmp.ne.s32.totalorder %v1606_v62, %v3155_v27 }
 0x125   :  { %v340_v11 = vsel %vm337_vm11, %v330_v32, %v335_v30  ;;  %v264_v0 = vpop.permute.xlu1 %263  ;;  %v262_v47 = vpop.permute.xlu0 %261  ;;  %v698_v32 = vpack.c.b16 %v693_v43, %v692_v31  ;;  %v1005_v31 = vunpack.c.l.b16 %v3899_v20 }
 0x126   :  { %348 = vst [vmem:[#allocation2 + $0x28] sm:$0xf] %v340_v11  ;;  %v270_v34 = vrot.slane %v264_v0, 4  ;;  %v269_v58 = vrot.slane %v262_v47, 4  ;;  %v943_v11 = vunpack.c.l.b16 %v933_v35 }
 0x128   :  { %v275_v4 = vsel %vm273_vm1, %v264_v0, %v270_v34  ;;  %v274_v53 = vsel %vm273_vm1, %v262_v47, %v269_v58  ;;  %702 = vrot.lane.b32.xlu2 %v697_v63, %s3035_s14  ;;  %v944_v0 = vunpack.c.l.b16 %v934_v23  ;;  %v1064_v47 = vunpack.c.h.b16 %v3825_v8 }
 0x129   :  { %283 = vst [vmem:[#allocation2 + $0x14] sm:$0xf] %v275_v4  ;;  %v950_v34 = vpack.c.b16 %v946_v29, %v945_v45  ;;  %v3944_v58 = vsel %vm3905_vm14, %v3411_v10, 0  ;;  %v1544_v29 = vunpack.c.l.b16 %v3735_v49 }
 0x12a   :  { %282 = vst [vmem:[#allocation2 + $0x10] sm:$0xf] %v274_v53  ;;  %v391_v14 = vpop.permute.xlu2 %390  ;;  %v949_v1 = vpack.c.b16 %v944_v0, %v943_v11  ;;  %v1070_v4 = vpack.c.b16 %v1064_v47, %v1063_v3  ;;  %v1002_v47 = vunpack.c.h.b16 %v3873_v15  ;;  %v4029_v15 = vld [vmem:[#allocation4 + $0x8] sm:$0xff] }
 0x12b   :  { %v398_v36 = vrot.slane %v391_v14, 4  ;;  %700 = vrot.lane.b32.xlu1 %v696_v9, %s3035_s14  ;;  %1077 = vrot.lane.b32.xlu0 %v1071_v17, %s3034_s13  ;;  %v939_v17 = vunpack.c.l.b16 %v3939_v50 }
 0x12d   :  { %v403_v24 = vsel %vm402_vm10, %v391_v14, %v398_v36  ;;  %v266_v25 = vpop.permute.xlu1 %265  ;;  %v456_v12 = vpop.permute.xlu0 %455  ;;  %v940_v14 = vunpack.c.l.b16 %v3944_v58  ;;  %v1359_v36 = vunpack.c.l.b16 %v3800_v5  ;;  %v1791_v5 = vunpack.c.h.b16 %v3569_v2 }
 0x12e   :  { %411 = vst [vmem:[#allocation2 + $0x30] sm:$0xf] %v403_v24  ;;  %v271_v44 = vrot.slane %v266_v25, 4  ;;  %v461_v54 = vrot.slane %v456_v12, 4 }
 0x12f   :  { %vm3982_vm6 = vcmp.ne.s32.totalorder %v1359_v36, %v3152_v26  ;;  %vm3997_vm8 = vcmp.ne.s32.totalorder %v1791_v5, %v3155_v27 }
 0x130   :  { %v276_v18 = vsel %vm273_vm1, %v266_v25, %v271_v44  ;;  %v466_v40 = vsel %vm463_vm4, %v456_v12, %v461_v54  ;;  %1012 = vrot.lane.b32.xlu2 %v1008_v7, %s3036_s15  ;;  %vm3932_vm1 = vmpackc.low %vm1610_vm15, %vm1609_vm12  ;;  %v947_v54 = vpack.c.b16 %v940_v14, %v939_v17  ;;  %v1790_v7 = vunpack.c.l.b16 %v3569_v2 }
 0x131   :  { %284 = vst [vmem:[#allocation2 + $0x18] sm:$0xf] %v276_v18  ;;  %v3952_v53 = vsel %vm3932_vm1, %v3786_v52, 0  ;;  %v3959_v56 = vsel %vm3932_vm1, %v3386_v61, 0  ;;  %v1004_v61 = vunpack.c.l.b16 %v3892_v60  ;;  %v1612_v59 = vsel %vm3932_vm1, %v3815_v6, 0  ;;  %vm4009_vm5 = vmpackc.low %vm3987_vm0, %vm3982_vm6 }
 0x132   :  { %474 = vst [vmem:[#allocation2 + $0x48] sm:$0xf] %v466_v40  ;;  %v397_v46 = vpop.permute.xlu2 %396  ;;  %v1626_v22 = vunpack.c.h.b16 %v3952_v53  ;;  %v1627_v28 = vunpack.c.h.b16 %v3959_v56  ;;  %v1613_v62 = vsel %vm3932_vm1, %v3411_v10, 0  ;;  %v1622_v40 = vunpack.c.h.b16 %v1612_v59 }
 0x133   :  { %v401_v30 = vrot.slane %v397_v46, 4  ;;  %1018 = vrot.lane.b32.xlu1 %v1011_v19, %s3036_s15  ;;  %704 = vrot.lane.b32.xlu0 %v698_v32, %s3035_s14  ;;  %v1010_v18 = vpack.c.b16 %v1005_v31, %v1004_v61  ;;  %v1623_v19 = vunpack.c.h.b16 %v1613_v62  ;;  %v1621_v0 = vunpack.c.l.b16 %v1613_v62 }
 0x134   :  { %v1631_v23 = vpack.c.b16 %v1627_v28, %v1626_v22  ;;  %v4034_v37 = vsel %vm4009_vm5, %v4029_v15, 0  ;;  %vm4037_vm12 = vcmp.ne.s32.totalorder %v1544_v29, %v3152_v26  ;;  %v1009_v17 = vpack.c.b16 %v1003_v48, %v1002_v47 }
 0x135   :  { %v406_v13 = vsel %vm402_vm10, %v397_v46, %v401_v30  ;;  %v452_v16 = vpop.permute.xlu1 %451  ;;  %v642_v39 = vpop.permute.xlu0 %641  ;;  %v1545_v30 = vunpack.c.h.b16 %v3735_v49  ;;  %v1379_v22 = vunpack.c.l.b16 %v4034_v37 }
 0x136   :  { %414 = vst [vmem:[#allocation2 + $0x3c] sm:$0xf] %v406_v13  ;;  %v459_v57 = vrot.slane %v452_v16, 4  ;;  %v648_v33 = vrot.slane %v642_v39, 4  ;;  %v1620_v13 = vunpack.c.l.b16 %v1612_v59 }
 0x137   :  { %vm1549_vm15 = vcmp.ne.s32.totalorder %v1545_v30, %v3155_v27 }
 0x138   :  { %v464_v8 = vsel %vm463_vm4, %v452_v16, %v459_v57  ;;  %v653_v63 = vsel %vm651_vm3, %v642_v39, %v648_v33  ;;  %957 = vrot.lane.b32.xlu2 %v950_v34, %s3037_s16  ;;  %v1629_v34 = vpack.c.b16 %v1623_v19, %v1622_v40 }
 0x139   :  { %472 = vst [vmem:[#allocation2 + $0x40] sm:$0xf] %v464_v8  ;;  %v4027_v8 = vsel %vm4009_vm5, %v3786_v52, 0 }
 0x13a   :  { %661 = vst [vmem:[#allocation2 + $0x74] sm:$0xf] %v653_v63  ;;  %v517_v9 = vpop.permute.xlu2 %516  ;;  %v1378_v21 = vunpack.c.l.b16 %v4027_v8 }
 0x13b   :  { %v522_v41 = vrot.slane %v517_v9, 4  ;;  %955 = vrot.lane.b32.xlu1 %v949_v1, %s3037_s16  ;;  %1075 = vrot.lane.b32.xlu0 %v1070_v4, %s3034_s13 }
 0x13c   :  { %v1384_v62 = vpack.c.b16 %v1379_v22, %v1378_v21  ;;  %v1298_v21 = vunpack.c.l.b16 %v3802_v55  ;;  %v1299_v22 = vunpack.c.h.b16 %v3802_v55 }
 0x13d   :  { %v527_v24 = vsel %vm524_vm7, %v517_v9, %v522_v41  ;;  %v458_v25 = vpop.permute.xlu1 %457  ;;  %v895_v12 = vpop.permute.xlu0 %894  ;;  %v1628_v9 = vpack.c.b16 %v1621_v0, %v1620_v13 }
 0x13e   :  { %535 = vst [vmem:[#allocation2 + $0x58] sm:$0xf] %v527_v24  ;;  %v462_v43 = vrot.slane %v458_v25, 4  ;;  %v899_v44 = vrot.slane %v895_v12, 4  ;;  %vm4138_vm1 = vcmp.ne.s32.totalorder %v1299_v22, %v3155_v27 }
 0x140   :  { %v467_v60 = vsel %vm463_vm4, %v458_v25, %v462_v43  ;;  %v904_v20 = vsel %vm900_vm13, %v895_v12, %v899_v44  ;;  %951 = vrot.lane.b32.xlu2 %v947_v54, %s3037_s16  ;;  %vm3992_vm4 = vcmp.ne.s32.totalorder %v1790_v7, %v3152_v26  ;;  %v1624_v54 = vunpack.c.l.b16 %v3952_v53 }
 0x141   :  { %475 = vst [vmem:[#allocation2 + $0x4c] sm:$0xf] %v467_v60  ;;  %vm4020_vm14 = vmpackc.low %vm3997_vm8, %vm3992_vm4  ;;  %v1625_v7 = vunpack.c.l.b16 %v3959_v56  ;;  %v2875_v46 = vld [vmem:[#allocation2 + $0x70] sm:$0xff] }
 0x142   :  { %912 = vst [vmem:[#allocation2 + $0xbc] sm:$0xf] %v904_v20  ;;  %v579_v10 = vpop.permute.xlu2 %578  ;;  %v4048_v41 = vsel %vm4020_vm14, %v3786_v52, 0  ;;  %v4055_v24 = vsel %vm4020_vm14, %v4029_v15, 0 }
 0x143   :  { %v586_v45 = vrot.slane %v579_v10, 4  ;;  %1638 = vrot.lane.b32.xlu1 %v1631_v23, %s3038_s17  ;;  %1016 = vrot.lane.b32.xlu0 %v1010_v18, %s3036_s15  ;;  %v1811_v28 = vunpack.c.h.b16 %v4048_v41  ;;  %v1812_v44 = vunpack.c.h.b16 %v4055_v24  ;;  %v1630_v23 = vpack.c.b16 %v1625_v7, %v1624_v54 }
 0x144   :  { %v1810_v49 = vunpack.c.l.b16 %v4055_v24 }
 0x145   :  { %v591_v16 = vsel %vm590_vm9, %v579_v10, %v586_v45  ;;  %v644_v39 = vpop.permute.xlu1 %643  ;;  %v891_v11 = vpop.permute.xlu0 %890  ;;  %v1816_v56 = vpack.c.b16 %v1812_v44, %v1811_v28  ;;  %v941_v45 = vunpack.c.h.b16 %v3939_v50  ;;  %v4089_v50 = vld [vmem:[#allocation4] sm:$0xff] }
 0x146   :  { %599 = vst [vmem:[#allocation2 + $0x60] sm:$0xf] %v591_v16  ;;  %v649_v57 = vrot.slane %v644_v39, 4  ;;  %v897_v33 = vrot.slane %v891_v11, 4 }
 0x148   :  { %v654_v1 = vsel %vm651_vm3, %v644_v39, %v649_v57  ;;  %v902_v4 = vsel %vm900_vm13, %v891_v11, %v897_v33  ;;  %1634 = vrot.lane.b32.xlu2 %v1629_v34, %s3038_s17  ;;  %vm4061_vm3 = vmpackc.low %vm1549_vm15, %vm4037_vm12  ;;  %vm1148_vm13 = vcmask 850944   ;;  %v942_v11 = vunpack.c.h.b16 %v3944_v58  ;;  %v2882_v57 = vld [vmem:[#allocation2 + $0xa8] sm:$0xff] }
 0x149   :  { %662 = vst [vmem:[#allocation2 + $0x78] sm:$0xf] %v654_v1  ;;  %v2884_v14 = vld [vmem:[#allocation2 + $0xb8] sm:$0xff]  ;;  %v1553_v60 = vsel %vm4061_vm3, %v3786_v52, 0  ;;  %v1554_v20 = vsel %vm4061_vm3, %v4029_v15, 0  ;;  %v4087_v33 = vsel %vm4009_vm5, %v3815_v6, 0 }
 0x14a   :  { %910 = vst [vmem:[#allocation2 + $0xb4] sm:$0xf] %v902_v4  ;;  %v585_v36 = vpop.permute.xlu2 %584  ;;  %2429 = vmatpush.bf16.msra.mxu2 %v2884_v14  ;;  %v1565_v40 = vunpack.c.h.b16 %v1553_v60  ;;  %v1566_v19 = vunpack.c.h.b16 %v1554_v20  ;;  %v1563_v16 = vunpack.c.l.b16 %v1553_v60  ;;  %v1564_v39 = vunpack.c.l.b16 %v1554_v20 }
 0x14b   :  { %v589_v25 = vrot.slane %v585_v36, 4  ;;  %1632 = vrot.lane.b32.xlu1 %v1628_v9, %s3038_s17  ;;  %1014 = vrot.lane.b32.xlu0 %v1009_v17, %s3036_s15  ;;  %v4094_v34 = vsel %vm4009_vm5, %v4089_v50, 0  ;;  %v948_v4 = vpack.c.b16 %v942_v11, %v941_v45  ;;  %v1374_v17 = vunpack.c.l.b16 %v4087_v33 }
 0x14c   :  { %v1570_v48 = vpack.c.b16 %v1566_v19, %v1565_v40  ;;  %v1569_v1 = vpack.c.b16 %v1564_v39, %v1563_v16  ;;  %v1375_v3 = vunpack.c.l.b16 %v4094_v34  ;;  %v4106_v14 = vsel %vm4020_vm14, %v3815_v6, 0 }
 0x14d   :  { %v594_v61 = vsel %vm590_vm9, %v585_v36, %v589_v25  ;;  %v328_v31 = vpop.permute.xlu1 %327  ;;  %v326_v43 = vpop.permute.xlu0 %325  ;;  %v4111_v36 = vsel %vm4020_vm14, %v4089_v50, 0  ;;  %v1551_v55 = vsel %vm4061_vm3, %v3815_v6, 0  ;;  %v1484_v40 = vunpack.c.h.b16 %v3608_v38 }
 0x14e   :  { %602 = vst [vmem:[#allocation2 + $0x6c] sm:$0xf] %v594_v61  ;;  %v334_v5 = vrot.slane %v328_v31, 4  ;;  %v333_v59 = vrot.slane %v326_v43, 4  ;;  %v1807_v61 = vunpack.c.h.b16 %v4106_v14  ;;  %v1382_v7 = vpack.c.b16 %v1375_v3, %v1374_v17 }
 0x14f   :  { %v1381_v16 = vunpack.c.h.b16 %v4034_v37  ;;  %vm4188_vm5 = vcmp.ne.s32.totalorder %v1484_v40, %v3155_v27  ;;  %vm778_vm14 = vcmask 916480   ;;  %v2863_v37 = vld [vmem:[#allocation2 + $0x10] sm:$0xff] }
 0x150   :  { %v339_v35 = vsel %vm337_vm11, %v328_v31, %v334_v5  ;;  %v338_v2 = vsel %vm337_vm11, %v326_v43, %v333_v59  ;;  %1390 = vrot.lane.b32.xlu2 %v1384_v62, %s3039_s18  ;;  %v2876_v53 = vld [vmem:[#allocation2 + $0x78] sm:$0xff]  ;;  %v1808_v31 = vunpack.c.h.b16 %v4111_v36  ;;  %v1809_v43 = vunpack.c.l.b16 %v4048_v41 }
 0x151   :  { %347 = vst [vmem:[#allocation2 + $0x24] sm:$0xf] %v339_v35  ;;  %v2883_v18 = vld [vmem:[#allocation2 + $0xb0] sm:$0xff]  ;;  %2410 = vmatpush.bf16.msra.mxu1 %v2876_v53  ;;  %v1729_v5 = vunpack.c.l.b16 %v3766_v42  ;;  %v1730_v59 = vunpack.c.h.b16 %v3766_v42  ;;  %v1552_v62 = vsel %vm4061_vm3, %v4089_v50, 0  ;;  %v1561_v53 = vunpack.c.h.b16 %v1551_v55 }
 0x152   :  { %346 = vst [vmem:[#allocation2 + $0x20] sm:$0xf] %v338_v2  ;;  %v1141_v10 = vpop.permute.xlu2 %1140  ;;  %2430 = vmatpush.bf16.msra.mxu2 %v2883_v18  ;;  %v1814_v12 = vpack.c.b16 %v1808_v31, %v1807_v61  ;;  %v1815_v35 = vpack.c.b16 %v1810_v49, %v1809_v43  ;;  %v1805_v31 = vunpack.c.l.b16 %v4106_v14 }
 0x153   :  { %v1146_v32 = vrot.slane %v1141_v10, 4  ;;  %1823 = vrot.lane.b32.xlu1 %v1816_v56, %s3040_s19  ;;  %1636 = vrot.lane.b32.xlu0 %v1630_v23, %s3038_s17  ;;  %v1562_v56 = vunpack.c.h.b16 %v1552_v62  ;;  %vm1734_vm6 = vcmp.ne.s32.totalorder %v1730_v59, %v3155_v27 }
 0x155   :  { %v1151_v29 = vsel %vm1148_vm13, %v1141_v10, %v1146_v32  ;;  %v395_v30 = vpop.permute.xlu1 %394  ;;  %v332_v13 = vpop.permute.xlu0 %331  ;;  %2411 = vmatpush.bf16.msra.mxu1 %v2875_v46  ;;  %v1483_v10 = vunpack.c.l.b16 %v3608_v38  ;;  %v1559_v32 = vunpack.c.l.b16 %v1551_v55 }
 0x156   :  { %1159 = vst [vmem:[#allocation2 + $0xf8] sm:$0xf] %v1151_v29  ;;  %v400_v0 = vrot.slane %v395_v30, 4  ;;  %v336_v47 = vrot.slane %v332_v13, 4  ;;  %2431 = vmatpush.bf16.msra.mxu2 %v2882_v57 }
 0x157   :  { %vm4180_vm8 = vcmp.ne.s32.totalorder %v1483_v10, %v3152_v26 }
 0x158   :  { %v405_v58 = vsel %vm402_vm10, %v395_v30, %v400_v0  ;;  %v341_v63 = vsel %vm337_vm11, %v332_v13, %v336_v47  ;;  %1577 = vrot.lane.b32.xlu2 %v1570_v48, %s3041_s20  ;;  %vm4133_vm11 = vcmp.ne.s32.totalorder %v1298_v21, %v3152_v26  ;;  %v1560_v30 = vunpack.c.l.b16 %v1552_v62  ;;  %vm4210_vm12 = vmpackc.low %vm4188_vm5, %vm4180_vm8 }
 0x159   :  { %413 = vst [vmem:[#allocation2 + $0x38] sm:$0xf] %v405_v58  ;;  %vm4156_vm0 = vmpackc.low %vm4138_vm1, %vm4133_vm11  ;;  %v1380_v13 = vunpack.c.h.b16 %v4027_v8  ;;  %v1568_v0 = vpack.c.b16 %v1562_v56, %v1561_v53  ;;  %v1493_v14 = vsel %vm4210_vm12, %v4029_v15, 0  ;;  %vm712_vm1 = vcmask 965632  }
 0x15a   :  { %349 = vst [vmem:[#allocation2 + $0x2c] sm:$0xf] %v341_v63  ;;  %v4099_v9 = vpop.permute.xlu2 %1418  ;;  %v4172_v47 = vsel %vm4156_vm0, %v3786_v52, 0  ;;  %v4177_v8 = vsel %vm4156_vm0, %v4029_v15, 0  ;;  %v1567_v63 = vpack.c.b16 %v1560_v30, %v1559_v32  ;;  %v1505_v56 = vunpack.c.h.b16 %v1493_v14  ;;  %v2864_v30 = vld [vmem:[#allocation2 + $0x18] sm:$0xff] }
 0x15b   :  { %1575 = vrot.lane.b32.xlu1 %v1569_v1, %s3041_s20  ;;  %953 = vrot.lane.b32.xlu0 %v948_v4, %s3037_s16  ;;  %v1385_v1 = vpack.c.b16 %v1381_v16, %v1380_v13  ;;  %v1317_v21 = vunpack.c.l.b16 %v4172_v47  ;;  %v1318_v22 = vunpack.c.l.b16 %v4177_v8  ;;  %v1503_v40 = vunpack.c.l.b16 %v1493_v14 }
 0x15c   :  { %v1376_v32 = vunpack.c.h.b16 %v4087_v33  ;;  %v4237_v13 = vsel %vm4156_vm0, %v3815_v6, 0  ;;  %v4242_v16 = vsel %vm4156_vm0, %v4089_v50, 0  ;;  %vm1024_vm8 = vcmask 875520  }
 0x15d   :  { %v515_v25 = vpop.permute.xlu1 %514  ;;  %v393_v28 = vpop.permute.xlu0 %392  ;;  %v1323_v62 = vpack.c.b16 %v1318_v22, %v1317_v21  ;;  %v1313_v19 = vunpack.c.l.b16 %v4237_v13  ;;  %vm963_vm5 = vcmask 883712  }
 0x15e   :  { %v521_v44 = vrot.slane %v515_v25, 4  ;;  %v399_v54 = vrot.slane %v393_v28, 4 }
 0x160   :  { %v526_v60 = vsel %vm524_vm7, %v515_v25, %v521_v44  ;;  %v404_v41 = vsel %vm402_vm10, %v393_v28, %v399_v54  ;;  %1386 = vrot.lane.b32.xlu2 %v1382_v7, %s3039_s18  ;;  %v2868_v24 = vld [vmem:[#allocation2 + $0x38] sm:$0xff]  ;;  %vm4143_vm10 = vcmp.ne.s32.totalorder %v1729_v5, %v3152_v26  ;;  %v1806_v5 = vunpack.c.l.b16 %v4111_v36 }
 0x161   :  { %534 = vst [vmem:[#allocation2 + $0x54] sm:$0xf] %v526_v60  ;;  %2391 = vmatpush.bf16.msra.mxu0 %v2868_v24  ;;  %vm4165_vm4 = vmpackc.low %vm1734_vm6, %vm4143_vm10  ;;  %v2866_v60 = vld [vmem:[#allocation2 + $0x28] sm:$0xff] }
 0x162   :  { %412 = vst [vmem:[#allocation2 + $0x34] sm:$0xf] %v404_v41  ;;  %v1137_v2 = vpop.permute.xlu2 %1136  ;;  %v4195_v17 = vsel %vm4165_vm4, %v3786_v52, 0  ;;  %v4202_v25 = vsel %vm4165_vm4, %v4029_v15, 0  ;;  %v1492_v41 = vsel %vm4210_vm12, %v3786_v52, 0 }
 0x163   :  { %v1144_v18 = vrot.slane %v1137_v2, 4  ;;  %1819 = vrot.lane.b32.xlu1 %v1814_v12, %s3040_s19  ;;  %1821 = vrot.lane.b32.xlu0 %v1815_v35, %s3040_s19  ;;  %v1750_v54 = vunpack.c.h.b16 %v4195_v17  ;;  %v1751_v7 = vunpack.c.h.b16 %v4202_v25  ;;  %v1813_v12 = vpack.c.b16 %v1806_v5, %v1805_v31 }
 0x164   :  { %v1504_v53 = vunpack.c.h.b16 %v1492_v41  ;;  %v1502_v10 = vunpack.c.l.b16 %v1492_v41  ;;  %v1748_v31 = vunpack.c.l.b16 %v4195_v17  ;;  %v1490_v5 = vsel %vm4210_vm12, %v3815_v6, 0 }
 0x165   :  { %v1149_v46 = vsel %vm1148_vm13, %v1137_v2, %v1144_v18  ;;  %v583_v45 = vpop.permute.xlu1 %582  ;;  %v513_v29 = vpop.permute.xlu0 %512  ;;  %v1755_v42 = vpack.c.b16 %v1751_v7, %v1750_v54  ;;  %v2865_v2 = vld [vmem:[#allocation2 + $0x20] sm:$0xff]  ;;  %v1491_v17 = vsel %vm4210_vm12, %v4089_v50, 0  ;;  %v1500_v41 = vunpack.c.h.b16 %v1490_v5 }
 0x166   :  { %1157 = vst [vmem:[#allocation2 + $0xf0] sm:$0xf] %v1149_v46  ;;  %v588_v39 = vrot.slane %v583_v45, 4  ;;  %v520_v11 = vrot.slane %v513_v29, 4  ;;  %v1377_v46 = vunpack.c.h.b16 %v4094_v34  ;;  %v1508_v33 = vpack.c.b16 %v1503_v40, %v1502_v10 }
 0x167   :  { %v1501_v14 = vunpack.c.h.b16 %v1491_v17  ;;  %v1320_v40 = vunpack.c.h.b16 %v4177_v8 }
 0x168   :  { %v593_v48 = vsel %vm590_vm9, %v583_v45, %v588_v39  ;;  %v525_v57 = vsel %vm524_vm7, %v513_v29, %v520_v11  ;;  %1573 = vrot.lane.b32.xlu2 %v1568_v0, %s3041_s20  ;;  %v1509_v29 = vpack.c.b16 %v1505_v56, %v1504_v53  ;;  %v1383_v34 = vpack.c.b16 %v1377_v46, %v1376_v32 }
 0x169   :  { %601 = vst [vmem:[#allocation2 + $0x68] sm:$0xf] %v593_v48  ;;  %v2867_v4 = vld [vmem:[#allocation2 + $0x30] sm:$0xff]  ;;  %v4249_v11 = vsel %vm4165_vm4, %v3815_v6, 0  ;;  %v1314_v48 = vunpack.c.l.b16 %v4242_v16  ;;  %v1499_v53 = vunpack.c.l.b16 %v1491_v17  ;;  %v1319_v56 = vunpack.c.h.b16 %v4172_v47 }
 0x16a   :  { %533 = vst [vmem:[#allocation2 + $0x50] sm:$0xf] %v525_v57  ;;  %v769_v3 = vpop.permute.xlu2 %768  ;;  %2392 = vmatpush.bf16.msra.mxu0 %v2867_v4  ;;  %v4256_v57 = vsel %vm4165_vm4, %v4089_v50, 0  ;;  %v1668_v4 = vunpack.c.l.b16 %v3634_v51 }
 0x16b   :  { %v775_v28 = vrot.slane %v769_v3, 4  ;;  %1571 = vrot.lane.b32.xlu1 %v1567_v63, %s3041_s20  ;;  %1392 = vrot.lane.b32.xlu0 %v1385_v1, %s3039_s18  ;;  %v1747_v38 = vunpack.c.h.b16 %v4256_v57  ;;  %v1321_v7 = vpack.c.b16 %v1314_v48, %v1313_v19 }
 0x16c   :  { %vm4279_vm3 = vcmp.ne.s32.totalorder %v1668_v4, %v3152_v26 }
 0x16d   :  { %v780_v43 = vsel %vm778_vm14, %v769_v3, %v775_v28  ;;  %v830_v49 = vpop.permute.xlu1 %829  ;;  %v519_v44 = vpop.permute.xlu0 %518  ;;  %v1746_v3 = vunpack.c.h.b16 %v4249_v11 }
 0x16e   :  { %788 = vst [vmem:[#allocation2 + $0x94] sm:$0xf] %v780_v43  ;;  %v836_v59 = vrot.slane %v830_v49, 4  ;;  %v523_v55 = vrot.slane %v519_v44, 4  ;;  %2393 = vmatpush.bf16.msra.mxu0 %v2866_v60  ;;  %v1749_v43 = vunpack.c.l.b16 %v4202_v25 }
 0x170   :  { %v841_v24 = vsel %vm839_vm2, %v830_v49, %v836_v59  ;;  %v528_v20 = vsel %vm524_vm7, %v519_v44, %v523_v55  ;;  %1329 = vrot.lane.b32.xlu2 %v1323_v62, %s3042_s1  ;;  %v2874_v36 = vld [vmem:[#allocation2 + $0x68] sm:$0xff]  ;;  %vm1085_vm7 = vcmask 867328   ;;  %v1669_v49 = vunpack.c.h.b16 %v3634_v51 }
 0x171   :  { %849 = vst [vmem:[#allocation2 + $0xa4] sm:$0xf] %v841_v24  ;;  %2412 = vmatpush.bf16.msra.mxu1 %v2874_v36  ;;  %v1753_v55 = vpack.c.b16 %v1747_v38, %v1746_v3  ;;  %v1754_v62 = vpack.c.b16 %v1749_v43, %v1748_v31  ;;  %v1421_v36 = vunpack.c.h.b16 %v4099_v9  ;;  %v2870_v3 = vld [vmem:[#allocation2 + $0x48] sm:$0xff]  ;;  %v1315_v24 = vunpack.c.h.b16 %v4237_v13 }
 0x172   :  { %536 = vst [vmem:[#allocation2 + $0x5c] sm:$0xf] %v528_v20  ;;  %v4228_v35 = vpop.permute.xlu2 %1168  ;;  %2394 = vmatpush.bf16.msra.mxu0 %v2865_v2  ;;  %v1420_v20 = vunpack.c.l.b16 %v4099_v9  ;;  %v1498_v2 = vunpack.c.l.b16 %v1490_v5 }
 0x173   :  { %1762 = vrot.lane.b32.xlu1 %v1755_v42, %s3043_s21  ;;  %1817 = vrot.lane.b32.xlu0 %v1813_v12, %s3040_s19  ;;  %vm1425_vm0 = vcmp.ne.s32.totalorder %v1421_v36, %v3155_v27 }
 0x174   :  { %vm1424_vm6 = vcmp.ne.s32.totalorder %v1420_v20, %v3152_v26 }
 0x175   :  { %v1230_v23 = vpop.permute.xlu1 %1229  ;;  %v581_v18 = vpop.permute.xlu0 %580  ;;  %vm4334_vm4 = vmpackc.low %vm1425_vm0, %vm1424_vm6  ;;  %vm1459_vm6 = vcmask 769024   ;;  %vm1707_vm0 = vcmask 719872  }
 0x176   :  { %v587_v45 = vrot.slane %v581_v18, 4  ;;  %2395 = vmatpush.bf16.msra.mxu0 %v2864_v30  ;;  %v1231_v58 = vunpack.c.l.b16 %v1230_v23  ;;  %v1232_v63 = vunpack.c.h.b16 %v1230_v23 }
 0x178   :  { %v592_v39 = vsel %vm590_vm9, %v581_v18, %v587_v45  ;;  %1516 = vrot.lane.b32.xlu2 %v1509_v29, %s3044_s22  ;;  %vm1235_vm9 = vcmp.ne.s32.totalorder %v1231_v58, %v3152_v26  ;;  %vm1236_vm15 = vcmp.ne.s32.totalorder %v1232_v63, %v3155_v27  ;;  %v1507_v45 = vpack.c.b16 %v1501_v14, %v1500_v41 }
 0x179   :  { %600 = vst [vmem:[#allocation2 + $0x64] sm:$0xf] %v592_v39  ;;  %vm4283_vm11 = vmpackc.low %vm1236_vm15, %vm1235_vm9  ;;  %v2872_v12 = vld [vmem:[#allocation2 + $0x58] sm:$0xff]  ;;  %v2871_v39 = vld [vmem:[#allocation2 + $0x50] sm:$0xff]  ;;  %vm1644_vm9 = vcmask 736256   ;;  %vm1398_vm15 = vcmask 777216  }
 0x17a   :  { %v1074_v0 = vpop.permute.xlu2 %1073  ;;  %2396 = vmatpush.bf16.msra.mxu0 %v2863_v37  ;;  %v4302_v9 = vsel %vm4283_vm11, %v3786_v52, 0  ;;  %v4307_v32 = vsel %vm4283_vm11, %v4029_v15, 0  ;;  %v1324_v37 = vpack.c.b16 %v1320_v40, %v1319_v56  ;;  %v4371_v13 = vsel %vm4283_vm11, %v4089_v50, 0 }
 0x17b   :  { %v1081_v1 = vrot.slane %v1074_v0, 4  ;;  %1514 = vrot.lane.b32.xlu1 %v1508_v33, %s3044_s22  ;;  %1388 = vrot.lane.b32.xlu0 %v1383_v34, %s3039_s18  ;;  %v1250_v33 = vunpack.c.l.b16 %v4302_v9  ;;  %v1251_v34 = vunpack.c.l.b16 %v4307_v32 }
 0x17d   :  { %v1086_v21 = vsel %vm1085_vm7, %v1074_v0, %v1081_v1  ;;  %v773_v22 = vpop.permute.xlu1 %772  ;;  %v828_v28 = vpop.permute.xlu0 %827  ;;  %v1506_v0 = vpack.c.b16 %v1499_v53, %v1498_v2  ;;  %v1316_v53 = vunpack.c.h.b16 %v4242_v16 }
 0x17e   :  { %1094 = vst [vmem:[#allocation2 + $0xe0] sm:$0xf] %v1086_v21  ;;  %v777_v44 = vrot.slane %v773_v22, 4  ;;  %v835_v54 = vrot.slane %v828_v28, 4 }
 0x180   :  { %v782_v25 = vsel %vm778_vm14, %v773_v22, %v777_v44  ;;  %v840_v51 = vsel %vm839_vm2, %v828_v28, %v835_v54  ;;  %1325 = vrot.lane.b32.xlu2 %v1321_v7, %s3042_s1  ;;  %v2873_v59 = vld [vmem:[#allocation2 + $0x60] sm:$0xff]  ;;  %vm4288_vm2 = vcmp.ne.s32.totalorder %v1669_v49, %v3155_v27  ;;  %v1744_v28 = vunpack.c.l.b16 %v4249_v11  ;;  %v4345_v44 = vld [vmem:[#allocation3 + $0x8] sm:$0xff] }
 0x181   :  { %790 = vst [vmem:[#allocation2 + $0x9c] sm:$0xf] %v782_v25  ;;  %2413 = vmatpush.bf16.msra.mxu1 %v2873_v59  ;;  %vm4313_vm10 = vmpackc.low %vm4288_vm2, %vm4279_vm3  ;;  %v1745_v49 = vunpack.c.l.b16 %v4256_v57  ;;  %v1429_v54 = vsel %vm4334_vm4, %v4345_v44, 0  ;;  %v1430_v7 = vsel %vm4334_vm4, %v4029_v15, 0  ;;  %v2869_v57 = vld [vmem:[#allocation2 + $0x40] sm:$0xff]  ;;  %vm1583_vm3 = vcmask 744448  }
 0x182   :  { %848 = vst [vmem:[#allocation2 + $0xa0] sm:$0xf] %v840_v51  ;;  %v703_v61 = vpop.permute.xlu2 %702  ;;  %v4327_v48 = vsel %vm4313_vm10, %v3786_v52, 0  ;;  %v4332_v58 = vsel %vm4313_vm10, %v4029_v15, 0  ;;  %v1256_v52 = vpack.c.b16 %v1251_v34, %v1250_v33  ;;  %v1441_v51 = vunpack.c.h.b16 %v1429_v54 }
 0x183   :  { %v709_v42 = vrot.slane %v703_v61, 4  ;;  %1758 = vrot.lane.b32.xlu1 %v1753_v55, %s3043_s21  ;;  %1760 = vrot.lane.b32.xlu0 %v1754_v62, %s3043_s21  ;;  %v1689_v21 = vunpack.c.h.b16 %v4327_v48  ;;  %v1690_v22 = vunpack.c.h.b16 %v4332_v58  ;;  %v1442_v59 = vunpack.c.h.b16 %v1430_v7 }
 0x184   :  { %v1752_v62 = vpack.c.b16 %v1745_v49, %v1744_v28  ;;  %v1440_v2 = vunpack.c.l.b16 %v1430_v7  ;;  %v4386_v33 = vsel %vm4313_vm10, %v4089_v50, 0  ;;  %v1170_v34 = vunpack.c.l.b16 %v4228_v35 }
 0x185   :  { %v714_v23 = vsel %vm712_vm1, %v703_v61, %v709_v42  ;;  %v767_v18 = vpop.permute.xlu1 %766  ;;  %v1143_v10 = vpop.permute.xlu0 %1142  ;;  %2414 = vmatpush.bf16.msra.mxu1 %v2872_v12  ;;  %v1694_v55 = vpack.c.b16 %v1690_v22, %v1689_v21  ;;  %v1446_v14 = vpack.c.b16 %v1442_v59, %v1441_v51  ;;  %v1439_v12 = vunpack.c.l.b16 %v1429_v54 }
 0x186   :  { %722 = vst [vmem:[#allocation2 + $0x84] sm:$0xf] %v714_v23  ;;  %v774_v8 = vrot.slane %v767_v18, 4  ;;  %v1147_v46 = vrot.slane %v1143_v10, 4  ;;  %v1686_v47 = vunpack.c.h.b16 %v4386_v33  ;;  %v1688_v21 = vunpack.c.l.b16 %v4332_v58 }
 0x187   :  { %v1445_v16 = vpack.c.b16 %v1440_v2, %v1439_v12  ;;  %vm1768_vm2 = vcmask 711680  }
 0x188   :  { %v779_v29 = vsel %vm778_vm14, %v767_v18, %v774_v8  ;;  %v1152_v30 = vsel %vm1148_vm13, %v1143_v10, %v1147_v46  ;;  %1512 = vrot.lane.b32.xlu2 %v1507_v45, %s3044_s22  ;;  %v4361_v18 = vld [vmem:[#allocation3] sm:$0xff]  ;;  %v1322_v46 = vpack.c.b16 %v1316_v53, %v1315_v24 }
 0x189   :  { %787 = vst [vmem:[#allocation2 + $0x90] sm:$0xf] %v779_v29  ;;  %v2881_v19 = vld [vmem:[#allocation2 + $0xa0] sm:$0xff]  ;;  %2415 = vmatpush.bf16.msra.mxu1 %v2871_v39  ;;  %v4366_v10 = vsel %vm4283_vm11, %v4361_v18, 0  ;;  %v4379_v29 = vsel %vm4313_vm10, %v4361_v18, 0  ;;  %v1247_v39 = vunpack.c.l.b16 %v4371_v13  ;;  %vm1337_vm11 = vcmask 785408  }
 0x18a   :  { %1160 = vst [vmem:[#allocation2 + $0xfc] sm:$0xf] %v1152_v30  ;;  %v1013_v1 = vpop.permute.xlu2 %1012  ;;  %2432 = vmatpush.bf16.msra.mxu2 %v2881_v19  ;;  %v1246_v30 = vunpack.c.l.b16 %v4366_v10  ;;  %v1685_v19 = vunpack.c.h.b16 %v4379_v29  ;;  %vm1270_vm10 = vcmask 834560  }
 0x18b   :  { %v1020_v4 = vrot.slane %v1013_v1, 4  ;;  %1510 = vrot.lane.b32.xlu1 %v1506_v0, %s3044_s22  ;;  %1331 = vrot.lane.b32.xlu0 %v1324_v37, %s3042_s1  ;;  %v1171_v0 = vunpack.c.h.b16 %v4228_v35 }
 0x18c   :  { %v1254_v28 = vpack.c.b16 %v1247_v39, %v1246_v30  ;;  %v1692_v49 = vpack.c.b16 %v1686_v47, %v1685_v19  ;;  %v1248_v47 = vunpack.c.h.b16 %v4366_v10 }
 0x18d   :  { %v1025_v38 = vsel %vm1024_vm8, %v1013_v1, %v1020_v4  ;;  %v1080_v31 = vpop.permute.xlu1 %1079  ;;  %v771_v43 = vpop.permute.xlu0 %770  ;;  %2416 = vmatpush.bf16.msra.mxu1 %v2870_v3  ;;  %v1687_v3 = vunpack.c.l.b16 %v4327_v48 }
 0x18e   :  { %1033 = vst [vmem:[#allocation2 + $0xd0] sm:$0xf] %v1025_v38  ;;  %v1084_v5 = vrot.slane %v1080_v31, 4  ;;  %v776_v17 = vrot.slane %v771_v43, 4 }
 0x190   :  { %v1089_v11 = vsel %vm1085_vm7, %v1080_v31, %v1084_v5  ;;  %v781_v25 = vsel %vm778_vm14, %v771_v43, %v776_v17  ;;  %1262 = vrot.lane.b32.xlu2 %v1256_v52, %s3045_s0  ;;  %v2879_v38 = vld [vmem:[#allocation2 + $0x90] sm:$0xff]  ;;  %vm1175_vm14 = vcmp.ne.s32.totalorder %v1171_v0, %v3155_v27  ;;  %v1427_v31 = vsel %vm4334_vm4, %v4361_v18, 0 }
 0x191   :  { %1097 = vst [vmem:[#allocation2 + $0xec] sm:$0xf] %v1089_v11  ;;  %v2892_v60 = vld [vmem:[#allocation2 + $0xf8] sm:$0xff]  ;;  %2417 = vmatpush.bf16.msra.mxu1 %v2869_v57  ;;  %v1428_v43 = vsel %vm4334_vm4, %v4089_v50, 0  ;;  %v1437_v63 = vunpack.c.h.b16 %v1427_v31  ;;  %v1435_v11 = vunpack.c.l.b16 %v1427_v31  ;;  %v1252_v57 = vunpack.c.h.b16 %v4302_v9 }
 0x192   :  { %789 = vst [vmem:[#allocation2 + $0x98] sm:$0xf] %v781_v25  ;;  %v958_v61 = vpop.permute.xlu2 %957  ;;  %2448 = vmatpush.bf16.msra.mxu3 %v2892_v60  ;;  %v1438_v5 = vunpack.c.h.b16 %v1428_v43  ;;  %v1436_v25 = vunpack.c.l.b16 %v1428_v43  ;;  %vm1209_vm4 = vcmask 842752  }
 0x193   :  { %v962_v41 = vrot.slane %v958_v61, 4  ;;  %1701 = vrot.lane.b32.xlu1 %v1694_v55, %s3046_s23  ;;  %1756 = vrot.lane.b32.xlu0 %v1752_v62, %s3043_s21  ;;  %v1253_v62 = vunpack.c.h.b16 %v4307_v32 }
 0x194   :  { %v1444_v9 = vpack.c.b16 %v1438_v5, %v1437_v63 }
 0x195   :  { %v967_v20 = vsel %vm963_vm5, %v958_v61, %v962_v41  ;;  %v707_v36 = vpop.permute.xlu1 %706  ;;  %v1139_v42 = vpop.permute.xlu0 %1138  ;;  %v1257_v12 = vpack.c.b16 %v1253_v62, %v1252_v57 }
 0x196   :  { %975 = vst [vmem:[#allocation2 + $0xcc] sm:$0xf] %v967_v20  ;;  %v711_v56 = vrot.slane %v707_v36, 4  ;;  %v1145_v23 = vrot.slane %v1139_v42, 4 }
 0x198   :  { %v716_v40 = vsel %vm712_vm1, %v707_v36, %v711_v56  ;;  %v1150_v8 = vsel %vm1148_vm13, %v1139_v42, %v1145_v23  ;;  %1453 = vrot.lane.b32.xlu2 %v1446_v14, %s3047_s24  ;;  %vm1174_vm13 = vcmp.ne.s32.totalorder %v1170_v34, %v3152_v26  ;;  %v1693_v26 = vpack.c.b16 %v1688_v21, %v1687_v3 }
 0x199   :  { %724 = vst [vmem:[#allocation2 + $0x8c] sm:$0xf] %v716_v40  ;;  %v2880_v45 = vld [vmem:[#allocation2 + $0x98] sm:$0xff]  ;;  %vm4408_vm12 = vmpackc.low %vm1175_vm14, %vm1174_vm13  ;;  %v1443_v42 = vpack.c.b16 %v1436_v25, %v1435_v11  ;;  %v1683_v40 = vunpack.c.l.b16 %v4379_v29  ;;  %v1249_v3 = vunpack.c.h.b16 %v4371_v13 }
 0x19a   :  { %1158 = vst [vmem:[#allocation2 + $0xf4] sm:$0xf] %v1150_v8  ;;  %v952_v6 = vpop.permute.xlu2 %951  ;;  %2433 = vmatpush.bf16.msra.mxu2 %v2880_v45  ;;  %v4420_v60 = vsel %vm4408_vm12, %v4361_v18, 0  ;;  %v4425_v61 = vsel %vm4408_vm12, %v4089_v50, 0  ;;  %v4435_v53 = vsel %vm4408_vm12, %v4345_v44, 0  ;;  %v4440_v56 = vsel %vm4408_vm12, %v4029_v15, 0 }
 0x19b   :  { %v959_v37 = vrot.slane %v952_v6, 4  ;;  %1451 = vrot.lane.b32.xlu1 %v1445_v16, %s3047_s24  ;;  %1327 = vrot.lane.b32.xlu0 %v1322_v46, %s3042_s1  ;;  %v1185_v32 = vunpack.c.l.b16 %v4420_v60  ;;  %v1186_v36 = vunpack.c.l.b16 %v4425_v61  ;;  %v1191_v44 = vunpack.c.h.b16 %v4435_v53 }
 0x19c   :  { %v1192_v45 = vunpack.c.h.b16 %v4440_v56  ;;  %v1684_v15 = vunpack.c.l.b16 %v4386_v33  ;;  %v1255_v31 = vpack.c.b16 %v1249_v3, %v1248_v47  ;;  %v1187_v62 = vunpack.c.h.b16 %v4420_v60 }
 0x19d   :  { %v964_v1 = vsel %vm963_vm5, %v952_v6, %v959_v37  ;;  %v701_v4 = vpop.permute.xlu1 %700  ;;  %v1078_v52 = vpop.permute.xlu0 %1077  ;;  %v1193_v18 = vpack.c.b16 %v1186_v36, %v1185_v32 }
 0x19e   :  { %972 = vst [vmem:[#allocation2 + $0xc0] sm:$0xf] %v964_v1  ;;  %v708_v35 = vrot.slane %v701_v4, 4  ;;  %v1083_v22 = vrot.slane %v1078_v52, 4  ;;  %2434 = vmatpush.bf16.msra.mxu2 %v2879_v38  ;;  %v1196_v29 = vpack.c.b16 %v1192_v45, %v1191_v44  ;;  %v1691_v0 = vpack.c.b16 %v1684_v15, %v1683_v40 }
 0x1a0   :  { %v713_v48 = vsel %vm712_vm1, %v701_v4, %v708_v35  ;;  %v1088_v58 = vsel %vm1085_vm7, %v1078_v52, %v1083_v22  ;;  %1258 = vrot.lane.b32.xlu2 %v1254_v28, %s3045_s0 }
 0x1a1   :  { %721 = vst [vmem:[#allocation2 + $0x80] sm:$0xf] %v713_v48  ;;  %v2891_v54 = vld [vmem:[#allocation2 + $0xf0] sm:$0xff] }
 0x1a2   :  { %1096 = vst [vmem:[#allocation2 + $0xe8] sm:$0xf] %v1088_v58  ;;  %v1635_v7 = vpop.permute.xlu2 %1634  ;;  %2449 = vmatpush.bf16.msra.mxu3 %v2891_v54  ;;  %v1190_v54 = vunpack.c.l.b16 %v4440_v56 }
 0x1a3   :  { %v1641_v17 = vrot.slane %v1635_v7, 4  ;;  %1697 = vrot.lane.b32.xlu1 %v1692_v49, %s3046_s23  ;;  %1699 = vrot.lane.b32.xlu0 %v1693_v26, %s3046_s23  ;;  %v1189_v26 = vunpack.c.l.b16 %v4435_v53 }
 0x1a5   :  { %v1646_v51 = vsel %vm1644_vm9, %v1635_v7, %v1641_v17  ;;  %v1019_v59 = vpop.permute.xlu1 %1018  ;;  %v705_v55 = vpop.permute.xlu0 %704  ;;  %v1195_v17 = vpack.c.b16 %v1190_v54, %v1189_v26 }
 0x1a6   :  { %1654 = vst [vmem:[#allocation2 + $0x174] sm:$0xf] %v1646_v51  ;;  %v1023_v41 = vrot.slane %v1019_v59, 4  ;;  %v710_v14 = vrot.slane %v705_v55, 4 }
 0x1a8   :  { %v1028_v24 = vsel %vm1024_vm8, %v1019_v59, %v1023_v41  ;;  %v715_v20 = vsel %vm712_vm1, %v705_v55, %v710_v14  ;;  %1449 = vrot.lane.b32.xlu2 %v1444_v9, %s3047_s24  ;;  %v2877_v22 = vld [vmem:[#allocation2 + $0x80] sm:$0xff]  ;;  %v1188_v41 = vunpack.c.h.b16 %v4425_v61  ;;  %vm1522_vm1 = vcmask 752640  }
 0x1a9   :  { %1036 = vst [vmem:[#allocation2 + $0xdc] sm:$0xf] %v1028_v24  ;;  %v2890_v2 = vld [vmem:[#allocation2 + $0xe8] sm:$0xff] }
 0x1aa   :  { %723 = vst [vmem:[#allocation2 + $0x88] sm:$0xf] %v715_v20  ;;  %v1391_v50 = vpop.permute.xlu2 %1390  ;;  %2450 = vmatpush.bf16.msra.mxu3 %v2890_v2  ;;  %v1194_v32 = vpack.c.b16 %v1188_v41, %v1187_v62 }
 0x1ab   :  { %v1396_v23 = vrot.slane %v1391_v50, 4  ;;  %1447 = vrot.lane.b32.xlu1 %v1443_v42, %s3047_s24  ;;  %1264 = vrot.lane.b32.xlu0 %v1257_v12, %s3045_s0  ;;  %v2862_v12 = vld [vmem:[#allocation2 + $0x8] sm:$0xff] }
 0x1ac   :  { %2397 = vmatpush.bf16.msra.mxu0 %v2862_v12 }
 0x1ad   :  { %v1401_v8 = vsel %vm1398_vm15, %v1391_v50, %v1396_v23  ;;  %v956_v16 = vpop.permute.xlu1 %955  ;;  %v1076_v46 = vpop.permute.xlu0 %1075 }
 0x1ae   :  { %1409 = vst [vmem:[#allocation2 + $0x138] sm:$0xf] %v1401_v8  ;;  %v961_v6 = vrot.slane %v956_v16, 4  ;;  %v1082_v30 = vrot.slane %v1076_v46, 4 }
 0x1b0   :  { %v966_v39 = vsel %vm963_vm5, %v956_v16, %v961_v6  ;;  %v1087_v34 = vsel %vm1085_vm7, %v1076_v46, %v1082_v30  ;;  %1197 = vrot.lane.b32.xlu2 %v1193_v18, %s3048_s25  ;;  %vm1829_vm7 = vcmask 703488   ;;  %v2861_v18 = vld [vmem:[#allocation2] sm:$0xff] }
 0x1b1   :  { %974 = vst [vmem:[#allocation2 + $0xc8] sm:$0xf] %v966_v39  ;;  %v2878_v37 = vld [vmem:[#allocation2 + $0x88] sm:$0xff]  ;;  %2398 = vmatpush.bf16.msra.mxu0 %v2861_v18 }
 0x1b2   :  { %1095 = vst [vmem:[#allocation2 + $0xe4] sm:$0xf] %v1087_v34  ;;  %v1578_v19 = vpop.permute.xlu2 %1577  ;;  %2435 = vmatpush.bf16.msra.mxu2 %v2878_v37 }
 0x1b3   :  { %v1582_v1 = vrot.slane %v1578_v19, 4  ;;  %1203 = vrot.lane.b32.xlu1 %v1196_v29, %s3048_s25  ;;  %1695 = vrot.lane.b32.xlu0 %v1691_v0, %s3046_s23 }
 0x1b5   :  { %v1587_v33 = vsel %vm1583_vm3, %v1578_v19, %v1582_v1  ;;  %v1639_v4 = vpop.permute.xlu1 %1638  ;;  %v1017_v52 = vpop.permute.xlu0 %1016 }
 0x1b6   :  { %1595 = vst [vmem:[#allocation2 + $0x16c] sm:$0xf] %v1587_v33  ;;  %v1643_v21 = vrot.slane %v1639_v4, 4  ;;  %v1022_v35 = vrot.slane %v1017_v52, 4  ;;  %2436 = vmatpush.bf16.msra.mxu2 %v2877_v22 }
 0x1b8   :  { %v1648_v28 = vsel %vm1644_vm9, %v1639_v4, %v1643_v21  ;;  %v1027_v38 = vsel %vm1024_vm8, %v1017_v52, %v1022_v35  ;;  %v2886_v53 = vld [vmem:[#allocation2 + $0xc8] sm:$0xff] }
 0x1b9   :  { %1656 = vst [vmem:[#allocation2 + $0x17c] sm:$0xf] %v1648_v28  ;;  %v2889_v43 = vld [vmem:[#allocation2 + $0xe0] sm:$0xff] }
 0x1ba   :  { %1035 = vst [vmem:[#allocation2 + $0xd8] sm:$0xf] %v1027_v38  ;;  %v1387_v48 = vpop.permute.xlu2 %1386  ;;  %2451 = vmatpush.bf16.msra.mxu3 %v2889_v43 }
 0x1bb   :  { %v1394_v58 = vrot.slane %v1387_v48, 4  ;;  %1260 = vrot.lane.b32.xlu0 %v1255_v31, %s3045_s0 }
 0x1bd   :  { %v1399_v10 = vsel %vm1398_vm15, %v1387_v48, %v1394_v58  ;;  %v1633_v13 = vpop.permute.xlu1 %1632  ;;  %v1015_v49 = vpop.permute.xlu0 %1014 }
 0x1be   :  { %1407 = vst [vmem:[#allocation2 + $0x130] sm:$0xf] %v1399_v10  ;;  %v1640_v27 = vrot.slane %v1633_v13, 4  ;;  %v1021_v7 = vrot.slane %v1015_v49, 4 }
 0x1c0   :  { %v1645_v63 = vsel %vm1644_vm9, %v1633_v13, %v1640_v27  ;;  %v1026_v5 = vsel %vm1024_vm8, %v1015_v49, %v1021_v7 }
 0x1c1   :  { %1653 = vst [vmem:[#allocation2 + $0x170] sm:$0xf] %v1645_v63  ;;  %v2888_v11 = vld [vmem:[#allocation2 + $0xd8] sm:$0xff] }
 0x1c2   :  { %1034 = vst [vmem:[#allocation2 + $0xd4] sm:$0xf] %v1026_v5  ;;  %v1574_v25 = vpop.permute.xlu2 %1573  ;;  %2452 = vmatpush.bf16.msra.mxu3 %v2888_v11 }
 0x1c3   :  { %v1580_v57 = vrot.slane %v1574_v25, 4  ;;  %1201 = vrot.lane.b32.xlu0 %v1195_v17, %s3048_s25 }
 0x1c5   :  { %v1585_v51 = vsel %vm1583_vm3, %v1574_v25, %v1580_v57  ;;  %v1824_v59 = vpop.permute.xlu1 %1823  ;;  %v1637_v55 = vpop.permute.xlu0 %1636 }
 0x1c6   :  { %1593 = vst [vmem:[#allocation2 + $0x164] sm:$0xf] %v1585_v51  ;;  %v1828_v14 = vrot.slane %v1824_v59, 4  ;;  %v1642_v9 = vrot.slane %v1637_v55, 4 }
 0x1c8   :  { %v1833_v24 = vsel %vm1829_vm7, %v1824_v59, %v1828_v14  ;;  %v1647_v20 = vsel %vm1644_vm9, %v1637_v55, %v1642_v9  ;;  %v2907_v30 = vld [vmem:[#allocation2 + $0x170] sm:$0xff] }
 0x1c9   :  { %1841 = vst [vmem:[#allocation2 + $0x1ac] sm:$0xf] %v1833_v24  ;;  %v2887_v36 = vld [vmem:[#allocation2 + $0xd0] sm:$0xff] }
 0x1ca   :  { %1655 = vst [vmem:[#allocation2 + $0x178] sm:$0xf] %v1647_v20  ;;  %v1330_v42 = vpop.permute.xlu2 %1329  ;;  %2453 = vmatpush.bf16.msra.mxu3 %v2887_v36 }
 0x1cb   :  { %v1335_v2 = vrot.slane %v1330_v42, 4  ;;  %1199 = vrot.lane.b32.xlu0 %v1194_v32, %s3048_s25 }
 0x1cd   :  { %v1340_v60 = vsel %vm1337_vm11, %v1330_v42, %v1335_v2  ;;  %v1576_v61 = vpop.permute.xlu1 %1575  ;;  %v954_v50 = vpop.permute.xlu0 %953 }
 0x1ce   :  { %1348 = vst [vmem:[#allocation2 + $0x128] sm:$0xf] %v1340_v60  ;;  %v1581_v56 = vrot.slane %v1576_v61, 4  ;;  %v960_v23 = vrot.slane %v954_v50, 4  ;;  %2454 = vmatpush.bf16.msra.mxu3 %v2886_v53 }
 0x1d0   :  { %v1586_v40 = vsel %vm1583_vm3, %v1576_v61, %v1581_v56  ;;  %v965_v8 = vsel %vm963_vm5, %v954_v50, %v960_v23  ;;  %v2579_v61 = vld [vmem:[%s4614_s2 + $0x8] sm:$0xf]  ;;  %v2851_v50 = vld [vmem:[%s4614_s2 + $0x20] sm:$0xf0] }
 0x1d1   :  { %1594 = vst [vmem:[#allocation2 + $0x168] sm:$0xf] %v1586_v40  ;;  %v2908_v16 = vld [vmem:[#allocation2 + $0x178] sm:$0xff]  ;;  %v2580_v56 = vor.u32 %v2851_v50, %v2579_v61 }
 0x1d2   :  { %973 = vst [vmem:[#allocation2 + $0xc4] sm:$0xf] %v965_v8  ;;  %v1517_v46 = vpop.permute.xlu2 %1516  ;;  %2486 = vmatpush.bf16.msrb.mxu1 %v2908_v16 }
 0x1d3   :  { %v1521_v44 = vrot.slane %v1517_v46, 4  ;;  %2437 = vmatmul.bf16.vlgmr.msra.gmra.mxu2 %v2580_v56 }
 0x1d5   :  { %v1526_v45 = vsel %vm1522_vm1, %v1517_v46, %v1521_v44  ;;  %v1820_v15 = vpop.permute.xlu1 %1819  ;;  %v1822_v6 = vpop.permute.xlu0 %1821 }
 0x1d6   :  { %1534 = vst [vmem:[#allocation2 + $0x15c] sm:$0xf] %v1526_v45  ;;  %v1826_v39 = vrot.slane %v1820_v15, 4  ;;  %v1827_v34 = vrot.slane %v1822_v6, 4  ;;  %2487 = vmatpush.bf16.msrb.mxu1 %v2907_v30  ;;  %v2581_v30 = vld [vmem:[%s4614_s2 + $0x24] sm:$0xf0] }
 0x1d8   :  { %v1831_v29 = vsel %vm1829_vm7, %v1820_v15, %v1826_v39  ;;  %v1832_v0 = vsel %vm1829_vm7, %v1822_v6, %v1827_v34  ;;  %v2906_v37 = vld [vmem:[#allocation2 + $0x168] sm:$0xff]  ;;  %v2571_v39 = vld [vmem:[%s4614_s2] sm:$0xf] }
 0x1d9   :  { %1839 = vst [vmem:[#allocation2 + $0x1a4] sm:$0xf] %v1831_v29  ;;  %v2885_v19 = vld [vmem:[#allocation2 + $0xc0] sm:$0xff]  ;;  %v2848_v15 = vld [vmem:[%s4614_s2 + $0xc] sm:$0xf] }
 0x1da   :  { %1840 = vst [vmem:[#allocation2 + $0x1a8] sm:$0xf] %v1832_v0  ;;  %v1326_v1 = vpop.permute.xlu2 %1325  ;;  %2455 = vmatpush.bf16.msra.mxu3 %v2885_v19  ;;  %2488 = vmatpush.bf16.msrb.mxu1 %v2906_v37  ;;  %v2584_v29 = vor.u32 %v2848_v15, %v2581_v30  ;;  %v2850_v0 = vld [vmem:[%s4614_s2 + $0x18] sm:$0xf0]  ;;  %v2847_v37 = vld [vmem:[%s4614_s2 + $0x4] sm:$0xf] }
 0x1db   :  { %v1333_v33 = vrot.slane %v1326_v1, 4  ;;  %v2572_v19 = vor.u32 %v2850_v0, %v2571_v39  ;;  %v2589_v30 = vld [vmem:[%s4614_s2 + $0x2c] sm:$0xf0] }
 0x1dd   :  { %v1338_v4 = vsel %vm1337_vm11, %v1326_v1, %v1333_v33  ;;  %v1572_v52 = vpop.permute.xlu1 %1571  ;;  %v1393_v47 = vpop.permute.xlu0 %1392  ;;  %v2573_v1 = vld [vmem:[%s4614_s2 + $0x1c] sm:$0xf0]  ;;  %2456 = vmatmul.bf16.vlgmr.msra.gmra.mxu3 %v2584_v29  ;;  %2399 = vmatmul.bf16.vlgmr.msra.gmra.mxu0 %v2572_v19 }
 0x1de   :  { %1346 = vst [vmem:[#allocation2 + $0x120] sm:$0xf] %v1338_v4  ;;  %v1579_v3 = vrot.slane %v1572_v52, 4  ;;  %v1397_v21 = vrot.slane %v1393_v47, 4 }
 0x1e0   :  { %v1584_v35 = vsel %vm1583_vm3, %v1572_v52, %v1579_v3  ;;  %v1402_v22 = vsel %vm1398_vm15, %v1393_v47, %v1397_v21  ;;  %v2576_v47 = vor.u32 %v2847_v37, %v2573_v1 }
 0x1e1   :  { %1592 = vst [vmem:[#allocation2 + $0x160] sm:$0xf] %v1584_v35  ;;  %v2914_v28 = vld [vmem:[#allocation2 + $0x1a8] sm:$0xff] }
 0x1e2   :  { %1410 = vst [vmem:[#allocation2 + $0x13c] sm:$0xf] %v1402_v22  ;;  %v1513_v38 = vpop.permute.xlu2 %1512  ;;  %2507 = vmatpush.bf16.msrb.mxu2 %v2914_v28  ;;  %2418 = vmatmul.bf16.vlgmr.msra.gmra.mxu1 %v2576_v47 }
 0x1e3   :  { %v1519_v31 = vrot.slane %v1513_v38, 4 }
 0x1e5   :  { %v1524_v43 = vsel %vm1522_vm1, %v1513_v38, %v1519_v31  ;;  %v1763_v48 = vpop.permute.xlu1 %1762  ;;  %v1818_v58 = vpop.permute.xlu0 %1817 }
 0x1e6   :  { %1532 = vst [vmem:[#allocation2 + $0x154] sm:$0xf] %v1524_v43  ;;  %v1767_v10 = vrot.slane %v1763_v48, 4  ;;  %v1825_v13 = vrot.slane %v1818_v58, 4  ;;  %v2607_v43 = vld [vmem:[%s4614_s2 + $0x40] sm:$0xf] }
 0x1e8   :  { %v1772_v49 = vsel %vm1768_vm2, %v1763_v48, %v1767_v10  ;;  %v1830_v26 = vsel %vm1829_vm7, %v1818_v58, %v1825_v13  ;;  %v2905_v54 = vld [vmem:[#allocation2 + $0x160] sm:$0xff]  ;;  %v2858_v48 = vld [vmem:[%s4614_s2 + $0x58] sm:$0xf0] }
 0x1e9   :  { %1780 = vst [vmem:[#allocation2 + $0x19c] sm:$0xf] %v1772_v49  ;;  %v2900_v27 = vld [vmem:[#allocation2 + $0x138] sm:$0xff]  ;;  %2489 = vmatpush.bf16.msrb.mxu1 %v2905_v54  ;;  %v2608_v10 = vor.u32 %v2858_v48, %v2607_v43  ;;  %v2855_v54 = vld [vmem:[%s4614_s2 + $0x44] sm:$0xf] }
 0x1ea   :  { %1838 = vst [vmem:[#allocation2 + $0x1a0] sm:$0xf] %v1830_v26  ;;  %v1263_v7 = vpop.permute.xlu2 %1262  ;;  %2467 = vmatpush.bf16.msrb.mxu0 %v2900_v27  ;;  %2926 = vmatpush.bf16.msrb.mxu3 %v2900_v27 }
 0x1eb   :  { %v1268_v63 = vrot.slane %v1263_v7, 4  ;;  %2442 = vmatmul.bf16.gmra.mxu2 %v2608_v10  ;;  %v2623_v10 = vld [vmem:[%s4614_s2 + $0x50] sm:$0xf] }
 0x1ed   :  { %v1273_v5 = vsel %vm1270_vm10, %v1263_v7, %v1268_v63  ;;  %v1515_v17 = vpop.permute.xlu1 %1514  ;;  %v1389_v11 = vpop.permute.xlu0 %1388  ;;  %v2609_v63 = vld [vmem:[%s4614_s2 + $0x5c] sm:$0xf0] }
 0x1ee   :  { %1281 = vst [vmem:[#allocation2 + $0x118] sm:$0xf] %v1273_v5  ;;  %v1520_v25 = vrot.slane %v1515_v17, 4  ;;  %v1395_v57 = vrot.slane %v1389_v11, 4 }
 0x1f0   :  { %v1525_v51 = vsel %vm1522_vm1, %v1515_v17, %v1520_v25  ;;  %v1400_v59 = vsel %vm1398_vm15, %v1389_v11, %v1395_v57  ;;  %v2612_v25 = vor.u32 %v2855_v54, %v2609_v63  ;;  %v2599_v57 = vld [vmem:[%s4614_s2 + $0x38] sm:$0xf]  ;;  %v2615_v63 = vld [vmem:[%s4614_s2 + $0x48] sm:$0xf] }
 0x1f1   :  { %1533 = vst [vmem:[#allocation2 + $0x158] sm:$0xf] %v1525_v51  ;;  %v2913_v55 = vld [vmem:[#allocation2 + $0x1a0] sm:$0xff] }
 0x1f2   :  { %1408 = vst [vmem:[#allocation2 + $0x134] sm:$0xf] %v1400_v59  ;;  %v1454_v62 = vpop.permute.xlu2 %1453  ;;  %2508 = vmatpush.bf16.msrb.mxu2 %v2913_v55  ;;  %v1966_v51 = vld [vmem:[%s4615_s3] sm:$0xff]  ;;  %v2857_v59 = vld [vmem:[%s4614_s2 + $0x50] sm:$0xf0]  ;;  %2461 = vmatmul.bf16.gmra.mxu3 %v2612_v25 }
 0x1f3   :  { %v1458_v41 = vrot.slane %v1454_v62, 4  ;;  %v2854_v55 = vld [vmem:[%s4614_s2 + $0x3c] sm:$0xf]  ;;  %1972 = vperm.xlu1 %2987, %v1966_v51  }
 0x1f5   :  { %v1463_v14 = vsel %vm1459_vm6, %v1454_v62, %v1458_v41  ;;  %v1759_v9 = vpop.permute.xlu1 %1758  ;;  %v1761_v24 = vpop.permute.xlu0 %1760  ;;  %v2600_v62 = vor.u32 %v2857_v59, %v2599_v57  ;;  %v2601_v41 = vld [vmem:[%s4614_s2 + $0x54] sm:$0xf0] }
 0x1f6   :  { %1471 = vst [vmem:[#allocation2 + $0x14c] sm:$0xf] %v1463_v14  ;;  %v1765_v20 = vrot.slane %v1759_v9, 4  ;;  %v1766_v32 = vrot.slane %v1761_v24, 4  ;;  %v2604_v14 = vor.u32 %v2854_v55, %v2601_v41 }
 0x1f7   :  { %2404 = vmatmul.bf16.gmra.mxu0 %v2600_v62 }
 0x1f8   :  { %v1770_v36 = vsel %vm1768_vm2, %v1759_v9, %v1765_v20  ;;  %v1771_v42 = vsel %vm1768_vm2, %v1761_v24, %v1766_v32  ;;  %v2904_v12 = vld [vmem:[#allocation2 + $0x158] sm:$0xff]  ;;  %2423 = vmatmul.bf16.gmra.mxu1 %v2604_v14 }
 0x1f9   :  { %1778 = vst [vmem:[#allocation2 + $0x194] sm:$0xf] %v1770_v36  ;;  %v2899_v2 = vld [vmem:[#allocation2 + $0x130] sm:$0xff]  ;;  %2490 = vmatpush.bf16.msrb.mxu1 %v2904_v12 }
 0x1fa   :  { %1779 = vst [vmem:[#allocation2 + $0x198] sm:$0xf] %v1771_v42  ;;  %v1259_v60 = vpop.permute.xlu2 %1258  ;;  %2468 = vmatpush.bf16.msrb.mxu0 %v2899_v2  ;;  %2927 = vmatpush.bf16.msrb.mxu3 %v2899_v2 }
 0x1fb   :  { %v1266_v53 = vrot.slane %v1259_v60, 4 }
 0x1fd   :  { %v1271_v23 = vsel %vm1270_vm10, %v1259_v60, %v1266_v53  ;;  %v1511_v18 = vpop.permute.xlu1 %1510  ;;  %v1332_v40 = vpop.permute.xlu0 %1331 }
 0x1fe   :  { %1279 = vst [vmem:[#allocation2 + $0x110] sm:$0xf] %v1271_v23  ;;  %v1518_v8 = vrot.slane %v1511_v18, 4  ;;  %v1336_v16 = vrot.slane %v1332_v40, 4 }
 0x200   :  { %v1523_v46 = vsel %vm1522_vm1, %v1511_v18, %v1518_v8  ;;  %v1341_v44 = vsel %vm1337_vm11, %v1332_v40, %v1336_v16  ;;  %v1969_v40 = vld [vmem:[%s4615_s3 + $0x18] sm:$0xff]  ;;  %v1968_v8 = vld [vmem:[%s4615_s3 + $0x10] sm:$0xff]  ;;  %v1967_v16 = vld [vmem:[%s4615_s3 + $0x8] sm:$0xff] }
 0x201   :  { %1531 = vst [vmem:[#allocation2 + $0x150] sm:$0xf] %v1523_v46  ;;  %v2912_v45 = vld [vmem:[#allocation2 + $0x198] sm:$0xff]  ;;  %1987 = vperm.xlu1 %2987, %v1969_v40   ;;  %1982 = vperm.xlu0 %2989, %v1968_v8  }
 0x202   :  { %1349 = vst [vmem:[#allocation2 + $0x12c] sm:$0xf] %v1341_v44  ;;  %v1450_v6 = vpop.permute.xlu2 %1449  ;;  %2509 = vmatpush.bf16.msrb.mxu2 %v2912_v45  ;;  %1977 = vperm.xlu2 %2988, %v1967_v16  }
 0x203   :  { %v1456_v34 = vrot.slane %v1450_v6, 4 }
 0x205   :  { %v1461_v33 = vsel %vm1459_vm6, %v1450_v6, %v1456_v34  ;;  %v1702_v4 = vpop.permute.xlu1 %1701  ;;  %v1757_v52 = vpop.permute.xlu0 %1756  ;;  %v2849_v6 = vld [vmem:[%s4614_s2 + $0x14] sm:$0xf] }
 0x206   :  { %1469 = vst [vmem:[#allocation2 + $0x144] sm:$0xf] %v1461_v33  ;;  %v1706_v3 = vrot.slane %v1702_v4, 4  ;;  %v1764_v21 = vrot.slane %v1757_v52, 4  ;;  %v2592_v37 = vor.u32 %v2849_v6, %v2589_v30  ;;  %v2595_v33 = vld [vmem:[%s4614_s2 + $0x18] sm:$0xf] }
 0x208   :  { %v1711_v35 = vsel %vm1707_vm0, %v1702_v4, %v1706_v3  ;;  %v1769_v22 = vsel %vm1768_vm2, %v1757_v52, %v1764_v21  ;;  %v2903_v28 = vld [vmem:[#allocation2 + $0x150] sm:$0xff] }
 0x209   :  { %1719 = vst [vmem:[#allocation2 + $0x18c] sm:$0xf] %v1711_v35  ;;  %v2898_v38 = vld [vmem:[#allocation2 + $0x128] sm:$0xff]  ;;  %2491 = vmatpush.bf16.msrb.mxu1 %v2903_v28  ;;  %v2853_v4 = vld [vmem:[%s4614_s2 + $0x30] sm:$0xf0] }
 0x20a   :  { %1777 = vst [vmem:[#allocation2 + $0x190] sm:$0xf] %v1769_v22  ;;  %v1198_v31 = vpop.permute.xlu2 %1197  ;;  %2469 = vmatpush.bf16.msrb.mxu0 %v2898_v38  ;;  %2928 = vmatpush.bf16.msrb.mxu3 %v2898_v38  ;;  %v2596_v3 = vor.u32 %v2853_v4, %v2595_v33  ;;  %v2856_v22 = vld [vmem:[%s4614_s2 + $0x4c] sm:$0xf]  ;;  %v2617_v28 = vld [vmem:[%s4614_s2 + $0x64] sm:$0xf0] }
 0x20b   :  { %v1205_v58 = vrot.slane %v1198_v31, 4  ;;  %v2620_v43 = vor.u32 %v2856_v22, %v2617_v28 }
 0x20d   :  { %v1210_v13 = vsel %vm1209_vm4, %v1198_v31, %v1205_v58  ;;  %v1452_v49 = vpop.permute.xlu1 %1451  ;;  %v1328_v26 = vpop.permute.xlu0 %1327 }
 0x20e   :  { %1218 = vst [vmem:[#allocation2 + $0x100] sm:$0xf] %v1210_v13  ;;  %v1457_v27 = vrot.slane %v1452_v49, 4  ;;  %v1334_v7 = vrot.slane %v1328_v26, 4  ;;  %v2860_v13 = vld [vmem:[%s4614_s2 + $0x68] sm:$0xf0] }
 0x20f   :  { %v2624_v54 = vor.u32 %v2860_v13, %v2623_v10 }
 0x210   :  { %v1462_v5 = vsel %vm1459_vm6, %v1452_v49, %v1457_v27  ;;  %v1339_v17 = vsel %vm1337_vm11, %v1328_v26, %v1334_v7  ;;  %v2587_v27 = vld [vmem:[%s4614_s2 + $0x10] sm:$0xf]  ;;  %v2852_v7 = vld [vmem:[%s4614_s2 + $0x28] sm:$0xf0] }
 0x211   :  { %1470 = vst [vmem:[#allocation2 + $0x148] sm:$0xf] %v1462_v5  ;;  %v2911_v11 = vld [vmem:[#allocation2 + $0x190] sm:$0xff]  ;;  %v2859_v5 = vld [vmem:[%s4614_s2 + $0x60] sm:$0xf0] }
 0x212   :  { %1347 = vst [vmem:[#allocation2 + $0x124] sm:$0xf] %v1339_v17  ;;  %2510 = vmatpush.bf16.msrb.mxu2 %v2911_v11  ;;  %v2588_v11 = vor.u32 %v2852_v7, %v2587_v27  ;;  %v2616_v25 = vor.u32 %v2859_v5, %v2615_v63 }
 0x215   :  { %v1698_v9 = vpop.permute.xlu1 %1697  ;;  %v1700_v24 = vpop.permute.xlu0 %1699 }
 0x216   :  { %v1704_v20 = vrot.slane %v1698_v9, 4  ;;  %v1705_v32 = vrot.slane %v1700_v24, 4 }
 0x218   :  { %v1709_v36 = vsel %vm1707_vm0, %v1698_v9, %v1704_v20  ;;  %v1710_v42 = vsel %vm1707_vm0, %v1700_v24, %v1705_v32  ;;  %v2902_v12 = vld [vmem:[#allocation2 + $0x148] sm:$0xff] }
 0x219   :  { %1717 = vst [vmem:[#allocation2 + $0x184] sm:$0xf] %v1709_v36  ;;  %v2897_v2 = vld [vmem:[#allocation2 + $0x120] sm:$0xff]  ;;  %2492 = vmatpush.bf16.msrb.mxu1 %v2902_v12 }
 0x21a   :  { %1718 = vst [vmem:[#allocation2 + $0x188] sm:$0xf] %v1710_v42  ;;  %2470 = vmatpush.bf16.msrb.mxu0 %v2897_v2  ;;  %2929 = vmatpush.bf16.msrb.mxu3 %v2897_v2 }
 0x21d   :  { %v1448_v60 = vpop.permute.xlu1 %1447  ;;  %v1265_v61 = vpop.permute.xlu0 %1264 }
 0x21e   :  { %v1455_v50 = vrot.slane %v1448_v60, 4  ;;  %v1269_v53 = vrot.slane %v1265_v61, 4 }
 0x220   :  { %v1460_v56 = vsel %vm1459_vm6, %v1448_v60, %v1455_v50  ;;  %v1274_v23 = vsel %vm1270_vm10, %v1265_v61, %v1269_v53 }
 0x221   :  { %1468 = vst [vmem:[#allocation2 + $0x140] sm:$0xf] %v1460_v56  ;;  %v2910_v18 = vld [vmem:[#allocation2 + $0x188] sm:$0xff] }
 0x222   :  { %1282 = vst [vmem:[#allocation2 + $0x11c] sm:$0xf] %v1274_v23  ;;  %2511 = vmatpush.bf16.msrb.mxu2 %v2910_v18 }
 0x225   :  { %v1204_v46 = vpop.permute.xlu1 %1203  ;;  %v1696_v44 = vpop.permute.xlu0 %1695 }
 0x226   :  { %v1208_v45 = vrot.slane %v1204_v46, 4  ;;  %v1703_v15 = vrot.slane %v1696_v44, 4 }
 0x228   :  { %v1213_v39 = vsel %vm1209_vm4, %v1204_v46, %v1208_v45  ;;  %v1708_v34 = vsel %vm1707_vm0, %v1696_v44, %v1703_v15  ;;  %v2901_v29 = vld [vmem:[#allocation2 + $0x140] sm:$0xff] }
 0x229   :  { %1221 = vst [vmem:[#allocation2 + $0x10c] sm:$0xf] %v1213_v39  ;;  %v2896_v0 = vld [vmem:[#allocation2 + $0x118] sm:$0xff]  ;;  %2493 = vmatpush.bf16.msrb.mxu1 %v2901_v29 }
 0x22a   :  { %1716 = vst [vmem:[#allocation2 + $0x180] sm:$0xf] %v1708_v34  ;;  %2471 = vmatpush.bf16.msrb.mxu0 %v2896_v0  ;;  %2930 = vmatpush.bf16.msrb.mxu3 %v2896_v0 }
 0x22c   :  { %2494 = vmatmul.bf16.vlgmr.msrb.gmra.mxu1 %v2592_v37 }
 0x22d   :  { %v1261_v19 = vpop.permute.xlu0 %1260 }
 0x22e   :  { %v1267_v1 = vrot.slane %v1261_v19, 4 }
 0x230   :  { %v1272_v52 = vsel %vm1270_vm10, %v1261_v19, %v1267_v1 }
 0x231   :  { %1280 = vst [vmem:[#allocation2 + $0x114] sm:$0xf] %v1272_v52  ;;  %v2909_v47 = vld [vmem:[#allocation2 + $0x180] sm:$0xff] }
 0x232   :  { %2512 = vmatpush.bf16.msrb.mxu2 %v2909_v47 }
 0x235   :  { %v1202_v21 = vpop.permute.xlu0 %1201  ;;  %2841 = vmatmul.msk.bf16.vlgmr.msrb.gmra.mxu2 %vm1337_vm11, %v2596_v3 }
 0x236   :  { %v1207_v35 = vrot.slane %v1202_v21, 4 }
 0x238   :  { %v1212_v38 = vsel %vm1209_vm4, %v1202_v21, %v1207_v35  ;;  %v2895_v31 = vld [vmem:[#allocation2 + $0x110] sm:$0xff] }
 0x239   :  { %1220 = vst [vmem:[#allocation2 + $0x108] sm:$0xf] %v1212_v38  ;;  %2472 = vmatpush.bf16.msrb.mxu0 %v2895_v31  ;;  %2931 = vmatpush.bf16.msrb.mxu3 %v2895_v31 }
 0x23c   :  { %2499 = vmatmul.bf16.gmra.mxu1 %v2620_v43 }
 0x23d   :  { %v1200_v48 = vpop.permute.xlu0 %1199 }
 0x23e   :  { %v1206_v58 = vrot.slane %v1200_v48, 4 }
 0x240   :  { %v1211_v49 = vsel %vm1209_vm4, %v1200_v48, %v1206_v58  ;;  %v2894_v26 = vld [vmem:[#allocation2 + $0x108] sm:$0xff] }
 0x241   :  { %1219 = vst [vmem:[#allocation2 + $0x104] sm:$0xf] %v1211_v49  ;;  %2473 = vmatpush.bf16.msrb.mxu0 %v2894_v26  ;;  %2932 = vmatpush.bf16.msrb.mxu3 %v2894_v26 }
 0x245   :  { %2842 = vmatmul.msk.bf16.gmra.mxu2 %vm1337_vm11, %v2624_v54 }
 0x248   :  { %v2893_v17 = vld [vmem:[#allocation2 + $0x100] sm:$0xff] }
 0x249   :  { %2474 = vmatpush.bf16.msrb.mxu0 %v2893_v17  ;;  %2933 = vmatpush.bf16.msrb.mxu3 %v2893_v17 }
 0x24c   :  { %2475 = vmatmul.bf16.vlgmr.msrb.gmra.mxu0 %v2588_v11  ;;  %2480 = vmatmul.bf16.vlgmr.msrb.gmra.mxu3 %v2616_v25 }
 0x256   :  { %v2438_v51 = vpop.f32.mrf.mxu2 }
 0x25a   :  { %v2400_v62 = vpop.f32.mrf.mxu0 }
 0x25c   :  { %v1978_v53 = vpop.permute.xlu2 %1977 }
 0x25e   :  { %v2440_v55 = vpop.f32.mrf.mxu2 }
 0x25f   :  { %v2419_v57 = vpop.f32.mrf.mxu1 }
 0x260   :  { %v2457_v14 = vpop.f32.mrf.mxu3 }
 0x262   :  { %v2402_v24 = vpop.f32.mrf.mxu0 }
 0x263   :  { %v2403_v40 = vadd.f32 %v2402_v24, %v1978_v53 }
 0x265   :  { %v1973_v12 = vpop.permute.xlu1 %1972 }
 0x266   :  { %v2401_v50 = vadd.f32 %v2400_v62, %v1973_v12 }
 0x267   :  { %v2421_v59 = vpop.f32.mrf.mxu1 }
 0x268   :  { %v2459_v32 = vpop.f32.mrf.mxu3  ;;  %v2420_v18 = vadd.f32 %v2419_v57, %v2401_v50  ;;  %v2422_v6 = vadd.f32 %v2421_v59, %v2403_v40 }
 0x26a   :  { %v2439_v44 = vadd.f32 %v2438_v51, %v2420_v18  ;;  %v2441_v0 = vadd.f32 %v2440_v55, %v2422_v6 }
 0x26c   :  { %v2458_v29 = vadd.f32 %v2457_v14, %v2439_v44  ;;  %v2460_v52 = vadd.f32 %v2459_v32, %v2441_v0 }
 0x26e   :  { %v2443_v9 = vpop.f32.mrf.mxu2 }
 0x273   :  { %v1983_v56 = vpop.permute.xlu0 %1982  ;;  %v1988_v46 = vpop.permute.xlu1 %1987 }
 0x274   :  { %v2405_v42 = vpop.f32.mrf.mxu0 }
 0x275   :  { %v2424_v41 = vpop.f32.mrf.mxu1  ;;  %v2462_v60 = vpop.f32.mrf.mxu3  ;;  %v2406_v8 = vadd.f32 %v2405_v42, %v1983_v56 }
 0x276   :  { %v2445_v36 = vpop.f32.mrf.mxu2 }
 0x277   :  { %v2425_v30 = vadd.f32 %v2424_v41, %v2406_v8 }
 0x279   :  { %v2444_v19 = vadd.f32 %v2443_v9, %v2425_v30 }
 0x27b   :  { %v2463_v3 = vadd.f32 %v2462_v60, %v2444_v19 }
 0x27c   :  { %v2407_v23 = vpop.f32.mrf.mxu0 }
 0x27d   :  { %v2426_v20 = vpop.f32.mrf.mxu1  ;;  %v2464_v45 = vpop.f32.mrf.mxu3  ;;  %v2408_v34 = vadd.f32 %v2407_v23, %v1988_v46 }
 0x27f   :  { %v2427_v1 = vadd.f32 %v2426_v20, %v2408_v34 }
 0x281   :  { %v2446_v22 = vadd.f32 %v2445_v36, %v2427_v1 }
 0x283   :  { %v2465_v48 = vadd.f32 %v2464_v45, %v2446_v22 }
 0x2a9   :  { %v2495_v2 = vpop.f32.mrf.mxu1 }
 0x2b1   :  { %v2497_v16 = vpop.f32.mrf.mxu1 }
 0x2b8   :  { %v2514_v61 = vpop.f32.mrf.mxu2 }
 0x2b9   :  { %v2500_v33 = vpop.f32.mrf.mxu1 }
 0x2c0   :  { %v2516_v15 = vpop.f32.mrf.mxu2 }
 0x2c1   :  { %v2502_v27 = vpop.f32.mrf.mxu1 }
 0x2c8   :  { %v2519_v21 = vpop.f32.mrf.mxu2 }
 0x2c9   :  { %v2476_v39 = vpop.f32.mrf.mxu0 }
 0x2ca   :  { %v2477_v37 = vadd.f32 %v2476_v39, %v2458_v29 }
 0x2cc   :  { %v2496_v47 = vadd.f32 %v2495_v2, %v2477_v37 }
 0x2ce   :  { %v2515_v31 = vadd.f32 %v2514_v61, %v2496_v47 }
 0x2cf   :  { %v2481_v4 = vpop.f32.mrf.mxu3 }
 0x2d0   :  { %v2482_v28 = vadd.f32 %v2481_v4, %v2463_v3  ;;  %v2524_v49 = vmax.f32 %v2515_v31, 0.0  ;;  %v2521_v17 = vpop.f32.mrf.mxu2 }
 0x2d1   :  { %v2478_v35 = vpop.f32.mrf.mxu0 }
 0x2d2   :  { %v2479_v38 = vadd.f32 %v2478_v35, %v2460_v52  ;;  %v2501_v58 = vadd.f32 %v2500_v33, %v2482_v28 }
 0x2d4   :  { %v2498_v43 = vadd.f32 %v2497_v16, %v2479_v38  ;;  %v2520_v7 = vadd.f32 %v2519_v21, %v2501_v58 }
 0x2d6   :  { %v2517_v10 = vadd.f32 %v2516_v15, %v2498_v43  ;;  %v2526_v25 = vmax.f32 %v2520_v7, 0.0 }
 0x2d7   :  { %v2483_v13 = vpop.f32.mrf.mxu3 }
 0x2d8   :  { %v2525_v26 = vmax.f32 %v2517_v10, 0.0  ;;  %v2484_v54 = vadd.f32 %v2483_v13, %v2465_v48 }
 0x2da   :  { %v2918_v63 = vpack.c.bf16 %v2525_v26, %v2524_v49  ;;  %v2503_v5 = vadd.f32 %v2502_v27, %v2484_v54 }
 0x2dc   :  { %2919 = vst [vmem:[%s4616_s4] sm:$0xff] %v2918_v63   ;;  %v2522_v11 = vadd.f32 %v2521_v17, %v2503_v5 }
 0x2de   :  { %v2527_v57 = vmax.f32 %v2522_v11, 0.0 }
 0x2e0   :  { %v2923_v51 = vpack.c.bf16 %v2527_v57, %v2526_v25 }
 0x2e2   :  { %2925 = vst [vmem:[%s4616_s4 + $0x8] sm:$0xff] %v2923_v51  }

</bundles_post_ra>
